<compile_context>
chip_gen: v7x
topology: tpu7x:2x2x1
jax: 0.10.0
libtpu: 0.0.40
codegen_flags: <defaults>
</compile_context>

<pallas_src>
import functools

import jax
import jax.numpy as jnp
import numpy as np
from jax.experimental import pallas as pl
from jax.experimental.pallas import tpu as pltpu


def netu_kernel(x_ref,
                w1_ref, b1_ref, w2_ref, b2_ref, w3_ref, b3_ref,
                w4_ref, b4_ref, w5_ref, b5_ref, wf_ref, bf_ref,
                o_ref,
                a1_ref, a2_ref, a3_ref, a4_ref,
                *, K, P, L, BT):
    # One grid step handles BT batch elements.  x_ref: (L+2P, BT, d_in) f32,
    # already zero-padded along L.  Scratch a1..a4: (L+2P, BT, C_i) bf16
    # padded activation slabs feeding the next layer's window reads.
    #
    # TODO(synk): the PyTorch forward re-applies conv2 three times, which is
    # shape-inconsistent with conv2.in_channels; we implement the evidently
    # intended conv1..conv5 stack (consistent with fc1's 5*filters*d_out
    # input), ReLU after the first four convs and none after the last.

    def conv(src_ref, w_ref, b_ref, relu):
        # Conv as K accumulating MXU matmuls (no lane-dimension concatenate):
        #   y = sum_k dot(src[k:k+L].reshape(L*BT, Cin), w[k])
        # The source slab is loaded once; leading-axis value slices and the
        # (L, BT, Cin) -> (L*BT, Cin) reshape are layout no-ops.
        cin = src_ref.shape[-1]
        cout = w_ref.shape[-1]
        src = src_ref[...]
        if src.dtype != jnp.bfloat16:        # x arrives f32; cast once, not per window
            src = src.astype(jnp.bfloat16)
        w = w_ref[...]                       # (K, Cin, Cout) bf16
        acc = jnp.zeros((L * BT, cout), jnp.float32)
        for k in range(K):
            patch = src[k:k + L].reshape(L * BT, cin)
            acc = acc + jnp.dot(patch, w[k], preferred_element_type=jnp.float32)
        acc = acc + b_ref[...]
        return jnp.maximum(acc, 0.0) if relu else acc        # (L*BT, Cout) f32

    def store_padded(a_ref, y2d):
        # Single full-slab store; activation cast to bf16 exactly once here.
        # Pad rows are rebuilt every step -> no cross-step scratch state
        # (safe under "parallel"/megacore grid execution).
        cout = a_ref.shape[-1]
        body = y2d.reshape(L, BT, cout).astype(jnp.bfloat16)
        zpad = jnp.zeros((P, BT, cout), jnp.bfloat16)
        a_ref[...] = jnp.concatenate([zpad, body, zpad], axis=0)

    store_padded(a1_ref, conv(x_ref, w1_ref, b1_ref, relu=True))
    store_padded(a2_ref, conv(a1_ref, w2_ref, b2_ref, relu=True))
    store_padded(a3_ref, conv(a2_ref, w3_ref, b3_ref, relu=True))
    store_padded(a4_ref, conv(a3_ref, w4_ref, b4_ref, relu=True))
    h5 = conv(a4_ref, w5_ref, b5_ref, relu=False)             # (L*BT, 5F) f32

    # Fully connected layer as L accumulating matmuls over sublane-aligned row
    # blocks (rows l*BT..(l+1)*BT hold sequence position l of every sample) --
    # no lane-dimension concatenate to build a (BT, L*5F) operand.
    d_out = wf_ref.shape[-1]
    wf = wf_ref[...]                                          # (L, 5F, d_out) bf16
    h5b = h5.astype(jnp.bfloat16)
    acc = jnp.zeros((BT, d_out), jnp.float32)
    for l in range(L):
        acc = acc + jnp.dot(h5b[l * BT:(l + 1) * BT, :], wf[l],
                            preferred_element_type=jnp.float32)
    o_ref[...] = acc + bf_ref[...]


def _round_up(v, m):
    return ((v + m - 1) // m) * m


def netu_forward(x_ncl, params, *, K=7, P=3, block_b=None):
    """x_ncl: (B, d_in, L) in PyTorch NCL layout; returns (B, d_out)."""
    x_ncl = x_ncl.astype(jnp.float32)
    B, d_in, L = x_ncl.shape
    d_out = params["bf"].shape[-1]
    f5 = params["b5"].shape[-1]                               # 5 * filters

    # Batch tile: one fat step for small batches (per-step overhead dominates
    # here; v5e/v6e have a single TensorCore), multiple of 16 so the conv
    # matmul M = L*BT fills v6e/v7x MXU rows; capped at 256 so large batches
    # keep >= 2 "parallel" grid steps for v7x's two TensorCores.  VMEM is not
    # a constraint at these widths on any generation.
    if block_b is None:
        BT = min(256, _round_up(B, 16))
    else:
        BT = _round_up(block_b, 8)
    Bp = _round_up(B, BT)

    # Length-major (L+2P, B, d_in) layout, zero-padded once along L.
    x_lbc = jnp.transpose(x_ncl, (2, 0, 1))
    x_lbc = jnp.pad(x_lbc, ((P, P), (0, Bp - B), (0, 0)))

    # Weights stay in (K, Cin, Cout) / (L, 5F, d_out) form and are sliced
    # along the leading axis inside the kernel; bf16 operands, f32 biases
    # (accumulation stays f32 via preferred_element_type).
    flat = []
    for i in range(1, 6):
        flat.append(params[f"w{i}"].astype(jnp.bfloat16))              # (K, Cin, Cout)
        flat.append(params[f"b{i}"].reshape(1, -1).astype(jnp.float32))
    flat.append(params["wf"].reshape(L, f5, d_out).astype(jnp.bfloat16))
    flat.append(params["bf"].reshape(1, -1).astype(jnp.float32))

    def full_spec(p):
        return pl.BlockSpec(p.shape, lambda i, _nd=p.ndim: (0,) * _nd)

    chans = [params[f"b{i}"].shape[-1] for i in range(1, 5)]           # C1..C4
    all_chans = [d_in] + [params[f"b{i}"].shape[-1] for i in range(1, 6)]

    flops = sum(2 * K * all_chans[i] * all_chans[i + 1] * L * Bp for i in range(5))
    flops += 2 * L * f5 * d_out * Bp
    bytes_accessed = int(x_lbc.size) * 4 + Bp * d_out * 4 \
        + sum(int(p.size) * p.dtype.itemsize for p in flat)

    out = pl.pallas_call(
        functools.partial(netu_kernel, K=K, P=P, L=L, BT=BT),
        out_shape=jax.ShapeDtypeStruct((Bp, d_out), jnp.float32),
        grid=(Bp // BT,),
        in_specs=[pl.BlockSpec((L + 2 * P, BT, d_in), lambda i: (0, i, 0))]
                + [full_spec(p) for p in flat],
        out_specs=pl.BlockSpec((BT, d_out), lambda i: (i, 0)),
        scratch_shapes=[pltpu.VMEM((L + 2 * P, BT, c), jnp.bfloat16)
                        for c in chans],
        compiler_params=pltpu.CompilerParams(
            dimension_semantics=("parallel",)),
        cost_estimate=pl.CostEstimate(flops=int(flops), transcendentals=0,
                                      bytes_accessed=int(bytes_accessed)),
    )(x_lbc, *flat)
    return out[:B]


def netu_reference(x_ncl, params, *, K=7, P=3):
    """Pure-JAX reference with matching bf16-operand / f32-accumulate math."""
    x = jnp.transpose(x_ncl, (0, 2, 1)).astype(jnp.float32)            # (B, L, d_in)

    def conv(h, w, b, relu):
        Lh = h.shape[1]
        hp = jnp.pad(h, ((0, 0), (P, P), (0, 0)))
        patches = jnp.concatenate([hp[:, k:k + Lh, :] for k in range(K)], axis=-1)
        w2 = w.reshape(-1, w.shape[-1])
        out = jnp.einsum("blk,kd->bld",
                         patches.astype(jnp.bfloat16), w2.astype(jnp.bfloat16),
                         preferred_element_type=jnp.float32) + b
        return jnp.maximum(out, 0.0) if relu else out

    h = conv(x, params["w1"], params["b1"], True)
    h = conv(h, params["w2"], params["b2"], True)
    h = conv(h, params["w3"], params["b3"], True)
    h = conv(h, params["w4"], params["b4"], True)
    h = conv(h, params["w5"], params["b5"], False)                     # (B, L, 5F)
    hf = h.reshape(h.shape[0], -1)                                     # l-major flatten
    wf = params["wf"].reshape(-1, params["bf"].shape[-1])
    y = jnp.einsum("bk,kd->bd", hf.astype(jnp.bfloat16), wf.astype(jnp.bfloat16),
                   preferred_element_type=jnp.float32)
    return y + params["bf"]


if __name__ == "__main__":
    B, d_in, filters, d_out = 16, 4, 8, 16
    K, P = 7, 3
    L = d_out  # fc1(5*filters*d_out -> d_out) implies sequence length == d_out

    key = jax.random.PRNGKey(0)
    ks = jax.random.split(key, 13)

    def init(k, shape, scale=0.1):
        return (scale * jax.random.normal(k, shape)).astype(jnp.float32)

    chans = [d_in, filters, 2 * filters, 3 * filters, 4 * filters, 5 * filters]
    params = {}
    for i in range(5):
        params[f"w{i + 1}"] = init(ks[2 * i], (K, chans[i], chans[i + 1]))
        params[f"b{i + 1}"] = init(ks[2 * i + 1], (1, chans[i + 1]))
    params["wf"] = init(ks[10], (L, 5 * filters, d_out))
    params["bf"] = init(ks[11], (1, d_out))

    x = jax.random.normal(ks[12], (B, d_in, L), dtype=jnp.float32)

    out = jax.block_until_ready(netu_forward(x, params, K=K, P=P))
    ref = netu_reference(x, params, K=K, P=P)

    assert out.shape == (B, d_out), out.shape
    np.testing.assert_allclose(np.asarray(out), np.asarray(ref),
                               rtol=1e-2, atol=1e-2)
    print("KERNEL_OK")
</pallas_src>

<mosaic_0001>
module attributes {stable_mosaic.version = 11 : i64} {
  func.func @netu_kernel(%arg0: i32, %arg1: memref<22x16x4xf32, #tpu.memory_space<vmem>>, %arg2: memref<7x4x8xbf16, #tpu.memory_space<vmem>>, %arg3: memref<1x8xf32, #tpu.memory_space<vmem>>, %arg4: memref<7x8x16xbf16, #tpu.memory_space<vmem>>, %arg5: memref<1x16xf32, #tpu.memory_space<vmem>>, %arg6: memref<7x16x24xbf16, #tpu.memory_space<vmem>>, %arg7: memref<1x24xf32, #tpu.memory_space<vmem>>, %arg8: memref<7x24x32xbf16, #tpu.memory_space<vmem>>, %arg9: memref<1x32xf32, #tpu.memory_space<vmem>>, %arg10: memref<7x32x40xbf16, #tpu.memory_space<vmem>>, %arg11: memref<1x40xf32, #tpu.memory_space<vmem>>, %arg12: memref<16x40x16xbf16, #tpu.memory_space<vmem>>, %arg13: memref<1x16xf32, #tpu.memory_space<vmem>>, %arg14: memref<16x16xf32, #tpu.memory_space<vmem>>, %arg15: memref<22x16x8xbf16, #tpu.memory_space<vmem>>, %arg16: memref<22x16x16xbf16, #tpu.memory_space<vmem>>, %arg17: memref<22x16x24xbf16, #tpu.memory_space<vmem>>, %arg18: memref<22x16x32xbf16, #tpu.memory_space<vmem>>) attributes {dimension_semantics = [#tpu.dimension_semantics<parallel>], iteration_bounds = array<i64: 1>, scalar_prefetch = 0 : i64, scratch_operands = 4 : i64, tpu.core_type = #tpu.core_type<tc>, window_params = [{transform_indices = @transform_0, window_bounds = array<i64: 22, 16, 4>}, {pipeline_mode = #tpu.pipeline_mode<synchronous>, transform_indices = @transform_1, window_bounds = array<i64: 7, 4, 8>}, {pipeline_mode = #tpu.pipeline_mode<synchronous>, transform_indices = @transform_2, window_bounds = array<i64: 1, 8>}, {pipeline_mode = #tpu.pipeline_mode<synchronous>, transform_indices = @transform_3, window_bounds = array<i64: 7, 8, 16>}, {pipeline_mode = #tpu.pipeline_mode<synchronous>, transform_indices = @transform_4, window_bounds = array<i64: 1, 16>}, {pipeline_mode = #tpu.pipeline_mode<synchronous>, transform_indices = @transform_5, window_bounds = array<i64: 7, 16, 24>}, {pipeline_mode = #tpu.pipeline_mode<synchronous>, transform_indices = @transform_6, window_bounds = array<i64: 1, 24>}, {pipeline_mode = #tpu.pipeline_mode<synchronous>, transform_indices = @transform_7, window_bounds = array<i64: 7, 24, 32>}, {pipeline_mode = #tpu.pipeline_mode<synchronous>, transform_indices = @transform_8, window_bounds = array<i64: 1, 32>}, {pipeline_mode = #tpu.pipeline_mode<synchronous>, transform_indices = @transform_9, window_bounds = array<i64: 7, 32, 40>}, {pipeline_mode = #tpu.pipeline_mode<synchronous>, transform_indices = @transform_10, window_bounds = array<i64: 1, 40>}, {pipeline_mode = #tpu.pipeline_mode<synchronous>, transform_indices = @transform_11, window_bounds = array<i64: 16, 40, 16>}, {pipeline_mode = #tpu.pipeline_mode<synchronous>, transform_indices = @transform_12, window_bounds = array<i64: 1, 16>}, {transform_indices = @transform_13, window_bounds = array<i64: 16, 16>}]} {
    %c0 = arith.constant 0 : index
    %c0_0 = arith.constant 0 : index
    %c0_1 = arith.constant 0 : index
    %0 = vector.load %arg1[%c0, %c0_0, %c0_1] : memref<22x16x4xf32, #tpu.memory_space<vmem>>, vector<22x16x4xf32>
    %1 = arith.truncf %0 : vector<22x16x4xf32> to vector<22x16x4xbf16>
    %c0_2 = arith.constant 0 : index
    %c0_3 = arith.constant 0 : index
    %c0_4 = arith.constant 0 : index
    %2 = vector.load %arg2[%c0_2, %c0_3, %c0_4] : memref<7x4x8xbf16, #tpu.memory_space<vmem>>, vector<7x4x8xbf16>
    %cst = arith.constant 0.000000e+00 : f32
    %3 = vector.broadcast %cst : f32 to vector<256x8xf32>
    %4 = vector.extract_strided_slice %1 {offsets = [0, 0, 0], sizes = [16, 16, 4], strides = [1, 1, 1]} : vector<22x16x4xbf16> to vector<16x16x4xbf16>
    %5 = vector.shape_cast %4 : vector<16x16x4xbf16> to vector<256x4xbf16>
    %6 = vector.extract_strided_slice %2 {offsets = [0, 0, 0], sizes = [1, 4, 8], strides = [1, 1, 1]} : vector<7x4x8xbf16> to vector<1x4x8xbf16>
    %7 = vector.shape_cast %6 : vector<1x4x8xbf16> to vector<4x8xbf16>
    %cst_5 = arith.constant dense<0.000000e+00> : vector<256x8xf32>
    %8 = tpu.matmul %5, %7, %cst_5 {dimension_numbers = #tpu.dot_dimension_numbers<[1], [0], [0], [1], [0, 0, 1, 1], [], []>} : vector<256x4xbf16>, vector<4x8xbf16>, vector<256x8xf32> -> vector<256x8xf32>
    %9 = arith.addf %3, %8 : vector<256x8xf32>
    %10 = vector.extract_strided_slice %1 {offsets = [1, 0, 0], sizes = [16, 16, 4], strides = [1, 1, 1]} : vector<22x16x4xbf16> to vector<16x16x4xbf16>
    %11 = vector.shape_cast %10 : vector<16x16x4xbf16> to vector<256x4xbf16>
    %12 = vector.extract_strided_slice %2 {offsets = [1, 0, 0], sizes = [1, 4, 8], strides = [1, 1, 1]} : vector<7x4x8xbf16> to vector<1x4x8xbf16>
    %13 = vector.shape_cast %12 : vector<1x4x8xbf16> to vector<4x8xbf16>
    %cst_6 = arith.constant dense<0.000000e+00> : vector<256x8xf32>
    %14 = tpu.matmul %11, %13, %cst_6 {dimension_numbers = #tpu.dot_dimension_numbers<[1], [0], [0], [1], [0, 0, 1, 1], [], []>} : vector<256x4xbf16>, vector<4x8xbf16>, vector<256x8xf32> -> vector<256x8xf32>
    %15 = arith.addf %9, %14 : vector<256x8xf32>
    %16 = vector.extract_strided_slice %1 {offsets = [2, 0, 0], sizes = [16, 16, 4], strides = [1, 1, 1]} : vector<22x16x4xbf16> to vector<16x16x4xbf16>
    %17 = vector.shape_cast %16 : vector<16x16x4xbf16> to vector<256x4xbf16>
    %18 = vector.extract_strided_slice %2 {offsets = [2, 0, 0], sizes = [1, 4, 8], strides = [1, 1, 1]} : vector<7x4x8xbf16> to vector<1x4x8xbf16>
    %19 = vector.shape_cast %18 : vector<1x4x8xbf16> to vector<4x8xbf16>
    %cst_7 = arith.constant dense<0.000000e+00> : vector<256x8xf32>
    %20 = tpu.matmul %17, %19, %cst_7 {dimension_numbers = #tpu.dot_dimension_numbers<[1], [0], [0], [1], [0, 0, 1, 1], [], []>} : vector<256x4xbf16>, vector<4x8xbf16>, vector<256x8xf32> -> vector<256x8xf32>
    %21 = arith.addf %15, %20 : vector<256x8xf32>
    %22 = vector.extract_strided_slice %1 {offsets = [3, 0, 0], sizes = [16, 16, 4], strides = [1, 1, 1]} : vector<22x16x4xbf16> to vector<16x16x4xbf16>
    %23 = vector.shape_cast %22 : vector<16x16x4xbf16> to vector<256x4xbf16>
    %24 = vector.extract_strided_slice %2 {offsets = [3, 0, 0], sizes = [1, 4, 8], strides = [1, 1, 1]} : vector<7x4x8xbf16> to vector<1x4x8xbf16>
    %25 = vector.shape_cast %24 : vector<1x4x8xbf16> to vector<4x8xbf16>
    %cst_8 = arith.constant dense<0.000000e+00> : vector<256x8xf32>
    %26 = tpu.matmul %23, %25, %cst_8 {dimension_numbers = #tpu.dot_dimension_numbers<[1], [0], [0], [1], [0, 0, 1, 1], [], []>} : vector<256x4xbf16>, vector<4x8xbf16>, vector<256x8xf32> -> vector<256x8xf32>
    %27 = arith.addf %21, %26 : vector<256x8xf32>
    %28 = vector.extract_strided_slice %1 {offsets = [4, 0, 0], sizes = [16, 16, 4], strides = [1, 1, 1]} : vector<22x16x4xbf16> to vector<16x16x4xbf16>
    %29 = vector.shape_cast %28 : vector<16x16x4xbf16> to vector<256x4xbf16>
    %30 = vector.extract_strided_slice %2 {offsets = [4, 0, 0], sizes = [1, 4, 8], strides = [1, 1, 1]} : vector<7x4x8xbf16> to vector<1x4x8xbf16>
    %31 = vector.shape_cast %30 : vector<1x4x8xbf16> to vector<4x8xbf16>
    %cst_9 = arith.constant dense<0.000000e+00> : vector<256x8xf32>
    %32 = tpu.matmul %29, %31, %cst_9 {dimension_numbers = #tpu.dot_dimension_numbers<[1], [0], [0], [1], [0, 0, 1, 1], [], []>} : vector<256x4xbf16>, vector<4x8xbf16>, vector<256x8xf32> -> vector<256x8xf32>
    %33 = arith.addf %27, %32 : vector<256x8xf32>
    %34 = vector.extract_strided_slice %1 {offsets = [5, 0, 0], sizes = [16, 16, 4], strides = [1, 1, 1]} : vector<22x16x4xbf16> to vector<16x16x4xbf16>
    %35 = vector.shape_cast %34 : vector<16x16x4xbf16> to vector<256x4xbf16>
    %36 = vector.extract_strided_slice %2 {offsets = [5, 0, 0], sizes = [1, 4, 8], strides = [1, 1, 1]} : vector<7x4x8xbf16> to vector<1x4x8xbf16>
    %37 = vector.shape_cast %36 : vector<1x4x8xbf16> to vector<4x8xbf16>
    %cst_10 = arith.constant dense<0.000000e+00> : vector<256x8xf32>
    %38 = tpu.matmul %35, %37, %cst_10 {dimension_numbers = #tpu.dot_dimension_numbers<[1], [0], [0], [1], [0, 0, 1, 1], [], []>} : vector<256x4xbf16>, vector<4x8xbf16>, vector<256x8xf32> -> vector<256x8xf32>
    %39 = arith.addf %33, %38 : vector<256x8xf32>
    %40 = vector.extract_strided_slice %1 {offsets = [6, 0, 0], sizes = [16, 16, 4], strides = [1, 1, 1]} : vector<22x16x4xbf16> to vector<16x16x4xbf16>
    %41 = vector.shape_cast %40 : vector<16x16x4xbf16> to vector<256x4xbf16>
    %42 = vector.extract_strided_slice %2 {offsets = [6, 0, 0], sizes = [1, 4, 8], strides = [1, 1, 1]} : vector<7x4x8xbf16> to vector<1x4x8xbf16>
    %43 = vector.shape_cast %42 : vector<1x4x8xbf16> to vector<4x8xbf16>
    %cst_11 = arith.constant dense<0.000000e+00> : vector<256x8xf32>
    %44 = tpu.matmul %41, %43, %cst_11 {dimension_numbers = #tpu.dot_dimension_numbers<[1], [0], [0], [1], [0, 0, 1, 1], [], []>} : vector<256x4xbf16>, vector<4x8xbf16>, vector<256x8xf32> -> vector<256x8xf32>
    %45 = arith.addf %39, %44 : vector<256x8xf32>
    %c0_12 = arith.constant 0 : index
    %c0_13 = arith.constant 0 : index
    %46 = vector.load %arg3[%c0_12, %c0_13] : memref<1x8xf32, #tpu.memory_space<vmem>>, vector<1x8xf32>
    %47 = vector.broadcast %46 : vector<1x8xf32> to vector<256x8xf32>
    %48 = arith.addf %45, %47 : vector<256x8xf32>
    %cst_14 = arith.constant 0.000000e+00 : f32
    %49 = vector.broadcast %cst_14 : f32 to vector<256x8xf32>
    %50 = arith.maximumf %48, %49 : vector<256x8xf32>
    %51 = vector.shape_cast %50 : vector<256x8xf32> to vector<16x16x8xf32>
    %52 = arith.truncf %51 : vector<16x16x8xf32> to vector<16x16x8xbf16>
    %cst_15 = arith.constant 0.000000e+00 : bf16
    %53 = vector.broadcast %cst_15 : bf16 to vector<3x16x8xbf16>
    %54 = tpu.concatenate %53, %52, %53 in 0 : vector<3x16x8xbf16>, vector<16x16x8xbf16>, vector<3x16x8xbf16> -> vector<22x16x8xbf16>
    %c0_16 = arith.constant 0 : index
    %c0_17 = arith.constant 0 : index
    %c0_18 = arith.constant 0 : index
    %55 = vector.load %arg15[%c0_16, %c0_17, %c0_18] : memref<22x16x8xbf16, #tpu.memory_space<vmem>>, vector<22x16x8xbf16>
    tpu.vector_store %arg15[%c0_16, %c0_17, %c0_18], %54 {strides = array<i32>} : memref<22x16x8xbf16, #tpu.memory_space<vmem>>, vector<22x16x8xbf16>,
    %c0_19 = arith.constant 0 : index
    %c0_20 = arith.constant 0 : index
    %c0_21 = arith.constant 0 : index
    %56 = vector.load %arg15[%c0_19, %c0_20, %c0_21] : memref<22x16x8xbf16, #tpu.memory_space<vmem>>, vector<22x16x8xbf16>
    %c0_22 = arith.constant 0 : index
    %c0_23 = arith.constant 0 : index
    %c0_24 = arith.constant 0 : index
    %57 = vector.load %arg4[%c0_22, %c0_23, %c0_24] : memref<7x8x16xbf16, #tpu.memory_space<vmem>>, vector<7x8x16xbf16>
    %cst_25 = arith.constant 0.000000e+00 : f32
    %58 = vector.broadcast %cst_25 : f32 to vector<256x16xf32>
    %59 = vector.extract_strided_slice %56 {offsets = [0, 0, 0], sizes = [16, 16, 8], strides = [1, 1, 1]} : vector<22x16x8xbf16> to vector<16x16x8xbf16>
    %60 = vector.shape_cast %59 : vector<16x16x8xbf16> to vector<256x8xbf16>
    %61 = vector.extract_strided_slice %57 {offsets = [0, 0, 0], sizes = [1, 8, 16], strides = [1, 1, 1]} : vector<7x8x16xbf16> to vector<1x8x16xbf16>
    %62 = vector.shape_cast %61 : vector<1x8x16xbf16> to vector<8x16xbf16>
    %cst_26 = arith.constant dense<0.000000e+00> : vector<256x16xf32>
    %63 = tpu.matmul %60, %62, %cst_26 {dimension_numbers = #tpu.dot_dimension_numbers<[1], [0], [0], [1], [0, 0, 1, 1], [], []>} : vector<256x8xbf16>, vector<8x16xbf16>, vector<256x16xf32> -> vector<256x16xf32>
    %64 = arith.addf %58, %63 : vector<256x16xf32>
    %65 = vector.extract_strided_slice %56 {offsets = [1, 0, 0], sizes = [16, 16, 8], strides = [1, 1, 1]} : vector<22x16x8xbf16> to vector<16x16x8xbf16>
    %66 = vector.shape_cast %65 : vector<16x16x8xbf16> to vector<256x8xbf16>
    %67 = vector.extract_strided_slice %57 {offsets = [1, 0, 0], sizes = [1, 8, 16], strides = [1, 1, 1]} : vector<7x8x16xbf16> to vector<1x8x16xbf16>
    %68 = vector.shape_cast %67 : vector<1x8x16xbf16> to vector<8x16xbf16>
    %cst_27 = arith.constant dense<0.000000e+00> : vector<256x16xf32>
    %69 = tpu.matmul %66, %68, %cst_27 {dimension_numbers = #tpu.dot_dimension_numbers<[1], [0], [0], [1], [0, 0, 1, 1], [], []>} : vector<256x8xbf16>, vector<8x16xbf16>, vector<256x16xf32> -> vector<256x16xf32>
    %70 = arith.addf %64, %69 : vector<256x16xf32>
    %71 = vector.extract_strided_slice %56 {offsets = [2, 0, 0], sizes = [16, 16, 8], strides = [1, 1, 1]} : vector<22x16x8xbf16> to vector<16x16x8xbf16>
    %72 = vector.shape_cast %71 : vector<16x16x8xbf16> to vector<256x8xbf16>
    %73 = vector.extract_strided_slice %57 {offsets = [2, 0, 0], sizes = [1, 8, 16], strides = [1, 1, 1]} : vector<7x8x16xbf16> to vector<1x8x16xbf16>
    %74 = vector.shape_cast %73 : vector<1x8x16xbf16> to vector<8x16xbf16>
    %cst_28 = arith.constant dense<0.000000e+00> : vector<256x16xf32>
    %75 = tpu.matmul %72, %74, %cst_28 {dimension_numbers = #tpu.dot_dimension_numbers<[1], [0], [0], [1], [0, 0, 1, 1], [], []>} : vector<256x8xbf16>, vector<8x16xbf16>, vector<256x16xf32> -> vector<256x16xf32>
    %76 = arith.addf %70, %75 : vector<256x16xf32>
    %77 = vector.extract_strided_slice %56 {offsets = [3, 0, 0], sizes = [16, 16, 8], strides = [1, 1, 1]} : vector<22x16x8xbf16> to vector<16x16x8xbf16>
    %78 = vector.shape_cast %77 : vector<16x16x8xbf16> to vector<256x8xbf16>
    %79 = vector.extract_strided_slice %57 {offsets = [3, 0, 0], sizes = [1, 8, 16], strides = [1, 1, 1]} : vector<7x8x16xbf16> to vector<1x8x16xbf16>
    %80 = vector.shape_cast %79 : vector<1x8x16xbf16> to vector<8x16xbf16>
    %cst_29 = arith.constant dense<0.000000e+00> : vector<256x16xf32>
    %81 = tpu.matmul %78, %80, %cst_29 {dimension_numbers = #tpu.dot_dimension_numbers<[1], [0], [0], [1], [0, 0, 1, 1], [], []>} : vector<256x8xbf16>, vector<8x16xbf16>, vector<256x16xf32> -> vector<256x16xf32>
    %82 = arith.addf %76, %81 : vector<256x16xf32>
    %83 = vector.extract_strided_slice %56 {offsets = [4, 0, 0], sizes = [16, 16, 8], strides = [1, 1, 1]} : vector<22x16x8xbf16> to vector<16x16x8xbf16>
    %84 = vector.shape_cast %83 : vector<16x16x8xbf16> to vector<256x8xbf16>
    %85 = vector.extract_strided_slice %57 {offsets = [4, 0, 0], sizes = [1, 8, 16], strides = [1, 1, 1]} : vector<7x8x16xbf16> to vector<1x8x16xbf16>
    %86 = vector.shape_cast %85 : vector<1x8x16xbf16> to vector<8x16xbf16>
    %cst_30 = arith.constant dense<0.000000e+00> : vector<256x16xf32>
    %87 = tpu.matmul %84, %86, %cst_30 {dimension_numbers = #tpu.dot_dimension_numbers<[1], [0], [0], [1], [0, 0, 1, 1], [], []>} : vector<256x8xbf16>, vector<8x16xbf16>, vector<256x16xf32> -> vector<256x16xf32>
    %88 = arith.addf %82, %87 : vector<256x16xf32>
    %89 = vector.extract_strided_slice %56 {offsets = [5, 0, 0], sizes = [16, 16, 8], strides = [1, 1, 1]} : vector<22x16x8xbf16> to vector<16x16x8xbf16>
    %90 = vector.shape_cast %89 : vector<16x16x8xbf16> to vector<256x8xbf16>
    %91 = vector.extract_strided_slice %57 {offsets = [5, 0, 0], sizes = [1, 8, 16], strides = [1, 1, 1]} : vector<7x8x16xbf16> to vector<1x8x16xbf16>
    %92 = vector.shape_cast %91 : vector<1x8x16xbf16> to vector<8x16xbf16>
    %cst_31 = arith.constant dense<0.000000e+00> : vector<256x16xf32>
    %93 = tpu.matmul %90, %92, %cst_31 {dimension_numbers = #tpu.dot_dimension_numbers<[1], [0], [0], [1], [0, 0, 1, 1], [], []>} : vector<256x8xbf16>, vector<8x16xbf16>, vector<256x16xf32> -> vector<256x16xf32>
    %94 = arith.addf %88, %93 : vector<256x16xf32>
    %95 = vector.extract_strided_slice %56 {offsets = [6, 0, 0], sizes = [16, 16, 8], strides = [1, 1, 1]} : vector<22x16x8xbf16> to vector<16x16x8xbf16>
    %96 = vector.shape_cast %95 : vector<16x16x8xbf16> to vector<256x8xbf16>
    %97 = vector.extract_strided_slice %57 {offsets = [6, 0, 0], sizes = [1, 8, 16], strides = [1, 1, 1]} : vector<7x8x16xbf16> to vector<1x8x16xbf16>
    %98 = vector.shape_cast %97 : vector<1x8x16xbf16> to vector<8x16xbf16>
    %cst_32 = arith.constant dense<0.000000e+00> : vector<256x16xf32>
    %99 = tpu.matmul %96, %98, %cst_32 {dimension_numbers = #tpu.dot_dimension_numbers<[1], [0], [0], [1], [0, 0, 1, 1], [], []>} : vector<256x8xbf16>, vector<8x16xbf16>, vector<256x16xf32> -> vector<256x16xf32>
    %100 = arith.addf %94, %99 : vector<256x16xf32>
    %c0_33 = arith.constant 0 : index
    %c0_34 = arith.constant 0 : index
    %101 = vector.load %arg5[%c0_33, %c0_34] : memref<1x16xf32, #tpu.memory_space<vmem>>, vector<1x16xf32>
    %102 = vector.broadcast %101 : vector<1x16xf32> to vector<256x16xf32>
    %103 = arith.addf %100, %102 : vector<256x16xf32>
    %cst_35 = arith.constant 0.000000e+00 : f32
    %104 = vector.broadcast %cst_35 : f32 to vector<256x16xf32>
    %105 = arith.maximumf %103, %104 : vector<256x16xf32>
    %106 = vector.shape_cast %105 : vector<256x16xf32> to vector<16x16x16xf32>
    %107 = arith.truncf %106 : vector<16x16x16xf32> to vector<16x16x16xbf16>
    %cst_36 = arith.constant 0.000000e+00 : bf16
    %108 = vector.broadcast %cst_36 : bf16 to vector<3x16x16xbf16>
    %109 = tpu.concatenate %108, %107, %108 in 0 : vector<3x16x16xbf16>, vector<16x16x16xbf16>, vector<3x16x16xbf16> -> vector<22x16x16xbf16>
    %c0_37 = arith.constant 0 : index
    %c0_38 = arith.constant 0 : index
    %c0_39 = arith.constant 0 : index
    %110 = vector.load %arg16[%c0_37, %c0_38, %c0_39] : memref<22x16x16xbf16, #tpu.memory_space<vmem>>, vector<22x16x16xbf16>
    tpu.vector_store %arg16[%c0_37, %c0_38, %c0_39], %109 {strides = array<i32>} : memref<22x16x16xbf16, #tpu.memory_space<vmem>>, vector<22x16x16xbf16>,
    %c0_40 = arith.constant 0 : index
    %c0_41 = arith.constant 0 : index
    %c0_42 = arith.constant 0 : index
    %111 = vector.load %arg16[%c0_40, %c0_41, %c0_42] : memref<22x16x16xbf16, #tpu.memory_space<vmem>>, vector<22x16x16xbf16>
    %c0_43 = arith.constant 0 : index
    %c0_44 = arith.constant 0 : index
    %c0_45 = arith.constant 0 : index
    %112 = vector.load %arg6[%c0_43, %c0_44, %c0_45] : memref<7x16x24xbf16, #tpu.memory_space<vmem>>, vector<7x16x24xbf16>
    %cst_46 = arith.constant 0.000000e+00 : f32
    %113 = vector.broadcast %cst_46 : f32 to vector<256x24xf32>
    %114 = vector.extract_strided_slice %111 {offsets = [0, 0, 0], sizes = [16, 16, 16], strides = [1, 1, 1]} : vector<22x16x16xbf16> to vector<16x16x16xbf16>
    %115 = vector.shape_cast %114 : vector<16x16x16xbf16> to vector<256x16xbf16>
    %116 = vector.extract_strided_slice %112 {offsets = [0, 0, 0], sizes = [1, 16, 24], strides = [1, 1, 1]} : vector<7x16x24xbf16> to vector<1x16x24xbf16>
    %117 = vector.shape_cast %116 : vector<1x16x24xbf16> to vector<16x24xbf16>
    %cst_47 = arith.constant dense<0.000000e+00> : vector<256x24xf32>
    %118 = tpu.matmul %115, %117, %cst_47 {dimension_numbers = #tpu.dot_dimension_numbers<[1], [0], [0], [1], [0, 0, 1, 1], [], []>} : vector<256x16xbf16>, vector<16x24xbf16>, vector<256x24xf32> -> vector<256x24xf32>
    %119 = arith.addf %113, %118 : vector<256x24xf32>
    %120 = vector.extract_strided_slice %111 {offsets = [1, 0, 0], sizes = [16, 16, 16], strides = [1, 1, 1]} : vector<22x16x16xbf16> to vector<16x16x16xbf16>
    %121 = vector.shape_cast %120 : vector<16x16x16xbf16> to vector<256x16xbf16>
    %122 = vector.extract_strided_slice %112 {offsets = [1, 0, 0], sizes = [1, 16, 24], strides = [1, 1, 1]} : vector<7x16x24xbf16> to vector<1x16x24xbf16>
    %123 = vector.shape_cast %122 : vector<1x16x24xbf16> to vector<16x24xbf16>
    %cst_48 = arith.constant dense<0.000000e+00> : vector<256x24xf32>
    %124 = tpu.matmul %121, %123, %cst_48 {dimension_numbers = #tpu.dot_dimension_numbers<[1], [0], [0], [1], [0, 0, 1, 1], [], []>} : vector<256x16xbf16>, vector<16x24xbf16>, vector<256x24xf32> -> vector<256x24xf32>
    %125 = arith.addf %119, %124 : vector<256x24xf32>
    %126 = vector.extract_strided_slice %111 {offsets = [2, 0, 0], sizes = [16, 16, 16], strides = [1, 1, 1]} : vector<22x16x16xbf16> to vector<16x16x16xbf16>
    %127 = vector.shape_cast %126 : vector<16x16x16xbf16> to vector<256x16xbf16>
    %128 = vector.extract_strided_slice %112 {offsets = [2, 0, 0], sizes = [1, 16, 24], strides = [1, 1, 1]} : vector<7x16x24xbf16> to vector<1x16x24xbf16>
    %129 = vector.shape_cast %128 : vector<1x16x24xbf16> to vector<16x24xbf16>
    %cst_49 = arith.constant dense<0.000000e+00> : vector<256x24xf32>
    %130 = tpu.matmul %127, %129, %cst_49 {dimension_numbers = #tpu.dot_dimension_numbers<[1], [0], [0], [1], [0, 0, 1, 1], [], []>} : vector<256x16xbf16>, vector<16x24xbf16>, vector<256x24xf32> -> vector<256x24xf32>
    %131 = arith.addf %125, %130 : vector<256x24xf32>
    %132 = vector.extract_strided_slice %111 {offsets = [3, 0, 0], sizes = [16, 16, 16], strides = [1, 1, 1]} : vector<22x16x16xbf16> to vector<16x16x16xbf16>
    %133 = vector.shape_cast %132 : vector<16x16x16xbf16> to vector<256x16xbf16>
    %134 = vector.extract_strided_slice %112 {offsets = [3, 0, 0], sizes = [1, 16, 24], strides = [1, 1, 1]} : vector<7x16x24xbf16> to vector<1x16x24xbf16>
    %135 = vector.shape_cast %134 : vector<1x16x24xbf16> to vector<16x24xbf16>
    %cst_50 = arith.constant dense<0.000000e+00> : vector<256x24xf32>
    %136 = tpu.matmul %133, %135, %cst_50 {dimension_numbers = #tpu.dot_dimension_numbers<[1], [0], [0], [1], [0, 0, 1, 1], [], []>} : vector<256x16xbf16>, vector<16x24xbf16>, vector<256x24xf32> -> vector<256x24xf32>
    %137 = arith.addf %131, %136 : vector<256x24xf32>
    %138 = vector.extract_strided_slice %111 {offsets = [4, 0, 0], sizes = [16, 16, 16], strides = [1, 1, 1]} : vector<22x16x16xbf16> to vector<16x16x16xbf16>
    %139 = vector.shape_cast %138 : vector<16x16x16xbf16> to vector<256x16xbf16>
    %140 = vector.extract_strided_slice %112 {offsets = [4, 0, 0], sizes = [1, 16, 24], strides = [1, 1, 1]} : vector<7x16x24xbf16> to vector<1x16x24xbf16>
    %141 = vector.shape_cast %140 : vector<1x16x24xbf16> to vector<16x24xbf16>
    %cst_51 = arith.constant dense<0.000000e+00> : vector<256x24xf32>
    %142 = tpu.matmul %139, %141, %cst_51 {dimension_numbers = #tpu.dot_dimension_numbers<[1], [0], [0], [1], [0, 0, 1, 1], [], []>} : vector<256x16xbf16>, vector<16x24xbf16>, vector<256x24xf32> -> vector<256x24xf32>
    %143 = arith.addf %137, %142 : vector<256x24xf32>
    %144 = vector.extract_strided_slice %111 {offsets = [5, 0, 0], sizes = [16, 16, 16], strides = [1, 1, 1]} : vector<22x16x16xbf16> to vector<16x16x16xbf16>
    %145 = vector.shape_cast %144 : vector<16x16x16xbf16> to vector<256x16xbf16>
    %146 = vector.extract_strided_slice %112 {offsets = [5, 0, 0], sizes = [1, 16, 24], strides = [1, 1, 1]} : vector<7x16x24xbf16> to vector<1x16x24xbf16>
    %147 = vector.shape_cast %146 : vector<1x16x24xbf16> to vector<16x24xbf16>
    %cst_52 = arith.constant dense<0.000000e+00> : vector<256x24xf32>
    %148 = tpu.matmul %145, %147, %cst_52 {dimension_numbers = #tpu.dot_dimension_numbers<[1], [0], [0], [1], [0, 0, 1, 1], [], []>} : vector<256x16xbf16>, vector<16x24xbf16>, vector<256x24xf32> -> vector<256x24xf32>
    %149 = arith.addf %143, %148 : vector<256x24xf32>
    %150 = vector.extract_strided_slice %111 {offsets = [6, 0, 0], sizes = [16, 16, 16], strides = [1, 1, 1]} : vector<22x16x16xbf16> to vector<16x16x16xbf16>
    %151 = vector.shape_cast %150 : vector<16x16x16xbf16> to vector<256x16xbf16>
    %152 = vector.extract_strided_slice %112 {offsets = [6, 0, 0], sizes = [1, 16, 24], strides = [1, 1, 1]} : vector<7x16x24xbf16> to vector<1x16x24xbf16>
    %153 = vector.shape_cast %152 : vector<1x16x24xbf16> to vector<16x24xbf16>
    %cst_53 = arith.constant dense<0.000000e+00> : vector<256x24xf32>
    %154 = tpu.matmul %151, %153, %cst_53 {dimension_numbers = #tpu.dot_dimension_numbers<[1], [0], [0], [1], [0, 0, 1, 1], [], []>} : vector<256x16xbf16>, vector<16x24xbf16>, vector<256x24xf32> -> vector<256x24xf32>
    %155 = arith.addf %149, %154 : vector<256x24xf32>
    %c0_54 = arith.constant 0 : index
    %c0_55 = arith.constant 0 : index
    %156 = vector.load %arg7[%c0_54, %c0_55] : memref<1x24xf32, #tpu.memory_space<vmem>>, vector<1x24xf32>
    %157 = vector.broadcast %156 : vector<1x24xf32> to vector<256x24xf32>
    %158 = arith.addf %155, %157 : vector<256x24xf32>
    %cst_56 = arith.constant 0.000000e+00 : f32
    %159 = vector.broadcast %cst_56 : f32 to vector<256x24xf32>
    %160 = arith.maximumf %158, %159 : vector<256x24xf32>
    %161 = vector.shape_cast %160 : vector<256x24xf32> to vector<16x16x24xf32>
    %162 = arith.truncf %161 : vector<16x16x24xf32> to vector<16x16x24xbf16>
    %cst_57 = arith.constant 0.000000e+00 : bf16
    %163 = vector.broadcast %cst_57 : bf16 to vector<3x16x24xbf16>
    %164 = tpu.concatenate %163, %162, %163 in 0 : vector<3x16x24xbf16>, vector<16x16x24xbf16>, vector<3x16x24xbf16> -> vector<22x16x24xbf16>
    %c0_58 = arith.constant 0 : index
    %c0_59 = arith.constant 0 : index
    %c0_60 = arith.constant 0 : index
    %165 = vector.load %arg17[%c0_58, %c0_59, %c0_60] : memref<22x16x24xbf16, #tpu.memory_space<vmem>>, vector<22x16x24xbf16>
    tpu.vector_store %arg17[%c0_58, %c0_59, %c0_60], %164 {strides = array<i32>} : memref<22x16x24xbf16, #tpu.memory_space<vmem>>, vector<22x16x24xbf16>,
    %c0_61 = arith.constant 0 : index
    %c0_62 = arith.constant 0 : index
    %c0_63 = arith.constant 0 : index
    %166 = vector.load %arg17[%c0_61, %c0_62, %c0_63] : memref<22x16x24xbf16, #tpu.memory_space<vmem>>, vector<22x16x24xbf16>
    %c0_64 = arith.constant 0 : index
    %c0_65 = arith.constant 0 : index
    %c0_66 = arith.constant 0 : index
    %167 = vector.load %arg8[%c0_64, %c0_65, %c0_66] : memref<7x24x32xbf16, #tpu.memory_space<vmem>>, vector<7x24x32xbf16>
    %cst_67 = arith.constant 0.000000e+00 : f32
    %168 = vector.broadcast %cst_67 : f32 to vector<256x32xf32>
    %169 = vector.extract_strided_slice %166 {offsets = [0, 0, 0], sizes = [16, 16, 24], strides = [1, 1, 1]} : vector<22x16x24xbf16> to vector<16x16x24xbf16>
    %170 = vector.shape_cast %169 : vector<16x16x24xbf16> to vector<256x24xbf16>
    %171 = vector.extract_strided_slice %167 {offsets = [0, 0, 0], sizes = [1, 24, 32], strides = [1, 1, 1]} : vector<7x24x32xbf16> to vector<1x24x32xbf16>
    %172 = vector.shape_cast %171 : vector<1x24x32xbf16> to vector<24x32xbf16>
    %cst_68 = arith.constant dense<0.000000e+00> : vector<256x32xf32>
    %173 = tpu.matmul %170, %172, %cst_68 {dimension_numbers = #tpu.dot_dimension_numbers<[1], [0], [0], [1], [0, 0, 1, 1], [], []>} : vector<256x24xbf16>, vector<24x32xbf16>, vector<256x32xf32> -> vector<256x32xf32>
    %174 = arith.addf %168, %173 : vector<256x32xf32>
    %175 = vector.extract_strided_slice %166 {offsets = [1, 0, 0], sizes = [16, 16, 24], strides = [1, 1, 1]} : vector<22x16x24xbf16> to vector<16x16x24xbf16>
    %176 = vector.shape_cast %175 : vector<16x16x24xbf16> to vector<256x24xbf16>
    %177 = vector.extract_strided_slice %167 {offsets = [1, 0, 0], sizes = [1, 24, 32], strides = [1, 1, 1]} : vector<7x24x32xbf16> to vector<1x24x32xbf16>
    %178 = vector.shape_cast %177 : vector<1x24x32xbf16> to vector<24x32xbf16>
    %cst_69 = arith.constant dense<0.000000e+00> : vector<256x32xf32>
    %179 = tpu.matmul %176, %178, %cst_69 {dimension_numbers = #tpu.dot_dimension_numbers<[1], [0], [0], [1], [0, 0, 1, 1], [], []>} : vector<256x24xbf16>, vector<24x32xbf16>, vector<256x32xf32> -> vector<256x32xf32>
    %180 = arith.addf %174, %179 : vector<256x32xf32>
    %181 = vector.extract_strided_slice %166 {offsets = [2, 0, 0], sizes = [16, 16, 24], strides = [1, 1, 1]} : vector<22x16x24xbf16> to vector<16x16x24xbf16>
    %182 = vector.shape_cast %181 : vector<16x16x24xbf16> to vector<256x24xbf16>
    %183 = vector.extract_strided_slice %167 {offsets = [2, 0, 0], sizes = [1, 24, 32], strides = [1, 1, 1]} : vector<7x24x32xbf16> to vector<1x24x32xbf16>
    %184 = vector.shape_cast %183 : vector<1x24x32xbf16> to vector<24x32xbf16>
    %cst_70 = arith.constant dense<0.000000e+00> : vector<256x32xf32>
    %185 = tpu.matmul %182, %184, %cst_70 {dimension_numbers = #tpu.dot_dimension_numbers<[1], [0], [0], [1], [0, 0, 1, 1], [], []>} : vector<256x24xbf16>, vector<24x32xbf16>, vector<256x32xf32> -> vector<256x32xf32>
    %186 = arith.addf %180, %185 : vector<256x32xf32>
    %187 = vector.extract_strided_slice %166 {offsets = [3, 0, 0], sizes = [16, 16, 24], strides = [1, 1, 1]} : vector<22x16x24xbf16> to vector<16x16x24xbf16>
    %188 = vector.shape_cast %187 : vector<16x16x24xbf16> to vector<256x24xbf16>
    %189 = vector.extract_strided_slice %167 {offsets = [3, 0, 0], sizes = [1, 24, 32], strides = [1, 1, 1]} : vector<7x24x32xbf16> to vector<1x24x32xbf16>
    %190 = vector.shape_cast %189 : vector<1x24x32xbf16> to vector<24x32xbf16>
    %cst_71 = arith.constant dense<0.000000e+00> : vector<256x32xf32>
    %191 = tpu.matmul %188, %190, %cst_71 {dimension_numbers = #tpu.dot_dimension_numbers<[1], [0], [0], [1], [0, 0, 1, 1], [], []>} : vector<256x24xbf16>, vector<24x32xbf16>, vector<256x32xf32> -> vector<256x32xf32>
    %192 = arith.addf %186, %191 : vector<256x32xf32>
    %193 = vector.extract_strided_slice %166 {offsets = [4, 0, 0], sizes = [16, 16, 24], strides = [1, 1, 1]} : vector<22x16x24xbf16> to vector<16x16x24xbf16>
    %194 = vector.shape_cast %193 : vector<16x16x24xbf16> to vector<256x24xbf16>
    %195 = vector.extract_strided_slice %167 {offsets = [4, 0, 0], sizes = [1, 24, 32], strides = [1, 1, 1]} : vector<7x24x32xbf16> to vector<1x24x32xbf16>
    %196 = vector.shape_cast %195 : vector<1x24x32xbf16> to vector<24x32xbf16>
    %cst_72 = arith.constant dense<0.000000e+00> : vector<256x32xf32>
    %197 = tpu.matmul %194, %196, %cst_72 {dimension_numbers = #tpu.dot_dimension_numbers<[1], [0], [0], [1], [0, 0, 1, 1], [], []>} : vector<256x24xbf16>, vector<24x32xbf16>, vector<256x32xf32> -> vector<256x32xf32>
    %198 = arith.addf %192, %197 : vector<256x32xf32>
    %199 = vector.extract_strided_slice %166 {offsets = [5, 0, 0], sizes = [16, 16, 24], strides = [1, 1, 1]} : vector<22x16x24xbf16> to vector<16x16x24xbf16>
    %200 = vector.shape_cast %199 : vector<16x16x24xbf16> to vector<256x24xbf16>
    %201 = vector.extract_strided_slice %167 {offsets = [5, 0, 0], sizes = [1, 24, 32], strides = [1, 1, 1]} : vector<7x24x32xbf16> to vector<1x24x32xbf16>
    %202 = vector.shape_cast %201 : vector<1x24x32xbf16> to vector<24x32xbf16>
    %cst_73 = arith.constant dense<0.000000e+00> : vector<256x32xf32>
    %203 = tpu.matmul %200, %202, %cst_73 {dimension_numbers = #tpu.dot_dimension_numbers<[1], [0], [0], [1], [0, 0, 1, 1], [], []>} : vector<256x24xbf16>, vector<24x32xbf16>, vector<256x32xf32> -> vector<256x32xf32>
    %204 = arith.addf %198, %203 : vector<256x32xf32>
    %205 = vector.extract_strided_slice %166 {offsets = [6, 0, 0], sizes = [16, 16, 24], strides = [1, 1, 1]} : vector<22x16x24xbf16> to vector<16x16x24xbf16>
    %206 = vector.shape_cast %205 : vector<16x16x24xbf16> to vector<256x24xbf16>
    %207 = vector.extract_strided_slice %167 {offsets = [6, 0, 0], sizes = [1, 24, 32], strides = [1, 1, 1]} : vector<7x24x32xbf16> to vector<1x24x32xbf16>
    %208 = vector.shape_cast %207 : vector<1x24x32xbf16> to vector<24x32xbf16>
    %cst_74 = arith.constant dense<0.000000e+00> : vector<256x32xf32>
    %209 = tpu.matmul %206, %208, %cst_74 {dimension_numbers = #tpu.dot_dimension_numbers<[1], [0], [0], [1], [0, 0, 1, 1], [], []>} : vector<256x24xbf16>, vector<24x32xbf16>, vector<256x32xf32> -> vector<256x32xf32>
    %210 = arith.addf %204, %209 : vector<256x32xf32>
    %c0_75 = arith.constant 0 : index
    %c0_76 = arith.constant 0 : index
    %211 = vector.load %arg9[%c0_75, %c0_76] : memref<1x32xf32, #tpu.memory_space<vmem>>, vector<1x32xf32>
    %212 = vector.broadcast %211 : vector<1x32xf32> to vector<256x32xf32>
    %213 = arith.addf %210, %212 : vector<256x32xf32>
    %cst_77 = arith.constant 0.000000e+00 : f32
    %214 = vector.broadcast %cst_77 : f32 to vector<256x32xf32>
    %215 = arith.maximumf %213, %214 : vector<256x32xf32>
    %216 = vector.shape_cast %215 : vector<256x32xf32> to vector<16x16x32xf32>
    %217 = arith.truncf %216 : vector<16x16x32xf32> to vector<16x16x32xbf16>
    %cst_78 = arith.constant 0.000000e+00 : bf16
    %218 = vector.broadcast %cst_78 : bf16 to vector<3x16x32xbf16>
    %219 = tpu.concatenate %218, %217, %218 in 0 : vector<3x16x32xbf16>, vector<16x16x32xbf16>, vector<3x16x32xbf16> -> vector<22x16x32xbf16>
    %c0_79 = arith.constant 0 : index
    %c0_80 = arith.constant 0 : index
    %c0_81 = arith.constant 0 : index
    %220 = vector.load %arg18[%c0_79, %c0_80, %c0_81] : memref<22x16x32xbf16, #tpu.memory_space<vmem>>, vector<22x16x32xbf16>
    tpu.vector_store %arg18[%c0_79, %c0_80, %c0_81], %219 {strides = array<i32>} : memref<22x16x32xbf16, #tpu.memory_space<vmem>>, vector<22x16x32xbf16>,
    %c0_82 = arith.constant 0 : index
    %c0_83 = arith.constant 0 : index
    %c0_84 = arith.constant 0 : index
    %221 = vector.load %arg18[%c0_82, %c0_83, %c0_84] : memref<22x16x32xbf16, #tpu.memory_space<vmem>>, vector<22x16x32xbf16>
    %c0_85 = arith.constant 0 : index
    %c0_86 = arith.constant 0 : index
    %c0_87 = arith.constant 0 : index
    %222 = vector.load %arg10[%c0_85, %c0_86, %c0_87] : memref<7x32x40xbf16, #tpu.memory_space<vmem>>, vector<7x32x40xbf16>
    %cst_88 = arith.constant 0.000000e+00 : f32
    %223 = vector.broadcast %cst_88 : f32 to vector<256x40xf32>
    %224 = vector.extract_strided_slice %221 {offsets = [0, 0, 0], sizes = [16, 16, 32], strides = [1, 1, 1]} : vector<22x16x32xbf16> to vector<16x16x32xbf16>
    %225 = vector.shape_cast %224 : vector<16x16x32xbf16> to vector<256x32xbf16>
    %226 = vector.extract_strided_slice %222 {offsets = [0, 0, 0], sizes = [1, 32, 40], strides = [1, 1, 1]} : vector<7x32x40xbf16> to vector<1x32x40xbf16>
    %227 = vector.shape_cast %226 : vector<1x32x40xbf16> to vector<32x40xbf16>
    %cst_89 = arith.constant dense<0.000000e+00> : vector<256x40xf32>
    %228 = tpu.matmul %225, %227, %cst_89 {dimension_numbers = #tpu.dot_dimension_numbers<[1], [0], [0], [1], [0, 0, 1, 1], [], []>} : vector<256x32xbf16>, vector<32x40xbf16>, vector<256x40xf32> -> vector<256x40xf32>
    %229 = arith.addf %223, %228 : vector<256x40xf32>
    %230 = vector.extract_strided_slice %221 {offsets = [1, 0, 0], sizes = [16, 16, 32], strides = [1, 1, 1]} : vector<22x16x32xbf16> to vector<16x16x32xbf16>
    %231 = vector.shape_cast %230 : vector<16x16x32xbf16> to vector<256x32xbf16>
    %232 = vector.extract_strided_slice %222 {offsets = [1, 0, 0], sizes = [1, 32, 40], strides = [1, 1, 1]} : vector<7x32x40xbf16> to vector<1x32x40xbf16>
    %233 = vector.shape_cast %232 : vector<1x32x40xbf16> to vector<32x40xbf16>
    %cst_90 = arith.constant dense<0.000000e+00> : vector<256x40xf32>
    %234 = tpu.matmul %231, %233, %cst_90 {dimension_numbers = #tpu.dot_dimension_numbers<[1], [0], [0], [1], [0, 0, 1, 1], [], []>} : vector<256x32xbf16>, vector<32x40xbf16>, vector<256x40xf32> -> vector<256x40xf32>
    %235 = arith.addf %229, %234 : vector<256x40xf32>
    %236 = vector.extract_strided_slice %221 {offsets = [2, 0, 0], sizes = [16, 16, 32], strides = [1, 1, 1]} : vector<22x16x32xbf16> to vector<16x16x32xbf16>
    %237 = vector.shape_cast %236 : vector<16x16x32xbf16> to vector<256x32xbf16>
    %238 = vector.extract_strided_slice %222 {offsets = [2, 0, 0], sizes = [1, 32, 40], strides = [1, 1, 1]} : vector<7x32x40xbf16> to vector<1x32x40xbf16>
    %239 = vector.shape_cast %238 : vector<1x32x40xbf16> to vector<32x40xbf16>
    %cst_91 = arith.constant dense<0.000000e+00> : vector<256x40xf32>
    %240 = tpu.matmul %237, %239, %cst_91 {dimension_numbers = #tpu.dot_dimension_numbers<[1], [0], [0], [1], [0, 0, 1, 1], [], []>} : vector<256x32xbf16>, vector<32x40xbf16>, vector<256x40xf32> -> vector<256x40xf32>
    %241 = arith.addf %235, %240 : vector<256x40xf32>
    %242 = vector.extract_strided_slice %221 {offsets = [3, 0, 0], sizes = [16, 16, 32], strides = [1, 1, 1]} : vector<22x16x32xbf16> to vector<16x16x32xbf16>
    %243 = vector.shape_cast %242 : vector<16x16x32xbf16> to vector<256x32xbf16>
    %244 = vector.extract_strided_slice %222 {offsets = [3, 0, 0], sizes = [1, 32, 40], strides = [1, 1, 1]} : vector<7x32x40xbf16> to vector<1x32x40xbf16>
    %245 = vector.shape_cast %244 : vector<1x32x40xbf16> to vector<32x40xbf16>
    %cst_92 = arith.constant dense<0.000000e+00> : vector<256x40xf32>
    %246 = tpu.matmul %243, %245, %cst_92 {dimension_numbers = #tpu.dot_dimension_numbers<[1], [0], [0], [1], [0, 0, 1, 1], [], []>} : vector<256x32xbf16>, vector<32x40xbf16>, vector<256x40xf32> -> vector<256x40xf32>
    %247 = arith.addf %241, %246 : vector<256x40xf32>
    %248 = vector.extract_strided_slice %221 {offsets = [4, 0, 0], sizes = [16, 16, 32], strides = [1, 1, 1]} : vector<22x16x32xbf16> to vector<16x16x32xbf16>
    %249 = vector.shape_cast %248 : vector<16x16x32xbf16> to vector<256x32xbf16>
    %250 = vector.extract_strided_slice %222 {offsets = [4, 0, 0], sizes = [1, 32, 40], strides = [1, 1, 1]} : vector<7x32x40xbf16> to vector<1x32x40xbf16>
    %251 = vector.shape_cast %250 : vector<1x32x40xbf16> to vector<32x40xbf16>
    %cst_93 = arith.constant dense<0.000000e+00> : vector<256x40xf32>
    %252 = tpu.matmul %249, %251, %cst_93 {dimension_numbers = #tpu.dot_dimension_numbers<[1], [0], [0], [1], [0, 0, 1, 1], [], []>} : vector<256x32xbf16>, vector<32x40xbf16>, vector<256x40xf32> -> vector<256x40xf32>
    %253 = arith.addf %247, %252 : vector<256x40xf32>
    %254 = vector.extract_strided_slice %221 {offsets = [5, 0, 0], sizes = [16, 16, 32], strides = [1, 1, 1]} : vector<22x16x32xbf16> to vector<16x16x32xbf16>
    %255 = vector.shape_cast %254 : vector<16x16x32xbf16> to vector<256x32xbf16>
    %256 = vector.extract_strided_slice %222 {offsets = [5, 0, 0], sizes = [1, 32, 40], strides = [1, 1, 1]} : vector<7x32x40xbf16> to vector<1x32x40xbf16>
    %257 = vector.shape_cast %256 : vector<1x32x40xbf16> to vector<32x40xbf16>
    %cst_94 = arith.constant dense<0.000000e+00> : vector<256x40xf32>
    %258 = tpu.matmul %255, %257, %cst_94 {dimension_numbers = #tpu.dot_dimension_numbers<[1], [0], [0], [1], [0, 0, 1, 1], [], []>} : vector<256x32xbf16>, vector<32x40xbf16>, vector<256x40xf32> -> vector<256x40xf32>
    %259 = arith.addf %253, %258 : vector<256x40xf32>
    %260 = vector.extract_strided_slice %221 {offsets = [6, 0, 0], sizes = [16, 16, 32], strides = [1, 1, 1]} : vector<22x16x32xbf16> to vector<16x16x32xbf16>
    %261 = vector.shape_cast %260 : vector<16x16x32xbf16> to vector<256x32xbf16>
    %262 = vector.extract_strided_slice %222 {offsets = [6, 0, 0], sizes = [1, 32, 40], strides = [1, 1, 1]} : vector<7x32x40xbf16> to vector<1x32x40xbf16>
    %263 = vector.shape_cast %262 : vector<1x32x40xbf16> to vector<32x40xbf16>
    %cst_95 = arith.constant dense<0.000000e+00> : vector<256x40xf32>
    %264 = tpu.matmul %261, %263, %cst_95 {dimension_numbers = #tpu.dot_dimension_numbers<[1], [0], [0], [1], [0, 0, 1, 1], [], []>} : vector<256x32xbf16>, vector<32x40xbf16>, vector<256x40xf32> -> vector<256x40xf32>
    %265 = arith.addf %259, %264 : vector<256x40xf32>
    %c0_96 = arith.constant 0 : index
    %c0_97 = arith.constant 0 : index
    %266 = vector.load %arg11[%c0_96, %c0_97] : memref<1x40xf32, #tpu.memory_space<vmem>>, vector<1x40xf32>
    %267 = vector.broadcast %266 : vector<1x40xf32> to vector<256x40xf32>
    %268 = arith.addf %265, %267 : vector<256x40xf32>
    %c0_98 = arith.constant 0 : index
    %c0_99 = arith.constant 0 : index
    %c0_100 = arith.constant 0 : index
    %269 = vector.load %arg12[%c0_98, %c0_99, %c0_100] : memref<16x40x16xbf16, #tpu.memory_space<vmem>>, vector<16x40x16xbf16>
    %270 = arith.truncf %268 : vector<256x40xf32> to vector<256x40xbf16>
    %cst_101 = arith.constant 0.000000e+00 : f32
    %271 = vector.broadcast %cst_101 : f32 to vector<16x16xf32>
    %272 = vector.extract_strided_slice %270 {offsets = [0, 0], sizes = [16, 40], strides = [1, 1]} : vector<256x40xbf16> to vector<16x40xbf16>
    %273 = vector.extract_strided_slice %269 {offsets = [0, 0, 0], sizes = [1, 40, 16], strides = [1, 1, 1]} : vector<16x40x16xbf16> to vector<1x40x16xbf16>
    %274 = vector.shape_cast %273 : vector<1x40x16xbf16> to vector<40x16xbf16>
    %cst_102 = arith.constant dense<0.000000e+00> : vector<16x16xf32>
    %275 = tpu.matmul %272, %274, %cst_102 {dimension_numbers = #tpu.dot_dimension_numbers<[1], [0], [0], [1], [0, 0, 1, 1], [], []>} : vector<16x40xbf16>, vector<40x16xbf16>, vector<16x16xf32> -> vector<16x16xf32>
    %276 = arith.addf %271, %275 : vector<16x16xf32>
    %277 = vector.extract_strided_slice %270 {offsets = [16, 0], sizes = [16, 40], strides = [1, 1]} : vector<256x40xbf16> to vector<16x40xbf16>
    %278 = vector.extract_strided_slice %269 {offsets = [1, 0, 0], sizes = [1, 40, 16], strides = [1, 1, 1]} : vector<16x40x16xbf16> to vector<1x40x16xbf16>
    %279 = vector.shape_cast %278 : vector<1x40x16xbf16> to vector<40x16xbf16>
    %cst_103 = arith.constant dense<0.000000e+00> : vector<16x16xf32>
    %280 = tpu.matmul %277, %279, %cst_103 {dimension_numbers = #tpu.dot_dimension_numbers<[1], [0], [0], [1], [0, 0, 1, 1], [], []>} : vector<16x40xbf16>, vector<40x16xbf16>, vector<16x16xf32> -> vector<16x16xf32>
    %281 = arith.addf %276, %280 : vector<16x16xf32>
    %282 = vector.extract_strided_slice %270 {offsets = [32, 0], sizes = [16, 40], strides = [1, 1]} : vector<256x40xbf16> to vector<16x40xbf16>
    %283 = vector.extract_strided_slice %269 {offsets = [2, 0, 0], sizes = [1, 40, 16], strides = [1, 1, 1]} : vector<16x40x16xbf16> to vector<1x40x16xbf16>
    %284 = vector.shape_cast %283 : vector<1x40x16xbf16> to vector<40x16xbf16>
    %cst_104 = arith.constant dense<0.000000e+00> : vector<16x16xf32>
    %285 = tpu.matmul %282, %284, %cst_104 {dimension_numbers = #tpu.dot_dimension_numbers<[1], [0], [0], [1], [0, 0, 1, 1], [], []>} : vector<16x40xbf16>, vector<40x16xbf16>, vector<16x16xf32> -> vector<16x16xf32>
    %286 = arith.addf %281, %285 : vector<16x16xf32>
    %287 = vector.extract_strided_slice %270 {offsets = [48, 0], sizes = [16, 40], strides = [1, 1]} : vector<256x40xbf16> to vector<16x40xbf16>
    %288 = vector.extract_strided_slice %269 {offsets = [3, 0, 0], sizes = [1, 40, 16], strides = [1, 1, 1]} : vector<16x40x16xbf16> to vector<1x40x16xbf16>
    %289 = vector.shape_cast %288 : vector<1x40x16xbf16> to vector<40x16xbf16>
    %cst_105 = arith.constant dense<0.000000e+00> : vector<16x16xf32>
    %290 = tpu.matmul %287, %289, %cst_105 {dimension_numbers = #tpu.dot_dimension_numbers<[1], [0], [0], [1], [0, 0, 1, 1], [], []>} : vector<16x40xbf16>, vector<40x16xbf16>, vector<16x16xf32> -> vector<16x16xf32>
    %291 = arith.addf %286, %290 : vector<16x16xf32>
    %292 = vector.extract_strided_slice %270 {offsets = [64, 0], sizes = [16, 40], strides = [1, 1]} : vector<256x40xbf16> to vector<16x40xbf16>
    %293 = vector.extract_strided_slice %269 {offsets = [4, 0, 0], sizes = [1, 40, 16], strides = [1, 1, 1]} : vector<16x40x16xbf16> to vector<1x40x16xbf16>
    %294 = vector.shape_cast %293 : vector<1x40x16xbf16> to vector<40x16xbf16>
    %cst_106 = arith.constant dense<0.000000e+00> : vector<16x16xf32>
    %295 = tpu.matmul %292, %294, %cst_106 {dimension_numbers = #tpu.dot_dimension_numbers<[1], [0], [0], [1], [0, 0, 1, 1], [], []>} : vector<16x40xbf16>, vector<40x16xbf16>, vector<16x16xf32> -> vector<16x16xf32>
    %296 = arith.addf %291, %295 : vector<16x16xf32>
    %297 = vector.extract_strided_slice %270 {offsets = [80, 0], sizes = [16, 40], strides = [1, 1]} : vector<256x40xbf16> to vector<16x40xbf16>
    %298 = vector.extract_strided_slice %269 {offsets = [5, 0, 0], sizes = [1, 40, 16], strides = [1, 1, 1]} : vector<16x40x16xbf16> to vector<1x40x16xbf16>
    %299 = vector.shape_cast %298 : vector<1x40x16xbf16> to vector<40x16xbf16>
    %cst_107 = arith.constant dense<0.000000e+00> : vector<16x16xf32>
    %300 = tpu.matmul %297, %299, %cst_107 {dimension_numbers = #tpu.dot_dimension_numbers<[1], [0], [0], [1], [0, 0, 1, 1], [], []>} : vector<16x40xbf16>, vector<40x16xbf16>, vector<16x16xf32> -> vector<16x16xf32>
    %301 = arith.addf %296, %300 : vector<16x16xf32>
    %302 = vector.extract_strided_slice %270 {offsets = [96, 0], sizes = [16, 40], strides = [1, 1]} : vector<256x40xbf16> to vector<16x40xbf16>
    %303 = vector.extract_strided_slice %269 {offsets = [6, 0, 0], sizes = [1, 40, 16], strides = [1, 1, 1]} : vector<16x40x16xbf16> to vector<1x40x16xbf16>
    %304 = vector.shape_cast %303 : vector<1x40x16xbf16> to vector<40x16xbf16>
    %cst_108 = arith.constant dense<0.000000e+00> : vector<16x16xf32>
    %305 = tpu.matmul %302, %304, %cst_108 {dimension_numbers = #tpu.dot_dimension_numbers<[1], [0], [0], [1], [0, 0, 1, 1], [], []>} : vector<16x40xbf16>, vector<40x16xbf16>, vector<16x16xf32> -> vector<16x16xf32>
    %306 = arith.addf %301, %305 : vector<16x16xf32>
    %307 = vector.extract_strided_slice %270 {offsets = [112, 0], sizes = [16, 40], strides = [1, 1]} : vector<256x40xbf16> to vector<16x40xbf16>
    %308 = vector.extract_strided_slice %269 {offsets = [7, 0, 0], sizes = [1, 40, 16], strides = [1, 1, 1]} : vector<16x40x16xbf16> to vector<1x40x16xbf16>
    %309 = vector.shape_cast %308 : vector<1x40x16xbf16> to vector<40x16xbf16>
    %cst_109 = arith.constant dense<0.000000e+00> : vector<16x16xf32>
    %310 = tpu.matmul %307, %309, %cst_109 {dimension_numbers = #tpu.dot_dimension_numbers<[1], [0], [0], [1], [0, 0, 1, 1], [], []>} : vector<16x40xbf16>, vector<40x16xbf16>, vector<16x16xf32> -> vector<16x16xf32>
    %311 = arith.addf %306, %310 : vector<16x16xf32>
    %312 = vector.extract_strided_slice %270 {offsets = [128, 0], sizes = [16, 40], strides = [1, 1]} : vector<256x40xbf16> to vector<16x40xbf16>
    %313 = vector.extract_strided_slice %269 {offsets = [8, 0, 0], sizes = [1, 40, 16], strides = [1, 1, 1]} : vector<16x40x16xbf16> to vector<1x40x16xbf16>
    %314 = vector.shape_cast %313 : vector<1x40x16xbf16> to vector<40x16xbf16>
    %cst_110 = arith.constant dense<0.000000e+00> : vector<16x16xf32>
    %315 = tpu.matmul %312, %314, %cst_110 {dimension_numbers = #tpu.dot_dimension_numbers<[1], [0], [0], [1], [0, 0, 1, 1], [], []>} : vector<16x40xbf16>, vector<40x16xbf16>, vector<16x16xf32> -> vector<16x16xf32>
    %316 = arith.addf %311, %315 : vector<16x16xf32>
    %317 = vector.extract_strided_slice %270 {offsets = [144, 0], sizes = [16, 40], strides = [1, 1]} : vector<256x40xbf16> to vector<16x40xbf16>
    %318 = vector.extract_strided_slice %269 {offsets = [9, 0, 0], sizes = [1, 40, 16], strides = [1, 1, 1]} : vector<16x40x16xbf16> to vector<1x40x16xbf16>
    %319 = vector.shape_cast %318 : vector<1x40x16xbf16> to vector<40x16xbf16>
    %cst_111 = arith.constant dense<0.000000e+00> : vector<16x16xf32>
    %320 = tpu.matmul %317, %319, %cst_111 {dimension_numbers = #tpu.dot_dimension_numbers<[1], [0], [0], [1], [0, 0, 1, 1], [], []>} : vector<16x40xbf16>, vector<40x16xbf16>, vector<16x16xf32> -> vector<16x16xf32>
    %321 = arith.addf %316, %320 : vector<16x16xf32>
    %322 = vector.extract_strided_slice %270 {offsets = [160, 0], sizes = [16, 40], strides = [1, 1]} : vector<256x40xbf16> to vector<16x40xbf16>
    %323 = vector.extract_strided_slice %269 {offsets = [10, 0, 0], sizes = [1, 40, 16], strides = [1, 1, 1]} : vector<16x40x16xbf16> to vector<1x40x16xbf16>
    %324 = vector.shape_cast %323 : vector<1x40x16xbf16> to vector<40x16xbf16>
    %cst_112 = arith.constant dense<0.000000e+00> : vector<16x16xf32>
    %325 = tpu.matmul %322, %324, %cst_112 {dimension_numbers = #tpu.dot_dimension_numbers<[1], [0], [0], [1], [0, 0, 1, 1], [], []>} : vector<16x40xbf16>, vector<40x16xbf16>, vector<16x16xf32> -> vector<16x16xf32>
    %326 = arith.addf %321, %325 : vector<16x16xf32>
    %327 = vector.extract_strided_slice %270 {offsets = [176, 0], sizes = [16, 40], strides = [1, 1]} : vector<256x40xbf16> to vector<16x40xbf16>
    %328 = vector.extract_strided_slice %269 {offsets = [11, 0, 0], sizes = [1, 40, 16], strides = [1, 1, 1]} : vector<16x40x16xbf16> to vector<1x40x16xbf16>
    %329 = vector.shape_cast %328 : vector<1x40x16xbf16> to vector<40x16xbf16>
    %cst_113 = arith.constant dense<0.000000e+00> : vector<16x16xf32>
    %330 = tpu.matmul %327, %329, %cst_113 {dimension_numbers = #tpu.dot_dimension_numbers<[1], [0], [0], [1], [0, 0, 1, 1], [], []>} : vector<16x40xbf16>, vector<40x16xbf16>, vector<16x16xf32> -> vector<16x16xf32>
    %331 = arith.addf %326, %330 : vector<16x16xf32>
    %332 = vector.extract_strided_slice %270 {offsets = [192, 0], sizes = [16, 40], strides = [1, 1]} : vector<256x40xbf16> to vector<16x40xbf16>
    %333 = vector.extract_strided_slice %269 {offsets = [12, 0, 0], sizes = [1, 40, 16], strides = [1, 1, 1]} : vector<16x40x16xbf16> to vector<1x40x16xbf16>
    %334 = vector.shape_cast %333 : vector<1x40x16xbf16> to vector<40x16xbf16>
    %cst_114 = arith.constant dense<0.000000e+00> : vector<16x16xf32>
    %335 = tpu.matmul %332, %334, %cst_114 {dimension_numbers = #tpu.dot_dimension_numbers<[1], [0], [0], [1], [0, 0, 1, 1], [], []>} : vector<16x40xbf16>, vector<40x16xbf16>, vector<16x16xf32> -> vector<16x16xf32>
    %336 = arith.addf %331, %335 : vector<16x16xf32>
    %337 = vector.extract_strided_slice %270 {offsets = [208, 0], sizes = [16, 40], strides = [1, 1]} : vector<256x40xbf16> to vector<16x40xbf16>
    %338 = vector.extract_strided_slice %269 {offsets = [13, 0, 0], sizes = [1, 40, 16], strides = [1, 1, 1]} : vector<16x40x16xbf16> to vector<1x40x16xbf16>
    %339 = vector.shape_cast %338 : vector<1x40x16xbf16> to vector<40x16xbf16>
    %cst_115 = arith.constant dense<0.000000e+00> : vector<16x16xf32>
    %340 = tpu.matmul %337, %339, %cst_115 {dimension_numbers = #tpu.dot_dimension_numbers<[1], [0], [0], [1], [0, 0, 1, 1], [], []>} : vector<16x40xbf16>, vector<40x16xbf16>, vector<16x16xf32> -> vector<16x16xf32>
    %341 = arith.addf %336, %340 : vector<16x16xf32>
    %342 = vector.extract_strided_slice %270 {offsets = [224, 0], sizes = [16, 40], strides = [1, 1]} : vector<256x40xbf16> to vector<16x40xbf16>
    %343 = vector.extract_strided_slice %269 {offsets = [14, 0, 0], sizes = [1, 40, 16], strides = [1, 1, 1]} : vector<16x40x16xbf16> to vector<1x40x16xbf16>
    %344 = vector.shape_cast %343 : vector<1x40x16xbf16> to vector<40x16xbf16>
    %cst_116 = arith.constant dense<0.000000e+00> : vector<16x16xf32>
    %345 = tpu.matmul %342, %344, %cst_116 {dimension_numbers = #tpu.dot_dimension_numbers<[1], [0], [0], [1], [0, 0, 1, 1], [], []>} : vector<16x40xbf16>, vector<40x16xbf16>, vector<16x16xf32> -> vector<16x16xf32>
    %346 = arith.addf %341, %345 : vector<16x16xf32>
    %347 = vector.extract_strided_slice %270 {offsets = [240, 0], sizes = [16, 40], strides = [1, 1]} : vector<256x40xbf16> to vector<16x40xbf16>
    %348 = vector.extract_strided_slice %269 {offsets = [15, 0, 0], sizes = [1, 40, 16], strides = [1, 1, 1]} : vector<16x40x16xbf16> to vector<1x40x16xbf16>
    %349 = vector.shape_cast %348 : vector<1x40x16xbf16> to vector<40x16xbf16>
    %cst_117 = arith.constant dense<0.000000e+00> : vector<16x16xf32>
    %350 = tpu.matmul %347, %349, %cst_117 {dimension_numbers = #tpu.dot_dimension_numbers<[1], [0], [0], [1], [0, 0, 1, 1], [], []>} : vector<16x40xbf16>, vector<40x16xbf16>, vector<16x16xf32> -> vector<16x16xf32>
    %351 = arith.addf %346, %350 : vector<16x16xf32>
    %c0_118 = arith.constant 0 : index
    %c0_119 = arith.constant 0 : index
    %352 = vector.load %arg13[%c0_118, %c0_119] : memref<1x16xf32, #tpu.memory_space<vmem>>, vector<1x16xf32>
    %353 = vector.broadcast %352 : vector<1x16xf32> to vector<16x16xf32>
    %354 = arith.addf %351, %353 : vector<16x16xf32>
    %c0_120 = arith.constant 0 : index
    %c0_121 = arith.constant 0 : index
    %355 = vector.load %arg14[%c0_120, %c0_121] : memref<16x16xf32, #tpu.memory_space<vmem>>, vector<16x16xf32>
    tpu.vector_store %arg14[%c0_120, %c0_121], %354 {strides = array<i32>} : memref<16x16xf32, #tpu.memory_space<vmem>>, vector<16x16xf32>,
    return
  }
  func.func @transform_0(%arg0: i32) -> (i32, i32, i32) {
    %c0_i32 = arith.constant 0 : i32
    %c0_i32_0 = arith.constant 0 : i32
    %c0_i32_1 = arith.constant 0 : i32
    return %c0_i32, %arg0, %c0_i32_0 : i32, i32, i32
  }
  func.func @transform_1(%arg0: i32) -> (i32, i32, i32) {
    %c0_i32 = arith.constant 0 : i32
    %c0_i32_0 = arith.constant 0 : i32
    %c0_i32_1 = arith.constant 0 : i32
    %c0_i32_2 = arith.constant 0 : i32
    return %c0_i32, %c0_i32_0, %c0_i32_1 : i32, i32, i32
  }
  func.func @transform_2(%arg0: i32) -> (i32, i32) {
    %c0_i32 = arith.constant 0 : i32
    %c0_i32_0 = arith.constant 0 : i32
    %c0_i32_1 = arith.constant 0 : i32
    return %c0_i32, %c0_i32_0 : i32, i32
  }
  func.func @transform_3(%arg0: i32) -> (i32, i32, i32) {
    %c0_i32 = arith.constant 0 : i32
    %c0_i32_0 = arith.constant 0 : i32
    %c0_i32_1 = arith.constant 0 : i32
    %c0_i32_2 = arith.constant 0 : i32
    return %c0_i32, %c0_i32_0, %c0_i32_1 : i32, i32, i32
  }
  func.func @transform_4(%arg0: i32) -> (i32, i32) {
    %c0_i32 = arith.constant 0 : i32
    %c0_i32_0 = arith.constant 0 : i32
    %c0_i32_1 = arith.constant 0 : i32
    return %c0_i32, %c0_i32_0 : i32, i32
  }
  func.func @transform_5(%arg0: i32) -> (i32, i32, i32) {
    %c0_i32 = arith.constant 0 : i32
    %c0_i32_0 = arith.constant 0 : i32
    %c0_i32_1 = arith.constant 0 : i32
    %c0_i32_2 = arith.constant 0 : i32
    return %c0_i32, %c0_i32_0, %c0_i32_1 : i32, i32, i32
  }
  func.func @transform_6(%arg0: i32) -> (i32, i32) {
    %c0_i32 = arith.constant 0 : i32
    %c0_i32_0 = arith.constant 0 : i32
    %c0_i32_1 = arith.constant 0 : i32
    return %c0_i32, %c0_i32_0 : i32, i32
  }
  func.func @transform_7(%arg0: i32) -> (i32, i32, i32) {
    %c0_i32 = arith.constant 0 : i32
    %c0_i32_0 = arith.constant 0 : i32
    %c0_i32_1 = arith.constant 0 : i32
    %c0_i32_2 = arith.constant 0 : i32
    return %c0_i32, %c0_i32_0, %c0_i32_1 : i32, i32, i32
  }
  func.func @transform_8(%arg0: i32) -> (i32, i32) {
    %c0_i32 = arith.constant 0 : i32
    %c0_i32_0 = arith.constant 0 : i32
    %c0_i32_1 = arith.constant 0 : i32
    return %c0_i32, %c0_i32_0 : i32, i32
  }
  func.func @transform_9(%arg0: i32) -> (i32, i32, i32) {
    %c0_i32 = arith.constant 0 : i32
    %c0_i32_0 = arith.constant 0 : i32
    %c0_i32_1 = arith.constant 0 : i32
    %c0_i32_2 = arith.constant 0 : i32
    return %c0_i32, %c0_i32_0, %c0_i32_1 : i32, i32, i32
  }
  func.func @transform_10(%arg0: i32) -> (i32, i32) {
    %c0_i32 = arith.constant 0 : i32
    %c0_i32_0 = arith.constant 0 : i32
    %c0_i32_1 = arith.constant 0 : i32
    return %c0_i32, %c0_i32_0 : i32, i32
  }
  func.func @transform_11(%arg0: i32) -> (i32, i32, i32) {
    %c0_i32 = arith.constant 0 : i32
    %c0_i32_0 = arith.constant 0 : i32
    %c0_i32_1 = arith.constant 0 : i32
    %c0_i32_2 = arith.constant 0 : i32
    return %c0_i32, %c0_i32_0, %c0_i32_1 : i32, i32, i32
  }
  func.func @transform_12(%arg0: i32) -> (i32, i32) {
    %c0_i32 = arith.constant 0 : i32
    %c0_i32_0 = arith.constant 0 : i32
    %c0_i32_1 = arith.constant 0 : i32
    return %c0_i32, %c0_i32_0 : i32, i32
  }
  func.func @transform_13(%arg0: i32) -> (i32, i32) {
    %c0_i32 = arith.constant 0 : i32
    %c0_i32_0 = arith.constant 0 : i32
    return %arg0, %c0_i32 : i32, i32
  }
}

</mosaic_0001>

<bundles_post_ra>
// kernel: tpu_custom_call.1
= control target key start
LH: loop header
LB: loop body
LE: loop exit
PB: predicated region body
PF: predicated region fallthrough
CT: control target
= control target key end

     0   :  { %vm168_vm0 = vcmask 1041408   ;;  %vm119_vm1 = vcmask 31744   ;;  %s15177_s0 = inlined_call_operand.vmem [shape: f32[22,16,4], index: 0, kind: input, shape index: {}]   ;;  %s15178_s1 = inlined_call_operand.vmem [shape: bf16[7,4,8], index: 1, kind: input, shape index: {}]   ;;  %s15179_s2 = inlined_call_operand.vmem [shape: f32[1,8], index: 2, kind: input, shape index: {}]   ;;  %s15180_s3 = inlined_call_operand.vmem [shape: bf16[7,8,16], index: 3, kind: input, shape index: {}]   ;;  %s15181_s4 = inlined_call_operand.vmem [shape: f32[1,16], index: 4, kind: input, shape index: {}]   ;;  %s15182_s5 = inlined_call_operand.vmem [shape: bf16[7,16,24], index: 5, kind: input, shape index: {}]   ;;  %s15183_s6 = inlined_call_operand.vmem [shape: f32[1,24], index: 6, kind: input, shape index: {}]   ;;  %s15184_s7 = inlined_call_operand.vmem [shape: bf16[7,24,32], index: 7, kind: input, shape index: {}]   ;;  %s15185_s8 = inlined_call_operand.vmem [shape: f32[1,32], index: 8, kind: input, shape index: {}]   ;;  %s15186_s9 = inlined_call_operand.vmem [shape: bf16[7,32,40], index: 9, kind: input, shape index: {}]   ;;  %s15187_s10 = inlined_call_operand.vmem [shape: f32[1,40], index: 10, kind: input, shape index: {}]   ;;  %s15188_s11 = inlined_call_operand.vmem [shape: bf16[16,40,16], index: 11, kind: input, shape index: {}]   ;;  %s15189_s12 = inlined_call_operand.vmem [shape: f32[1,16], index: 12, kind: input, shape index: {}]   ;;  %s15190_s13 = inlined_call_operand.hbm [shape: f32[16,16], index: 13, kind: output, shape index: {}]  }
   0x1   :  { %v114_v0 = vld [vmem:[%s15178_s1 + $0x4] sm:$0x3]  ;;  %v51_v2 = vld [vmem:[%s15177_s0 + $0x28] sm:$0xff]  ;;  %v52_v5 = vld [vmem:[%s15177_s0 + $0x30] sm:$0xff] }
   0x2   :  { %v50_v1 = vld [vmem:[%s15177_s0 + $0x20] sm:$0xff]  ;;  %12598 = vmatprep.subr.msk.bf16.mxu0 %vm168_vm0, %v114_v0  ;;  %v504_v3 = vsel %vm168_vm0, %v114_v0, 0  ;;  %v53_v6 = vld [vmem:[%s15177_s0 + $0x38] sm:$0xff]  ;;  %v55_v10 = vld [vmem:[%s15177_s0 + $0x48] sm:$0xff] }
   0x3   :  { %v12817_v4 = vpack.c.bf16 %v51_v2, %v50_v1  ;;  %v115_v7 = vld [vmem:[%s15178_s1 + $0x6] sm:$0x3]  ;;  %10327 = vmatpush3.bf16.msra.mxu0 %v504_v3  ;;  %v12828_v8 = vpack.c.bf16 %v53_v6, %v52_v5  ;;  %v56_v13 = vld [vmem:[%s15177_s0 + $0x50] sm:$0xff]  ;;  %v57_v14 = vld [vmem:[%s15177_s0 + $0x58] sm:$0xff] }
   0x4   :  { %v54_v9 = vld [vmem:[%s15177_s0 + $0x40] sm:$0xff]  ;;  %12599 = vmatprep.subr.msk.bf16.mxu0 %vm168_vm0, %v115_v7  ;;  %v703_v11 = vsel %vm168_vm0, %v115_v7, 0  ;;  %v59_v16 = vld [vmem:[%s15177_s0 + $0x68] sm:$0xff]  ;;  %v12858_v17 = vpack.c.bf16 %v57_v14, %v56_v13  ;;  %v60_v20 = vld [vmem:[%s15177_s0 + $0x70] sm:$0xff] }
   0x5   :  { %10328 = vmatprep.mubr.msk.bf16.mxu0 %vm119_vm1, %v12817_v4  ;;  %v12840_v12 = vpack.c.bf16 %v55_v10, %v54_v9  ;;  %v58_v15 = vld [vmem:[%s15177_s0 + $0x60] sm:$0xff]  ;;  %v12865_v19 = vld [vmem:[%s15178_s1 + $0x8] sm:$0x3]  ;;  %v61_v21 = vld [vmem:[%s15177_s0 + $0x78] sm:$0xff] }
   0x6   :  { %10329 = vmatmul.mubr.msk.bf16.vlgmr.msra.gmra.mrb[0].mxu0 %vm119_vm1, %v12828_v8  ;;  %v12860_v18 = vpack.c.bf16 %v59_v16, %v58_v15  ;;  %v113_v22 = vld [vmem:[%s15178_s1 + $0x2] sm:$0x3]  ;;  %v48_v23 = vld [vmem:[%s15177_s0 + $0x10] sm:$0xff]  ;;  %v49_v26 = vld [vmem:[%s15177_s0 + $0x18] sm:$0xff]  ;;  %v12900_v29 = vpack.c.bf16 %v61_v21, %v60_v20 }
   0x7   :  { %10361 = vmatpush3.bf16.msra.mxu0 %v703_v11  ;;  %10332 = vmatprep.mubr.msk.bf16.mxu0 %vm119_vm1, %v12840_v12  ;;  %v62_v24 = vld [vmem:[%s15177_s0 + $0x80] sm:$0xff]  ;;  %v170_v25 = vsel %vm168_vm0, %v113_v22, 0  ;;  %v63_v27 = vld [vmem:[%s15177_s0 + $0x88] sm:$0xff]  ;;  %v12896_v28 = vpack.c.bf16 %v49_v26, %v48_v23  ;;  %v64_v31 = vld [vmem:[%s15177_s0 + $0x90] sm:$0xff] }
   0x8   :  { %12600 = vmatprep.subr.msk.bf16.mxu0 %vm168_vm0, %v12865_v19  ;;  %12596 = vmatprep.subr.msk.bf16.mxu1 %vm168_vm0, %v113_v22  ;;  %v12904_v30 = vpack.c.bf16 %v63_v27, %v62_v24  ;;  %v65_v32 = vld [vmem:[%s15177_s0 + $0x98] sm:$0xff]  ;;  %v66_v33 = vld [vmem:[%s15177_s0 + $0xa0] sm:$0xff]  ;;  %v67_v34 = vld [vmem:[%s15177_s0 + $0xa8] sm:$0xff] }
   0x9   :  { %10259 = vmatpush3.bf16.msra.mxu1 %v170_v25  ;;  %10260 = vmatprep.mubr.msk.bf16.mxu1 %vm119_vm1, %v12896_v28  ;;  %v12924_v35 = vpack.c.bf16 %v65_v32, %v64_v31  ;;  %v12928_v36 = vpack.c.bf16 %v67_v34, %v66_v33  ;;  %v68_v37 = vld [vmem:[%s15177_s0 + $0xb0] sm:$0xff]  ;;  %v69_v38 = vld [vmem:[%s15177_s0 + $0xb8] sm:$0xff]  ;;  %v70_v39 = vld [vmem:[%s15177_s0 + $0xc0] sm:$0xff] }
   0xa   :  { %v71_v40 = vld [vmem:[%s15177_s0 + $0xc8] sm:$0xff]  ;;  %v12948_v41 = vpack.c.bf16 %v69_v38, %v68_v37  ;;  %v72_v43 = vld [vmem:[%s15177_s0 + $0xd0] sm:$0xff]  ;;  %v73_v44 = vld [vmem:[%s15177_s0 + $0xd8] sm:$0xff] }
   0xb   :  { %v12952_v42 = vpack.c.bf16 %v71_v40, %v70_v39  ;;  %v74_v45 = vld [vmem:[%s15177_s0 + $0xe0] sm:$0xff]  ;;  %v75_v46 = vld [vmem:[%s15177_s0 + $0xe8] sm:$0xff]  ;;  %v12972_v47 = vpack.c.bf16 %v73_v44, %v72_v43  ;;  %v76_v49 = vld [vmem:[%s15177_s0 + $0xf0] sm:$0xff] }
   0xc   :  { %10261 = vmatmul.mubr.msk.bf16.vlgmr.msra.gmra.mrb[0].mxu1 %vm119_vm1, %v12817_v4  ;;  %v12976_v48 = vpack.c.bf16 %v75_v46, %v74_v45  ;;  %v77_v50 = vld [vmem:[%s15177_s0 + $0xf8] sm:$0xff]  ;;  %v78_v51 = vld [vmem:[%s15177_s0 + $0x100] sm:$0xff]  ;;  %v79_v52 = vld [vmem:[%s15177_s0 + $0x108] sm:$0xff] }
   0xd   :  { %10264 = vmatprep.mubr.msk.bf16.mxu1 %vm119_vm1, %v12828_v8  ;;  %v12996_v53 = vpack.c.bf16 %v77_v50, %v76_v49  ;;  %v13000_v54 = vpack.c.bf16 %v79_v52, %v78_v51  ;;  %v80_v55 = vld [vmem:[%s15177_s0 + $0x110] sm:$0xff]  ;;  %v81_v56 = vld [vmem:[%s15177_s0 + $0x118] sm:$0xff]  ;;  %v112_v58 = vld [vmem:[%s15178_s1] sm:$0x3] }
   0xe   :  { %10333 = vmatmul.mubr.msk.bf16.gmra.mrb[4].mxu0 %vm119_vm1, %v12858_v17  ;;  %v13014_v57 = vpack.c.bf16 %v81_v56, %v80_v55  ;;  %12597 = vmatprep.subr.msk.bf16.mxu1 %vm168_vm0, %v112_v58  ;;  %v337_v59 = vsel %vm168_vm0, %v112_v58, 0 }
   0xf   :  { %10336 = vmatprep.mubr.msk.bf16.mxu0 %vm119_vm1, %v12860_v18  ;;  %10293 = vmatpush3.bf16.msra.mxu1 %v337_v59 }
  0x14   :  { %10265 = vmatmul.mubr.msk.bf16.gmra.mrb[4].mxu1 %vm119_vm1, %v12840_v12 }
  0x15   :  { %10268 = vmatprep.mubr.msk.bf16.mxu1 %vm119_vm1, %v12858_v17 }
  0x16   :  { %10337 = vmatmul.mubr.msk.bf16.gmra.mrb[8].mxu0 %vm119_vm1, %v12900_v29 }
  0x17   :  { %10340 = vmatprep.mubr.msk.bf16.mxu0 %vm119_vm1, %v12904_v30 }
  0x1c   :  { %10269 = vmatmul.mubr.msk.bf16.gmra.mrb[8].mxu1 %vm119_vm1, %v12860_v18 }
  0x1d   :  { %10272 = vmatprep.mubr.msk.bf16.mxu1 %vm119_vm1, %v12900_v29 }
  0x1e   :  { %10341 = vmatmul.mubr.msk.bf16.gmra.mrb[12].mxu0 %vm119_vm1, %v12924_v35 }
  0x1f   :  { %10344 = vmatprep.mubr.msk.bf16.mxu0 %vm119_vm1, %v12928_v36 }
  0x24   :  { %10273 = vmatmul.mubr.msk.bf16.gmra.mrb[12].mxu1 %vm119_vm1, %v12904_v30 }
  0x25   :  { %10276 = vmatprep.mubr.msk.bf16.mxu1 %vm119_vm1, %v12924_v35 }
  0x26   :  { %10345 = vmatmul.mubr.msk.bf16.gmra.mrb[16].mxu0 %vm119_vm1, %v12948_v41 }
  0x27   :  { %10348 = vmatprep.mubr.msk.bf16.mxu0 %vm119_vm1, %v12952_v42 }
  0x2c   :  { %10277 = vmatmul.mubr.msk.bf16.gmra.mrb[16].mxu1 %vm119_vm1, %v12928_v36 }
  0x2d   :  { %10280 = vmatprep.mubr.msk.bf16.mxu1 %vm119_vm1, %v12948_v41 }
  0x2e   :  { %10349 = vmatmul.mubr.msk.bf16.gmra.mrb[20].mxu0 %vm119_vm1, %v12972_v47 }
  0x2f   :  { %10352 = vmatprep.mubr.msk.bf16.mxu0 %vm119_vm1, %v12976_v48 }
  0x34   :  { %10281 = vmatmul.mubr.msk.bf16.gmra.mrb[20].mxu1 %vm119_vm1, %v12952_v42 }
  0x35   :  { %10284 = vmatprep.mubr.msk.bf16.mxu1 %vm119_vm1, %v12972_v47 }
  0x36   :  { %10353 = vmatmul.mubr.msk.bf16.gmra.mrb[24].mxu0 %vm119_vm1, %v12996_v53 }
  0x37   :  { %10356 = vmatprep.mubr.msk.bf16.mxu0 %vm119_vm1, %v13000_v54 }
  0x3e   :  { %10357 = vmatmul.mubr.msk.bf16.gmra.mrb[28].mxu0 %vm119_vm1, %v13014_v57 }
  0x3f   :  { %10362 = vmatprep.mubr.msk.bf16.mxu0 %vm119_vm1, %v12828_v8 }
  0x40   :  { %18 = vsyncpa [#allocation7], 0  ;;  %10285 = vmatmul.mubr.msk.bf16.gmra.mrb[24].mxu1 %vm119_vm1, %v12976_v48  ;;  %v902_v60 = vsel %vm168_vm0, %v12865_v19, 0  ;;  %v46_v61 = vld [vmem:[%s15177_s0] sm:$0xff]  ;;  %v47_v62 = vld [vmem:[%s15177_s0 + $0x8] sm:$0xff]  ;;  %vm1682_vm2 = vcmask 1043456  }
  0x41   :  { %10288 = vmatprep.mubr.msk.bf16.mxu1 %vm119_vm1, %v12996_v53  ;;  %v117_v63 = vld [vmem:[%s15178_s1 + $0xa] sm:$0x3]  ;;  %v90_v0 = vpack.c.bf16 %v47_v62, %v46_v61  ;;  %v82_v1 = vld [vmem:[%s15177_s0 + $0x120] sm:$0xff]  ;;  %v118_v5 = vld [vmem:[%s15178_s1 + $0xc] sm:$0x3]  ;;  %vm1582_vm3 = vcmask 64512  }
  0x42   :  { %v83_v2 = vld [vmem:[%s15177_s0 + $0x128] sm:$0xff]  ;;  %v84_v6 = vld [vmem:[%s15177_s0 + $0x130] sm:$0xff]  ;;  %v85_v7 = vld [vmem:[%s15177_s0 + $0x138] sm:$0xff]  ;;  %v1300_v11 = vsel %vm168_vm0, %v118_v5, 0  ;;  %vm3096_vm4 = vcmask 130048   ;;  %vm4637_vm5 = vcmask 195584  }
  0x43   :  { %v13102_v3 = vpack.c.bf16 %v83_v2, %v82_v1  ;;  %v1628_v9 = vld [vmem:[%s15180_s3 + $0x4] sm:$0xf]  ;;  %v87_v13 = vld [vmem:[%s15177_s0 + $0x148] sm:$0xff]  ;;  %v88_v25 = vld [vmem:[%s15177_s0 + $0x150] sm:$0xff]  ;;  %vm6227_vm6 = vcmask 261120   ;;  %vm12732_vm7 = vmmov 0  }
  0x44   :  { %12603 = vmatprep.subr.msk.bf16.mxu1 %vm1682_vm2, %v1628_v9  ;;  %v1684_v10 = vsel %vm1682_vm2, %v1628_v9, 0  ;;  %v89_v26 = vld [vmem:[%s15177_s0 + $0x158] sm:$0xff]  ;;  %v13323_v55 = vld [vmem:[%s15180_s3 + $0x8] sm:$0xf]  ;;  %vm7887_vm8 = vcmask 326656   ;;  %s12733_s1 = smov [#allocation6]  }
  0x46   :  { %10363 = vmatmul.mubr.msk.bf16.vlgmr.msra.gmra.mrb[0].mxu0 %vm119_vm1, %v12840_v12 }
  0x47   :  { %10395 = vmatpush3.bf16.msra.mxu0 %v902_v60  ;;  %10366 = vmatprep.mubr.msk.bf16.mxu0 %vm119_vm1, %v12858_v17 }
  0x48   :  { %12601 = vmatprep.subr.msk.bf16.mxu0 %vm168_vm0, %v117_v63  ;;  %10289 = vmatmul.mubr.msk.bf16.gmra.mrb[28].mxu1 %vm119_vm1, %v13000_v54 }
  0x49   :  { %10294 = vmatprep.mubr.msk.bf16.mxu1 %vm119_vm1, %v90_v0 }
  0x4e   :  { %10367 = vmatmul.mubr.msk.bf16.gmra.mrb[4].mxu0 %vm119_vm1, %v12860_v18 }
  0x4f   :  { %10370 = vmatprep.mubr.msk.bf16.mxu0 %vm119_vm1, %v12900_v29 }
  0x50   :  { %10295 = vmatmul.mubr.msk.bf16.vlgmr.msra.gmra.mrb[0].mxu1 %vm119_vm1, %v12896_v28 }
  0x51   :  { %10298 = vmatprep.mubr.msk.bf16.mxu1 %vm119_vm1, %v12817_v4  ;;  %v1101_v4 = vsel %vm168_vm0, %v117_v63, 0  ;;  %10497 = vmatpush3.bf16.msra.mxu1 %v1684_v10 }
  0x56   :  { %10371 = vmatmul.mubr.msk.bf16.gmra.mrb[8].mxu0 %vm119_vm1, %v12904_v30 }
  0x57   :  { %10374 = vmatprep.mubr.msk.bf16.mxu0 %vm119_vm1, %v12924_v35 }
  0x58   :  { %10299 = vmatmul.mubr.msk.bf16.gmra.mrb[4].mxu1 %vm119_vm1, %v12828_v8  ;;  %v109_v8 = vpack.c.bf16 %v85_v7, %v84_v6 }
  0x59   :  { %10302 = vmatprep.mubr.msk.bf16.mxu1 %vm119_vm1, %v12840_v12 }
  0x5e   :  { %10375 = vmatmul.mubr.msk.bf16.gmra.mrb[12].mxu0 %vm119_vm1, %v12928_v36 }
  0x5f   :  { %10378 = vmatprep.mubr.msk.bf16.mxu0 %vm119_vm1, %v12948_v41 }
  0x60   :  { %10303 = vmatmul.mubr.msk.bf16.gmra.mrb[8].mxu1 %vm119_vm1, %v12858_v17 }
  0x61   :  { %10306 = vmatprep.mubr.msk.bf16.mxu1 %vm119_vm1, %v12860_v18 }
  0x66   :  { %10379 = vmatmul.mubr.msk.bf16.gmra.mrb[16].mxu0 %vm119_vm1, %v12952_v42 }
  0x67   :  { %10382 = vmatprep.mubr.msk.bf16.mxu0 %vm119_vm1, %v12972_v47 }
  0x68   :  { %10307 = vmatmul.mubr.msk.bf16.gmra.mrb[12].mxu1 %vm119_vm1, %v12900_v29 }
  0x69   :  { %10310 = vmatprep.mubr.msk.bf16.mxu1 %vm119_vm1, %v12904_v30 }
  0x6e   :  { %10383 = vmatmul.mubr.msk.bf16.gmra.mrb[20].mxu0 %vm119_vm1, %v12976_v48 }
  0x6f   :  { %10386 = vmatprep.mubr.msk.bf16.mxu0 %vm119_vm1, %v12996_v53 }
  0x70   :  { %10311 = vmatmul.mubr.msk.bf16.gmra.mrb[16].mxu1 %vm119_vm1, %v12924_v35 }
  0x71   :  { %10314 = vmatprep.mubr.msk.bf16.mxu1 %vm119_vm1, %v12928_v36 }
  0x76   :  { %10387 = vmatmul.mubr.msk.bf16.gmra.mrb[24].mxu0 %vm119_vm1, %v13000_v54 }
  0x77   :  { %10390 = vmatprep.mubr.msk.bf16.mxu0 %vm119_vm1, %v13014_v57 }
  0x78   :  { %10315 = vmatmul.mubr.msk.bf16.gmra.mrb[20].mxu1 %vm119_vm1, %v12948_v41 }
  0x79   :  { %10318 = vmatprep.mubr.msk.bf16.mxu1 %vm119_vm1, %v12952_v42 }
  0x7e   :  { %10391 = vmatmul.mubr.msk.bf16.gmra.mrb[28].mxu0 %vm119_vm1, %v13102_v3 }
  0x7f   :  { %10396 = vmatprep.mubr.msk.bf16.mxu0 %vm119_vm1, %v12840_v12  ;;  %v86_v12 = vld [vmem:[%s15177_s0 + $0x140] sm:$0xff] }
  0x80   :  { %10319 = vmatmul.mubr.msk.bf16.gmra.mrb[24].mxu1 %vm119_vm1, %v12972_v47  ;;  %v110_v14 = vpack.c.bf16 %v87_v13, %v86_v12 }
  0x81   :  { %10322 = vmatprep.mubr.msk.bf16.mxu1 %vm119_vm1, %v12976_v48 }
  0x86   :  { %10397 = vmatmul.mubr.msk.bf16.vlgmr.msra.gmra.mrb[0].mxu0 %vm119_vm1, %v12858_v17 }
  0x87   :  { %10429 = vmatpush3.bf16.msra.mxu0 %v1101_v4  ;;  %10400 = vmatprep.mubr.msk.bf16.mxu0 %vm119_vm1, %v12860_v18 }
  0x88   :  { %12602 = vmatprep.subr.msk.bf16.mxu0 %vm168_vm0, %v118_v5  ;;  %10323 = vmatmul.mubr.msk.bf16.gmra.mrb[28].mxu1 %vm119_vm1, %v12996_v53 }
  0x8e   :  { %10401 = vmatmul.mubr.msk.bf16.gmra.mrb[4].mxu0 %vm119_vm1, %v12900_v29 }
  0x8f   :  { %10404 = vmatprep.mubr.msk.bf16.mxu0 %vm119_vm1, %v12904_v30 }
  0x96   :  { %10405 = vmatmul.mubr.msk.bf16.gmra.mrb[8].mxu0 %vm119_vm1, %v12924_v35 }
  0x97   :  { %10408 = vmatprep.mubr.msk.bf16.mxu0 %vm119_vm1, %v12928_v36 }
  0x9e   :  { %10409 = vmatmul.mubr.msk.bf16.gmra.mrb[12].mxu0 %vm119_vm1, %v12948_v41 }
  0x9f   :  { %10412 = vmatprep.mubr.msk.bf16.mxu0 %vm119_vm1, %v12952_v42 }
  0xa6   :  { %10413 = vmatmul.mubr.msk.bf16.gmra.mrb[16].mxu0 %vm119_vm1, %v12972_v47 }
  0xa7   :  { %10416 = vmatprep.mubr.msk.bf16.mxu0 %vm119_vm1, %v12976_v48 }
  0xae   :  { %10417 = vmatmul.mubr.msk.bf16.gmra.mrb[20].mxu0 %vm119_vm1, %v12996_v53 }
  0xaf   :  { %10420 = vmatprep.mubr.msk.bf16.mxu0 %vm119_vm1, %v13000_v54 }
  0xb6   :  { %10421 = vmatmul.mubr.msk.bf16.gmra.mrb[24].mxu0 %vm119_vm1, %v13014_v57 }
  0xb7   :  { %10424 = vmatprep.mubr.msk.bf16.mxu0 %vm119_vm1, %v13102_v3 }
  0xbe   :  { %10425 = vmatmul.mubr.msk.bf16.gmra.mrb[28].mxu0 %vm119_vm1, %v109_v8 }
  0xbf   :  { %10430 = vmatprep.mubr.msk.bf16.mxu0 %vm119_vm1, %v12858_v17 }
  0xc6   :  { %10431 = vmatmul.mubr.msk.bf16.vlgmr.msra.gmra.mrb[0].mxu0 %vm119_vm1, %v12860_v18 }
  0xc7   :  { %10463 = vmatpush3.bf16.msra.mxu0 %v1300_v11  ;;  %10434 = vmatprep.mubr.msk.bf16.mxu0 %vm119_vm1, %v12900_v29 }
  0xce   :  { %10435 = vmatmul.mubr.msk.bf16.gmra.mrb[4].mxu0 %vm119_vm1, %v12904_v30 }
  0xcf   :  { %10438 = vmatprep.mubr.msk.bf16.mxu0 %vm119_vm1, %v12924_v35 }
  0xd6   :  { %10439 = vmatmul.mubr.msk.bf16.gmra.mrb[8].mxu0 %vm119_vm1, %v12928_v36 }
  0xd7   :  { %10442 = vmatprep.mubr.msk.bf16.mxu0 %vm119_vm1, %v12948_v41 }
  0xde   :  { %10443 = vmatmul.mubr.msk.bf16.gmra.mrb[12].mxu0 %vm119_vm1, %v12952_v42 }
  0xdf   :  { %10446 = vmatprep.mubr.msk.bf16.mxu0 %vm119_vm1, %v12972_v47 }
  0xe6   :  { %10447 = vmatmul.mubr.msk.bf16.gmra.mrb[16].mxu0 %vm119_vm1, %v12976_v48 }
  0xe7   :  { %10450 = vmatprep.mubr.msk.bf16.mxu0 %vm119_vm1, %v12996_v53 }
  0xee   :  { %10451 = vmatmul.mubr.msk.bf16.gmra.mrb[20].mxu0 %vm119_vm1, %v13000_v54 }
  0xef   :  { %10454 = vmatprep.mubr.msk.bf16.mxu0 %vm119_vm1, %v13014_v57 }
  0xf6   :  { %10455 = vmatmul.mubr.msk.bf16.gmra.mrb[24].mxu0 %vm119_vm1, %v13102_v3 }
  0xf7   :  { %10458 = vmatprep.mubr.msk.bf16.mxu0 %vm119_vm1, %v109_v8 }
  0xfe   :  { %10459 = vmatmul.mubr.msk.bf16.gmra.mrb[28].mxu0 %vm119_vm1, %v110_v14 }
  0xff   :  { %10464 = vmatprep.mubr.msk.bf16.mxu0 %vm119_vm1, %v12860_v18 }
 0x106   :  { %10465 = vmatmul.mubr.msk.bf16.vlgmr.msra.gmra.mrb[0].mxu0 %vm119_vm1, %v12900_v29  ;;  %v111_v29 = vpack.c.bf16 %v89_v26, %v88_v25 }
 0x107   :  { %10468 = vmatprep.mubr.msk.bf16.mxu0 %vm119_vm1, %v12904_v30 }
 0x10e   :  { %10469 = vmatmul.mubr.msk.bf16.gmra.mrb[4].mxu0 %vm119_vm1, %v12924_v35 }
 0x10f   :  { %10472 = vmatprep.mubr.msk.bf16.mxu0 %vm119_vm1, %v12928_v36 }
 0x116   :  { %10473 = vmatmul.mubr.msk.bf16.gmra.mrb[8].mxu0 %vm119_vm1, %v12948_v41 }
 0x117   :  { %10476 = vmatprep.mubr.msk.bf16.mxu0 %vm119_vm1, %v12952_v42 }
 0x11e   :  { %10477 = vmatmul.mubr.msk.bf16.gmra.mrb[12].mxu0 %vm119_vm1, %v12972_v47  ;;  %v12730_v47 = vmov 0  }
 0x11f   :  { %10480 = vmatprep.mubr.msk.bf16.mxu0 %vm119_vm1, %v12976_v48  ;;  %1584 = vst.msk [vmem:[#allocation2 + $0x8] sm:$0xff] %vm1582_vm3, %v12730_v47  ;;  %1583 = vst.msk [vmem:[#allocation2] sm:$0xff] %vm1582_vm3, %v12730_v47 }
 0x120   :  { %1585 = vst.msk [vmem:[#allocation2 + $0x10] sm:$0xff] %vm1582_vm3, %v12730_v47  ;;  %1602 = vst.msk [vmem:[#allocation2 + $0x98] sm:$0xff] %vm1582_vm3, %v12730_v47 }
 0x121   :  { %1603 = vst.msk [vmem:[#allocation2 + $0xa0] sm:$0xff] %vm1582_vm3, %v12730_v47  ;;  %1604 = vst.msk [vmem:[#allocation2 + $0xa8] sm:$0xff] %vm1582_vm3, %v12730_v47 }
 0x122   :  { %3097 = vst.msk [vmem:[#allocation3] sm:$0xff] %vm3096_vm4, %v12730_v47  ;;  %3098 = vst.msk [vmem:[#allocation3 + $0x8] sm:$0xff] %vm3096_vm4, %v12730_v47 }
 0x123   :  { %v10296_v15 = vpop.f32.mrb[0].mxu1  ;;  %3099 = vst.msk [vmem:[#allocation3 + $0x10] sm:$0xff] %vm3096_vm4, %v12730_v47  ;;  %3116 = vst.msk [vmem:[#allocation3 + $0x98] sm:$0xff] %vm3096_vm4, %v12730_v47 }
 0x124   :  { %v373_v16 = vpop.f32.mrb[1].mxu1  ;;  %3117 = vst.msk [vmem:[#allocation3 + $0xa0] sm:$0xff] %vm3096_vm4, %v12730_v47  ;;  %3118 = vst.msk [vmem:[#allocation3 + $0xa8] sm:$0xff] %vm3096_vm4, %v12730_v47 }
 0x125   :  { %v13222_v17 = vpop.f32.mrb[2].mxu1  ;;  %4638 = vst.msk [vmem:[#allocation4] sm:$0xff] %vm4637_vm5, %v12730_v47  ;;  %4639 = vst.msk [vmem:[#allocation4 + $0x8] sm:$0xff] %vm4637_vm5, %v12730_v47 }
 0x126   :  { %10481 = vmatmul.mubr.msk.bf16.gmra.mrb[16].mxu0 %vm119_vm1, %v12996_v53  ;;  %v13224_v18 = vpop.f32.mrb[3].mxu1  ;;  %v13307_v51 = vld [vmem:[#allocation2 + $0x8] sm:$0xff]  ;;  %v1627_v53 = vld [vmem:[%s15180_s3] sm:$0xf]  ;;  %4640 = vst.msk [vmem:[#allocation4 + $0x10] sm:$0xff] %vm4637_vm5, %v12730_v47  ;;  %4657 = vst.msk [vmem:[#allocation4 + $0x98] sm:$0xff] %vm4637_vm5, %v12730_v47 }
 0x127   :  { %10484 = vmatprep.mubr.msk.bf16.mxu0 %vm119_vm1, %v13000_v54  ;;  %10498 = vmatprep.mubr.msk.bf16.mxu1 %vm1582_vm3, %v13307_v51  ;;  %v13311_v52 = vld [vmem:[#allocation2 + $0x10] sm:$0xff]  ;;  %v1851_v54 = vsel %vm1682_vm2, %v1627_v53, 0  ;;  %4658 = vst.msk [vmem:[#allocation4 + $0xa0] sm:$0xff] %vm4637_vm5, %v12730_v47  ;;  %4659 = vst.msk [vmem:[#allocation4 + $0xa8] sm:$0xff] %vm4637_vm5, %v12730_v47 }
 0x128   :  { %10499 = vmatmul.mubr.msk.bf16.vlgmr.msra.gmra.mrb[32].mxu1 %vm1582_vm3, %v13311_v52  ;;  %12604 = vmatprep.subr.msk.bf16.mxu1 %vm1682_vm2, %v1627_v53  ;;  %6228 = vst.msk [vmem:[#allocation5] sm:$0xff] %vm6227_vm6, %v12730_v47  ;;  %6229 = vst.msk [vmem:[#allocation5 + $0x8] sm:$0xff] %vm6227_vm6, %v12730_v47 }
 0x129   :  { %10531 = vmatpush3.bf16.msra.mxu1 %v1851_v54  ;;  %6230 = vst.msk [vmem:[#allocation5 + $0x10] sm:$0xff] %vm6227_vm6, %v12730_v47  ;;  %6247 = vst.msk [vmem:[#allocation5 + $0x98] sm:$0xff] %vm6227_vm6, %v12730_v47 }
 0x12a   :  { %12605 = vmatprep.subr.msk.bf16.mxu1 %vm1682_vm2, %v13323_v55  ;;  %6248 = vst.msk [vmem:[#allocation5 + $0xa0] sm:$0xff] %vm6227_vm6, %v12730_v47  ;;  %6249 = vst.msk [vmem:[#allocation5 + $0xa8] sm:$0xff] %vm6227_vm6, %v12730_v47  ;;  %v12647_v47 = vld [vmem:[%s15186_s9 + $0x8] sm:$0xff]  }
 0x12b   :  { %v13226_v19 = vpop.f32.mrb[4].mxu1 }
 0x12c   :  { %v13230_v20 = vpop.f32.mrb[5].mxu1 }
 0x12d   :  { %v13234_v21 = vpop.f32.mrb[6].mxu1 }
 0x12e   :  { %10485 = vmatmul.mubr.msk.bf16.gmra.mrb[20].mxu0 %vm119_vm1, %v13014_v57  ;;  %v13236_v22 = vpop.f32.mrb[7].mxu1  ;;  %v13330_v57 = vld [vmem:[%s15179_s2] ss:$0 sm:$0xff]  ;;  %s8909_s2 = sshll.u32 %s12733_s1, 4  ;;  %s8910_s2 = int_to_ptr.vmem [resolvable:$true] %s8909_s2 }
 0x12f   :  { %10488 = vmatprep.mubr.msk.bf16.mxu0 %vm119_vm1, %v13102_v3  ;;  %s12706_s30 = scalar_lea.vmem %s8910_s2, 256  ;;  %p12711_p1 = scmp.lt.s32.totalorder %s8910_s2, %s8910_s2 }
 0x130   :  { %p12707_p0 = scmp.ne.s32.totalorder %s8910_s2, %s12706_s30  ;;  %p12712_p2 = scmp.lt.s32.totalorder %s12706_s30, %s12706_s30 }
 0x132   :  { %p12713_p3 = por %p12712_p2, %p12711_p1 }
 0x133   :  { %v13238_v23 = vpop.f32.mrb[8].mxu1 }
 0x134   :  { %v13241_v24 = vpop.f32.mrb[9].mxu1  ;;  %p12714_p4 = pnand %p12713_p3, %p12707_p0 }
 0x135   :  { %v13250_v27 = vpop.f32.mrb[10].mxu1 }
 0x136   :  { %10489 = vmatmul.mubr.msk.bf16.gmra.mrb[24].mxu0 %vm119_vm1, %v109_v8  ;;  %v13252_v28 = vpop.f32.mrb[11].mxu1 }
 0x137   :  { %10492 = vmatprep.mubr.msk.bf16.mxu0 %vm119_vm1, %v110_v14 }
 0x13b   :  { %v13254_v30 = vpop.f32.mrb[12].mxu1 }
 0x13c   :  { %v13257_v31 = vpop.f32.mrb[13].mxu1 }
 0x13d   :  { %v13259_v32 = vpop.f32.mrb[14].mxu1 }
 0x13e   :  { %10493 = vmatmul.mubr.msk.bf16.gmra.mrb[28].mxu0 %vm119_vm1, %v111_v29  ;;  %v13261_v33 = vpop.f32.mrb[15].mxu1 }
 0x143   :  { %v13263_v34 = vpop.f32.mrb[16].mxu1 }
 0x144   :  { %v13265_v35 = vpop.f32.mrb[17].mxu1 }
 0x145   :  { %v13267_v36 = vpop.f32.mrb[18].mxu1 }
 0x146   :  { %v13269_v37 = vpop.f32.mrb[19].mxu1 }
 0x14b   :  { %v13271_v38 = vpop.f32.mrb[20].mxu1 }
 0x14c   :  { %v13273_v39 = vpop.f32.mrb[21].mxu1 }
 0x14d   :  { %v13275_v40 = vpop.f32.mrb[22].mxu1 }
 0x14e   :  { %v13277_v41 = vpop.f32.mrb[23].mxu1 }
 0x153   :  { %v13279_v42 = vpop.f32.mrb[24].mxu1 }
 0x154   :  { %v13281_v43 = vpop.f32.mrb[25].mxu1 }
 0x155   :  { %v13283_v44 = vpop.f32.mrb[26].mxu1 }
 0x156   :  { %v13285_v45 = vpop.f32.mrb[27].mxu1 }
 0x15b   :  { %v13287_v46 = vpop.f32.mrb[28].mxu1 }
 0x15c   :  { %v13301_v48 = vpop.f32.mrb[29].mxu1 }
 0x15d   :  { %v13303_v49 = vpop.f32.mrb[30].mxu1 }
 0x15e   :  { %v13305_v50 = vpop.f32.mrb[31].mxu1 }
 0x1d9   :  { %v10466_v56 = vpop.f32.mrb[0].mxu0 }
 0x1da   :  { %v11636_v58 = vadd.f32 %v10466_v56, %v10296_v15  ;;  %v1336_v59 = vpop.f32.mrb[1].mxu0 }
 0x1db   :  { %v11637_v60 = vadd.f32 %v1336_v59, %v373_v16  ;;  %v10467_v61 = vpop.f32.mrb[2].mxu0 }
 0x1dc   :  { %v1504_v62 = vadd.f32 %v11636_v58, %v13330_v57  ;;  %v11638_v63 = vadd.f32 %v10467_v61, %v13222_v17  ;;  %v1339_v0 = vpop.f32.mrb[3].mxu0 }
 0x1dd   :  { %v1502_v1 = vadd.f32 %v11637_v60, %v13330_v57  ;;  %v11639_v2 = vadd.f32 %v1339_v0, %v13224_v18 }
 0x1de   :  { %v1505_v3 = vadd.f32 %v11638_v63, %v13330_v57  ;;  %v1536_v5 = vmax.f32 %v1504_v62, 0.0 }
 0x1df   :  { %v1503_v4 = vadd.f32 %v11639_v2, %v13330_v57  ;;  %v1534_v7 = vmax.f32 %v1502_v1, 0.0 }
 0x1e0   :  { %v1537_v6 = vmax.f32 %v1505_v3, 0.0 }
 0x1e1   :  { %v1535_v8 = vmax.f32 %v1503_v4, 0.0  ;;  %v10470_v9 = vpop.f32.mrb[4].mxu0 }
 0x1e2   :  { %v1567_v10 = vpack.c.bf16 %v1537_v6, %v1536_v5  ;;  %v11640_v11 = vadd.f32 %v10470_v9, %v13226_v19  ;;  %v1352_v12 = vpop.f32.mrb[5].mxu0 }
 0x1e3   :  { %v1566_v13 = vpack.c.bf16 %v1535_v8, %v1534_v7  ;;  %v11641_v14 = vadd.f32 %v1352_v12, %v13230_v20  ;;  %v10471_v15 = vpop.f32.mrb[6].mxu0 }
 0x1e4   :  { %1587 = vst.msk [vmem:[#allocation2 + $0x20] sm:$0xff] %vm1582_vm3, %v1567_v10  ;;  %v1508_v16 = vadd.f32 %v11640_v11, %v13330_v57  ;;  %v11642_v17 = vadd.f32 %v10471_v15, %v13234_v21  ;;  %v1355_v18 = vpop.f32.mrb[7].mxu0 }
 0x1e5   :  { %1586 = vst.msk [vmem:[#allocation2 + $0x18] sm:$0xff] %vm1582_vm3, %v1566_v13  ;;  %v1506_v25 = vadd.f32 %v11641_v14, %v13330_v57  ;;  %v11643_v26 = vadd.f32 %v1355_v18, %v13236_v22 }
 0x1e6   :  { %v1509_v19 = vadd.f32 %v11642_v17, %v13330_v57  ;;  %v1540_v53 = vmax.f32 %v1508_v16, 0.0 }
 0x1e7   :  { %v1507_v29 = vadd.f32 %v11643_v26, %v13330_v57  ;;  %v1538_v54 = vmax.f32 %v1506_v25, 0.0 }
 0x1e8   :  { %v1541_v20 = vmax.f32 %v1509_v19, 0.0 }
 0x1e9   :  { %v1539_v56 = vmax.f32 %v1507_v29, 0.0  ;;  %v10474_v58 = vpop.f32.mrb[8].mxu0 }
 0x1ea   :  { %v1569_v59 = vpack.c.bf16 %v1541_v20, %v1540_v53  ;;  %v11644_v60 = vadd.f32 %v10474_v58, %v13238_v23  ;;  %v1368_v21 = vpop.f32.mrb[9].mxu0 }
 0x1eb   :  { %v1568_v61 = vpack.c.bf16 %v1539_v56, %v1538_v54  ;;  %v11645_v62 = vadd.f32 %v1368_v21, %v13241_v24  ;;  %v10475_v63 = vpop.f32.mrb[10].mxu0  ;;  %v13360_v24 = vld [vmem:[#allocation2 + $0x20] sm:$0xff] }
 0x1ec   :  { %1589 = vst.msk [vmem:[#allocation2 + $0x30] sm:$0xff] %vm1582_vm3, %v1569_v59  ;;  %v1512_v22 = vadd.f32 %v11644_v60, %v13330_v57  ;;  %v11646_v0 = vadd.f32 %v10475_v63, %v13250_v27  ;;  %v1371_v1 = vpop.f32.mrb[11].mxu0  ;;  %v13353_v2 = vld [vmem:[#allocation2 + $0x18] sm:$0xff] }
 0x1ed   :  { %1588 = vst.msk [vmem:[#allocation2 + $0x28] sm:$0xff] %vm1582_vm3, %v1568_v61  ;;  %v1510_v3 = vadd.f32 %v11645_v62, %v13330_v57  ;;  %v11647_v23 = vadd.f32 %v1371_v1, %v13252_v28  ;;  %10502 = vmatprep.mubr.msk.bf16.mxu1 %vm1582_vm3, %v13353_v2 }
 0x1ee   :  { %v1513_v4 = vadd.f32 %v11646_v0, %v13330_v57  ;;  %10503 = vmatmul.mubr.msk.bf16.gmra.mrb[36].mxu1 %vm1582_vm3, %v13360_v24  ;;  %v1544_v5 = vmax.f32 %v1512_v22, 0.0 }
 0x1ef   :  { %v1511_v27 = vadd.f32 %v11647_v23, %v13330_v57  ;;  %v1542_v7 = vmax.f32 %v1510_v3, 0.0 }
 0x1f0   :  { %v1545_v6 = vmax.f32 %v1513_v4, 0.0 }
 0x1f1   :  { %v1543_v8 = vmax.f32 %v1511_v27, 0.0  ;;  %v10478_v9 = vpop.f32.mrb[12].mxu0 }
 0x1f2   :  { %v1571_v10 = vpack.c.bf16 %v1545_v6, %v1544_v5  ;;  %v11648_v28 = vadd.f32 %v10478_v9, %v13254_v30  ;;  %v1384_v11 = vpop.f32.mrb[13].mxu0 }
 0x1f3   :  { %v1570_v12 = vpack.c.bf16 %v1543_v8, %v1542_v7  ;;  %v11649_v13 = vadd.f32 %v1384_v11, %v13257_v31  ;;  %v10479_v14 = vpop.f32.mrb[14].mxu0  ;;  %v13378_v31 = vld [vmem:[#allocation2 + $0x30] sm:$0xff] }
 0x1f4   :  { %1591 = vst.msk [vmem:[#allocation2 + $0x40] sm:$0xff] %vm1582_vm3, %v1571_v10  ;;  %v1516_v15 = vadd.f32 %v11648_v28, %v13330_v57  ;;  %v11650_v16 = vadd.f32 %v10479_v14, %v13259_v32  ;;  %v1387_v17 = vpop.f32.mrb[15].mxu0  ;;  %v13371_v18 = vld [vmem:[#allocation2 + $0x28] sm:$0xff] }
 0x1f5   :  { %1590 = vst.msk [vmem:[#allocation2 + $0x38] sm:$0xff] %vm1582_vm3, %v1570_v12  ;;  %v1514_v25 = vadd.f32 %v11649_v13, %v13330_v57  ;;  %v11651_v30 = vadd.f32 %v1387_v17, %v13261_v33  ;;  %10506 = vmatprep.mubr.msk.bf16.mxu1 %vm1582_vm3, %v13371_v18 }
 0x1f6   :  { %v1517_v26 = vadd.f32 %v11650_v16, %v13330_v57  ;;  %10507 = vmatmul.mubr.msk.bf16.gmra.mrb[40].mxu1 %vm1582_vm3, %v13378_v31  ;;  %v1548_v19 = vmax.f32 %v1516_v15, 0.0 }
 0x1f7   :  { %v1515_v32 = vadd.f32 %v11651_v30, %v13330_v57  ;;  %v1546_v53 = vmax.f32 %v1514_v25, 0.0 }
 0x1f8   :  { %v1549_v29 = vmax.f32 %v1517_v26, 0.0 }
 0x1f9   :  { %v1547_v20 = vmax.f32 %v1515_v32, 0.0  ;;  %v10482_v54 = vpop.f32.mrb[16].mxu0 }
 0x1fa   :  { %v1573_v56 = vpack.c.bf16 %v1549_v29, %v1548_v19  ;;  %v11652_v33 = vadd.f32 %v10482_v54, %v13263_v34  ;;  %v1400_v58 = vpop.f32.mrb[17].mxu0 }
 0x1fb   :  { %v1572_v59 = vpack.c.bf16 %v1547_v20, %v1546_v53  ;;  %v11653_v60 = vadd.f32 %v1400_v58, %v13265_v35  ;;  %v10483_v21 = vpop.f32.mrb[18].mxu0  ;;  %v13396_v35 = vld [vmem:[#allocation2 + $0x40] sm:$0xff] }
 0x1fc   :  { %1593 = vst.msk [vmem:[#allocation2 + $0x50] sm:$0xff] %vm1582_vm3, %v1573_v56  ;;  %v1520_v61 = vadd.f32 %v11652_v33, %v13330_v57  ;;  %v11654_v62 = vadd.f32 %v10483_v21, %v13267_v36  ;;  %v1403_v63 = vpop.f32.mrb[19].mxu0  ;;  %v13389_v22 = vld [vmem:[#allocation2 + $0x38] sm:$0xff] }
 0x1fd   :  { %1592 = vst.msk [vmem:[#allocation2 + $0x48] sm:$0xff] %vm1582_vm3, %v1572_v59  ;;  %v1518_v0 = vadd.f32 %v11653_v60, %v13330_v57  ;;  %v11655_v34 = vadd.f32 %v1403_v63, %v13269_v37  ;;  %10510 = vmatprep.mubr.msk.bf16.mxu1 %vm1582_vm3, %v13389_v22 }
 0x1fe   :  { %v1521_v1 = vadd.f32 %v11654_v62, %v13330_v57  ;;  %10511 = vmatmul.mubr.msk.bf16.gmra.mrb[44].mxu1 %vm1582_vm3, %v13396_v35  ;;  %v1552_v3 = vmax.f32 %v1520_v61, 0.0 }
 0x1ff   :  { %v1519_v36 = vadd.f32 %v11655_v34, %v13330_v57  ;;  %v1550_v4 = vmax.f32 %v1518_v0, 0.0 }
 0x200   :  { %v1553_v23 = vmax.f32 %v1521_v1, 0.0 }
 0x201   :  { %v1551_v27 = vmax.f32 %v1519_v36, 0.0  ;;  %v10486_v5 = vpop.f32.mrb[20].mxu0 }
 0x202   :  { %v1575_v6 = vpack.c.bf16 %v1553_v23, %v1552_v3  ;;  %v11656_v37 = vadd.f32 %v10486_v5, %v13271_v38  ;;  %v1416_v7 = vpop.f32.mrb[21].mxu0 }
 0x203   :  { %v1574_v8 = vpack.c.bf16 %v1551_v27, %v1550_v4  ;;  %v11657_v9 = vadd.f32 %v1416_v7, %v13273_v39  ;;  %v10487_v10 = vpop.f32.mrb[22].mxu0  ;;  %v13414_v39 = vld [vmem:[#allocation2 + $0x50] sm:$0xff] }
 0x204   :  { %1595 = vst.msk [vmem:[#allocation2 + $0x60] sm:$0xff] %vm1582_vm3, %v1575_v6  ;;  %v1524_v28 = vadd.f32 %v11656_v37, %v13330_v57  ;;  %v11658_v11 = vadd.f32 %v10487_v10, %v13275_v40  ;;  %v1419_v12 = vpop.f32.mrb[23].mxu0  ;;  %v13407_v13 = vld [vmem:[#allocation2 + $0x48] sm:$0xff] }
 0x205   :  { %1594 = vst.msk [vmem:[#allocation2 + $0x58] sm:$0xff] %vm1582_vm3, %v1574_v8  ;;  %v1522_v14 = vadd.f32 %v11657_v9, %v13330_v57  ;;  %v11659_v38 = vadd.f32 %v1419_v12, %v13277_v41  ;;  %10514 = vmatprep.mubr.msk.bf16.mxu1 %vm1582_vm3, %v13407_v13 }
 0x206   :  { %v1525_v15 = vadd.f32 %v11658_v11, %v13330_v57  ;;  %10515 = vmatmul.mubr.msk.bf16.gmra.mrb[48].mxu1 %vm1582_vm3, %v13414_v39  ;;  %v1556_v16 = vmax.f32 %v1524_v28, 0.0 }
 0x207   :  { %v1523_v40 = vadd.f32 %v11659_v38, %v13330_v57  ;;  %v1554_v25 = vmax.f32 %v1522_v14, 0.0  ;;  %v1605_v14 = vld [vmem:[#allocation2] sm:$0xff] }
 0x208   :  { %v1557_v17 = vmax.f32 %v1525_v15, 0.0  ;;  %v1630_v15 = vld [vmem:[%s15180_s3 + $0xc] sm:$0xf] }
 0x209   :  { %v1555_v30 = vmax.f32 %v1523_v40, 0.0  ;;  %v10490_v26 = vpop.f32.mrb[24].mxu0 }
 0x20a   :  { %v1577_v32 = vpack.c.bf16 %v1557_v17, %v1556_v16  ;;  %v11660_v41 = vadd.f32 %v10490_v26, %v13279_v42  ;;  %v1432_v19 = vpop.f32.mrb[25].mxu0  ;;  %v1632_v16 = vld [vmem:[%s15180_s3 + $0x14] sm:$0xf] }
 0x20b   :  { %v1576_v29 = vpack.c.bf16 %v1555_v30, %v1554_v25  ;;  %v11661_v53 = vadd.f32 %v1432_v19, %v13281_v43  ;;  %v10491_v20 = vpop.f32.mrb[26].mxu0  ;;  %v13432_v43 = vld [vmem:[#allocation2 + $0x60] sm:$0xff]  ;;  %v2615_v17 = vsel %vm1682_vm2, %v1632_v16, 0  ;;  %v1633_v25 = vld [vmem:[%s15180_s3 + $0x18] sm:$0xf]  ;;  %v12623_v30 = vld [vmem:[%s15182_s5 + $0x8] sm:$0xff]  }
 0x20c   :  { %1597 = vst.msk [vmem:[#allocation2 + $0x70] sm:$0xff] %vm1582_vm3, %v1577_v32  ;;  %v1528_v54 = vadd.f32 %v11660_v41, %v13330_v57  ;;  %v11662_v56 = vadd.f32 %v10491_v20, %v13283_v44  ;;  %v1435_v33 = vpop.f32.mrb[27].mxu0  ;;  %v13425_v58 = vld [vmem:[#allocation2 + $0x58] sm:$0xff]  ;;  %10734 = vmatprep.subr.bf16.mxu0 %v12623_v30  ;;  %v2814_v26 = vsel %vm1682_vm2, %v1633_v25, 0  ;;  %v13706_v32 = vld [vmem:[%s15181_s4] ss:$0 sm:$0xff] }
 0x20d   :  { %1596 = vst.msk [vmem:[#allocation2 + $0x68] sm:$0xff] %vm1582_vm3, %v1576_v29  ;;  %v1526_v59 = vadd.f32 %v11661_v53, %v13330_v57  ;;  %v11663_v42 = vadd.f32 %v1435_v33, %v13285_v45  ;;  %10518 = vmatprep.mubr.msk.bf16.mxu1 %vm1582_vm3, %v13425_v58  ;;  %10735 = vmatpush3.bf16.msra.mxu0 %v12623_v30 }
 0x20e   :  { %v1529_v60 = vadd.f32 %v11662_v56, %v13330_v57  ;;  %10519 = vmatmul.mubr.msk.bf16.gmra.mrb[52].mxu1 %vm1582_vm3, %v13432_v43  ;;  %v1560_v21 = vmax.f32 %v1528_v54, 0.0 }
 0x20f   :  { %v1527_v44 = vadd.f32 %v11663_v42, %v13330_v57  ;;  %v1558_v62 = vmax.f32 %v1526_v59, 0.0 }
 0x210   :  { %v1561_v61 = vmax.f32 %v1529_v60, 0.0 }
 0x211   :  { %v1559_v63 = vmax.f32 %v1527_v44, 0.0  ;;  %v10494_v0 = vpop.f32.mrb[28].mxu0 }
 0x212   :  { %v1579_v34 = vpack.c.bf16 %v1561_v61, %v1560_v21  ;;  %v11664_v45 = vadd.f32 %v10494_v0, %v13287_v46  ;;  %v1448_v1 = vpop.f32.mrb[29].mxu0 }
 0x213   :  { %v1578_v36 = vpack.c.bf16 %v1559_v63, %v1558_v62  ;;  %v11665_v3 = vadd.f32 %v1448_v1, %v13301_v48  ;;  %v10495_v23 = vpop.f32.mrb[30].mxu0  ;;  %v13450_v48 = vld [vmem:[#allocation2 + $0x70] sm:$0xff] }
 0x214   :  { %1599 = vst.msk [vmem:[#allocation2 + $0x80] sm:$0xff] %vm1582_vm3, %v1579_v34  ;;  %v1532_v4 = vadd.f32 %v11664_v45, %v13330_v57  ;;  %v11666_v27 = vadd.f32 %v10495_v23, %v13303_v49  ;;  %v1451_v5 = vpop.f32.mrb[31].mxu0  ;;  %v13443_v6 = vld [vmem:[#allocation2 + $0x68] sm:$0xff] }
 0x215   :  { %1598 = vst.msk [vmem:[#allocation2 + $0x78] sm:$0xff] %vm1582_vm3, %v1578_v36  ;;  %v1530_v37 = vadd.f32 %v11665_v3, %v13330_v57  ;;  %v11667_v46 = vadd.f32 %v1451_v5, %v13305_v50  ;;  %10522 = vmatprep.mubr.msk.bf16.mxu1 %vm1582_vm3, %v13443_v6 }
 0x216   :  { %v1533_v7 = vadd.f32 %v11666_v27, %v13330_v57  ;;  %10523 = vmatmul.mubr.msk.bf16.gmra.mrb[56].mxu1 %vm1582_vm3, %v13450_v48  ;;  %v1564_v8 = vmax.f32 %v1532_v4, 0.0 }
 0x217   :  { %v1531_v49 = vadd.f32 %v11667_v46, %v13330_v57  ;;  %v1562_v10 = vmax.f32 %v1530_v37, 0.0  ;;  %v2018_v57 = vsel %vm1682_vm2, %v13323_v55, 0  ;;  %v1631_v55 = vld [vmem:[%s15180_s3 + $0x10] sm:$0xf] }
 0x218   :  { %v1565_v9 = vmax.f32 %v1533_v7, 0.0  ;;  %v2416_v40 = vsel %vm1682_vm2, %v1631_v55, 0 }
 0x219   :  { %v1563_v28 = vmax.f32 %v1531_v49, 0.0 }
 0x21a   :  { %v1581_v11 = vpack.c.bf16 %v1565_v9, %v1564_v8 }
 0x21b   :  { %v1580_v12 = vpack.c.bf16 %v1563_v28, %v1562_v10  ;;  %v13462_v38 = vld [vmem:[#allocation2 + $0x80] sm:$0xff] }
 0x21c   :  { %1601 = vst.msk [vmem:[#allocation2 + $0x90] sm:$0xff] %vm1582_vm3, %v1581_v11  ;;  %v13457_v50 = vld [vmem:[#allocation2 + $0x78] sm:$0xff] }
 0x21d   :  { %1600 = vst.msk [vmem:[#allocation2 + $0x88] sm:$0xff] %vm1582_vm3, %v1580_v12  ;;  %10526 = vmatprep.mubr.msk.bf16.mxu1 %vm1582_vm3, %v13457_v50 }
 0x21e   :  { %10527 = vmatmul.mubr.msk.bf16.gmra.mrb[60].mxu1 %vm1582_vm3, %v13462_v38 }
 0x21f   :  { %10532 = vmatprep.mubr.msk.bf16.mxu1 %vm1582_vm3, %v1605_v14 }
 0x226   :  { %10533 = vmatmul.mubr.msk.bf16.vlgmr.msra.gmra.mrb[32].mxu1 %vm1582_vm3, %v13307_v51  ;;  %v2217_v51 = vsel %vm1682_vm2, %v1630_v15, 0 }
 0x227   :  { %10565 = vmatpush3.bf16.msra.mxu1 %v2018_v57  ;;  %10536 = vmatprep.mubr.msk.bf16.mxu1 %vm1582_vm3, %v13311_v52 }
 0x228   :  { %12606 = vmatprep.subr.msk.bf16.mxu1 %vm1682_vm2, %v1630_v15 }
 0x22e   :  { %10537 = vmatmul.mubr.msk.bf16.gmra.mrb[36].mxu1 %vm1582_vm3, %v13353_v2 }
 0x22f   :  { %10540 = vmatprep.mubr.msk.bf16.mxu1 %vm1582_vm3, %v13360_v24 }
 0x236   :  { %10541 = vmatmul.mubr.msk.bf16.gmra.mrb[40].mxu1 %vm1582_vm3, %v13371_v18 }
 0x237   :  { %10544 = vmatprep.mubr.msk.bf16.mxu1 %vm1582_vm3, %v13378_v31 }
 0x23e   :  { %10545 = vmatmul.mubr.msk.bf16.gmra.mrb[44].mxu1 %vm1582_vm3, %v13389_v22 }
 0x23f   :  { %10548 = vmatprep.mubr.msk.bf16.mxu1 %vm1582_vm3, %v13396_v35 }
 0x246   :  { %10549 = vmatmul.mubr.msk.bf16.gmra.mrb[48].mxu1 %vm1582_vm3, %v13407_v13 }
 0x247   :  { %10552 = vmatprep.mubr.msk.bf16.mxu1 %vm1582_vm3, %v13414_v39 }
 0x24e   :  { %10553 = vmatmul.mubr.msk.bf16.gmra.mrb[52].mxu1 %vm1582_vm3, %v13425_v58 }
 0x24f   :  { %10556 = vmatprep.mubr.msk.bf16.mxu1 %vm1582_vm3, %v13432_v43 }
 0x256   :  { %10557 = vmatmul.mubr.msk.bf16.gmra.mrb[56].mxu1 %vm1582_vm3, %v13443_v6 }
 0x257   :  { %10560 = vmatprep.mubr.msk.bf16.mxu1 %vm1582_vm3, %v13450_v48 }
 0x25e   :  { %10561 = vmatmul.mubr.msk.bf16.gmra.mrb[60].mxu1 %vm1582_vm3, %v13457_v50 }
 0x25f   :  { %10566 = vmatprep.mubr.msk.bf16.mxu1 %vm1582_vm3, %v13311_v52  ;;  %v13538_v52 = vld [vmem:[#allocation2 + $0x88] sm:$0xff] }
 0x266   :  { %10567 = vmatmul.mubr.msk.bf16.vlgmr.msra.gmra.mrb[32].mxu1 %vm1582_vm3, %v13353_v2 }
 0x267   :  { %10570 = vmatprep.mubr.msk.bf16.mxu1 %vm1582_vm3, %v13360_v24  ;;  %10599 = vmatpush3.bf16.msra.mxu1 %v2217_v51 }
 0x268   :  { %12607 = vmatprep.subr.msk.bf16.mxu1 %vm1682_vm2, %v1631_v55 }
 0x26e   :  { %10571 = vmatmul.mubr.msk.bf16.gmra.mrb[36].mxu1 %vm1582_vm3, %v13371_v18 }
 0x26f   :  { %10574 = vmatprep.mubr.msk.bf16.mxu1 %vm1582_vm3, %v13378_v31 }
 0x276   :  { %10575 = vmatmul.mubr.msk.bf16.gmra.mrb[40].mxu1 %vm1582_vm3, %v13389_v22 }
 0x277   :  { %10578 = vmatprep.mubr.msk.bf16.mxu1 %vm1582_vm3, %v13396_v35 }
 0x27e   :  { %10579 = vmatmul.mubr.msk.bf16.gmra.mrb[44].mxu1 %vm1582_vm3, %v13407_v13 }
 0x27f   :  { %10582 = vmatprep.mubr.msk.bf16.mxu1 %vm1582_vm3, %v13414_v39 }
 0x286   :  { %10583 = vmatmul.mubr.msk.bf16.gmra.mrb[48].mxu1 %vm1582_vm3, %v13425_v58 }
 0x287   :  { %10586 = vmatprep.mubr.msk.bf16.mxu1 %vm1582_vm3, %v13432_v43 }
 0x28e   :  { %10587 = vmatmul.mubr.msk.bf16.gmra.mrb[52].mxu1 %vm1582_vm3, %v13443_v6 }
 0x28f   :  { %10590 = vmatprep.mubr.msk.bf16.mxu1 %vm1582_vm3, %v13450_v48 }
 0x296   :  { %10591 = vmatmul.mubr.msk.bf16.gmra.mrb[56].mxu1 %vm1582_vm3, %v13457_v50 }
 0x297   :  { %10594 = vmatprep.mubr.msk.bf16.mxu1 %vm1582_vm3, %v13462_v38 }
 0x29e   :  { %10595 = vmatmul.mubr.msk.bf16.gmra.mrb[60].mxu1 %vm1582_vm3, %v13538_v52 }
 0x29f   :  { %10600 = vmatprep.mubr.msk.bf16.mxu1 %vm1582_vm3, %v13353_v2  ;;  %v1623_v2 = vld [vmem:[#allocation2 + $0x90] sm:$0xff] }
 0x2a6   :  { %10601 = vmatmul.mubr.msk.bf16.vlgmr.msra.gmra.mrb[32].mxu1 %vm1582_vm3, %v13360_v24 }
 0x2a7   :  { %10604 = vmatprep.mubr.msk.bf16.mxu1 %vm1582_vm3, %v13371_v18  ;;  %10633 = vmatpush3.bf16.msra.mxu1 %v2416_v40 }
 0x2a8   :  { %12608 = vmatprep.subr.msk.bf16.mxu1 %vm1682_vm2, %v1632_v16 }
 0x2ae   :  { %10605 = vmatmul.mubr.msk.bf16.gmra.mrb[36].mxu1 %vm1582_vm3, %v13378_v31 }
 0x2af   :  { %10608 = vmatprep.mubr.msk.bf16.mxu1 %vm1582_vm3, %v13389_v22 }
 0x2b6   :  { %10609 = vmatmul.mubr.msk.bf16.gmra.mrb[40].mxu1 %vm1582_vm3, %v13396_v35 }
 0x2b7   :  { %10612 = vmatprep.mubr.msk.bf16.mxu1 %vm1582_vm3, %v13407_v13 }
 0x2be   :  { %10613 = vmatmul.mubr.msk.bf16.gmra.mrb[44].mxu1 %vm1582_vm3, %v13414_v39 }
 0x2bf   :  { %10616 = vmatprep.mubr.msk.bf16.mxu1 %vm1582_vm3, %v13425_v58 }
 0x2c6   :  { %10617 = vmatmul.mubr.msk.bf16.gmra.mrb[48].mxu1 %vm1582_vm3, %v13432_v43 }
 0x2c7   :  { %10620 = vmatprep.mubr.msk.bf16.mxu1 %vm1582_vm3, %v13443_v6 }
 0x2ce   :  { %10621 = vmatmul.mubr.msk.bf16.gmra.mrb[52].mxu1 %vm1582_vm3, %v13450_v48 }
 0x2cf   :  { %10624 = vmatprep.mubr.msk.bf16.mxu1 %vm1582_vm3, %v13457_v50 }
 0x2d6   :  { %10625 = vmatmul.mubr.msk.bf16.gmra.mrb[56].mxu1 %vm1582_vm3, %v13462_v38 }
 0x2d7   :  { %10628 = vmatprep.mubr.msk.bf16.mxu1 %vm1582_vm3, %v13538_v52 }
 0x2de   :  { %10629 = vmatmul.mubr.msk.bf16.gmra.mrb[60].mxu1 %vm1582_vm3, %v1623_v2 }
 0x2df   :  { %10634 = vmatprep.mubr.msk.bf16.mxu1 %vm1582_vm3, %v13360_v24  ;;  %v1624_v24 = vld [vmem:[#allocation2 + $0x98] sm:$0xff] }
 0x2e6   :  { %10635 = vmatmul.mubr.msk.bf16.vlgmr.msra.gmra.mrb[32].mxu1 %vm1582_vm3, %v13371_v18 }
 0x2e7   :  { %10638 = vmatprep.mubr.msk.bf16.mxu1 %vm1582_vm3, %v13378_v31  ;;  %10667 = vmatpush3.bf16.msra.mxu1 %v2615_v17 }
 0x2e8   :  { %12609 = vmatprep.subr.msk.bf16.mxu1 %vm1682_vm2, %v1633_v25 }
 0x2ee   :  { %10639 = vmatmul.mubr.msk.bf16.gmra.mrb[36].mxu1 %vm1582_vm3, %v13389_v22 }
 0x2ef   :  { %10642 = vmatprep.mubr.msk.bf16.mxu1 %vm1582_vm3, %v13396_v35 }
 0x2f6   :  { %10643 = vmatmul.mubr.msk.bf16.gmra.mrb[40].mxu1 %vm1582_vm3, %v13407_v13 }
 0x2f7   :  { %10646 = vmatprep.mubr.msk.bf16.mxu1 %vm1582_vm3, %v13414_v39 }
 0x2fe   :  { %10647 = vmatmul.mubr.msk.bf16.gmra.mrb[44].mxu1 %vm1582_vm3, %v13425_v58 }
 0x2ff   :  { %10650 = vmatprep.mubr.msk.bf16.mxu1 %vm1582_vm3, %v13432_v43 }
 0x306   :  { %10651 = vmatmul.mubr.msk.bf16.gmra.mrb[48].mxu1 %vm1582_vm3, %v13443_v6 }
 0x307   :  { %10654 = vmatprep.mubr.msk.bf16.mxu1 %vm1582_vm3, %v13450_v48 }
 0x30e   :  { %10655 = vmatmul.mubr.msk.bf16.gmra.mrb[52].mxu1 %vm1582_vm3, %v13457_v50 }
 0x30f   :  { %10658 = vmatprep.mubr.msk.bf16.mxu1 %vm1582_vm3, %v13462_v38 }
 0x316   :  { %10659 = vmatmul.mubr.msk.bf16.gmra.mrb[56].mxu1 %vm1582_vm3, %v13538_v52 }
 0x317   :  { %10662 = vmatprep.mubr.msk.bf16.mxu1 %vm1582_vm3, %v1623_v2 }
 0x31e   :  { %10663 = vmatmul.mubr.msk.bf16.gmra.mrb[60].mxu1 %vm1582_vm3, %v1624_v24 }
 0x31f   :  { %10668 = vmatprep.mubr.msk.bf16.mxu1 %vm1582_vm3, %v13371_v18  ;;  %v1625_v18 = vld [vmem:[#allocation2 + $0xa0] sm:$0xff] }
 0x326   :  { %10669 = vmatmul.mubr.msk.bf16.vlgmr.msra.gmra.mrb[32].mxu1 %vm1582_vm3, %v13378_v31 }
 0x327   :  { %10672 = vmatprep.mubr.msk.bf16.mxu1 %vm1582_vm3, %v13389_v22  ;;  %10701 = vmatpush3.bf16.msra.mxu1 %v2814_v26 }
 0x32e   :  { %10673 = vmatmul.mubr.msk.bf16.gmra.mrb[36].mxu1 %vm1582_vm3, %v13396_v35 }
 0x32f   :  { %10676 = vmatprep.mubr.msk.bf16.mxu1 %vm1582_vm3, %v13407_v13 }
 0x336   :  { %10677 = vmatmul.mubr.msk.bf16.gmra.mrb[40].mxu1 %vm1582_vm3, %v13414_v39 }
 0x337   :  { %10680 = vmatprep.mubr.msk.bf16.mxu1 %vm1582_vm3, %v13425_v58 }
 0x33e   :  { %10681 = vmatmul.mubr.msk.bf16.gmra.mrb[44].mxu1 %vm1582_vm3, %v13432_v43 }
 0x33f   :  { %10684 = vmatprep.mubr.msk.bf16.mxu1 %vm1582_vm3, %v13443_v6 }
 0x346   :  { %10685 = vmatmul.mubr.msk.bf16.gmra.mrb[48].mxu1 %vm1582_vm3, %v13450_v48 }
 0x347   :  { %10688 = vmatprep.mubr.msk.bf16.mxu1 %vm1582_vm3, %v13457_v50 }
 0x34e   :  { %10689 = vmatmul.mubr.msk.bf16.gmra.mrb[52].mxu1 %vm1582_vm3, %v13462_v38 }
 0x34f   :  { %10692 = vmatprep.mubr.msk.bf16.mxu1 %vm1582_vm3, %v13538_v52 }
 0x356   :  { %10693 = vmatmul.mubr.msk.bf16.gmra.mrb[56].mxu1 %vm1582_vm3, %v1623_v2 }
 0x357   :  { %10696 = vmatprep.mubr.msk.bf16.mxu1 %vm1582_vm3, %v1624_v24 }
 0x35e   :  { %10697 = vmatmul.mubr.msk.bf16.gmra.mrb[60].mxu1 %vm1582_vm3, %v1625_v18 }
 0x35f   :  { %10702 = vmatprep.mubr.msk.bf16.mxu1 %vm1582_vm3, %v13378_v31  ;;  %v1626_v31 = vld [vmem:[#allocation2 + $0xa8] sm:$0xff] }
 0x366   :  { %10703 = vmatmul.mubr.msk.bf16.vlgmr.msra.gmra.mrb[32].mxu1 %vm1582_vm3, %v13389_v22  ;;  %v13686_v22 = vld [vmem:[#allocation3 + $0x8] sm:$0xff] }
 0x367   :  { %10706 = vmatprep.mubr.msk.bf16.mxu1 %vm1582_vm3, %v13396_v35  ;;  %10736 = vmatprep.mubr.msk.bf16.mxu0 %vm3096_vm4, %v13686_v22  ;;  %v13690_v35 = vld [vmem:[#allocation3 + $0x10] sm:$0xff] }
 0x368   :  { %10737 = vmatmul.mubr.msk.bf16.vlgmr.msra.gmra.mrb[32].mxu0 %vm3096_vm4, %v13690_v35 }
 0x36e   :  { %10707 = vmatmul.mubr.msk.bf16.gmra.mrb[36].mxu1 %vm1582_vm3, %v13407_v13  ;;  %v12624_v13 = vld [vmem:[%s15182_s5] sm:$0xff]  }
 0x36f   :  { %10710 = vmatprep.mubr.msk.bf16.mxu1 %vm1582_vm3, %v13414_v39  ;;  %10768 = vmatprep.subr.bf16.mxu0 %v12624_v13  ;;  %v13700_v39 = vld [vmem:[%s15182_s5 + $0x10] sm:$0xff]  }
 0x370   :  { %10769 = vmatpush3.bf16.msra.mxu0 %v12624_v13 }
 0x371   :  { %10802 = vmatprep.subr.bf16.mxu0 %v13700_v39 }
 0x376   :  { %10711 = vmatmul.mubr.msk.bf16.gmra.mrb[40].mxu1 %vm1582_vm3, %v13425_v58 }
 0x377   :  { %10714 = vmatprep.mubr.msk.bf16.mxu1 %vm1582_vm3, %v13432_v43 }
 0x37e   :  { %10715 = vmatmul.mubr.msk.bf16.gmra.mrb[44].mxu1 %vm1582_vm3, %v13443_v6 }
 0x37f   :  { %10718 = vmatprep.mubr.msk.bf16.mxu1 %vm1582_vm3, %v13450_v48 }
 0x386   :  { %10719 = vmatmul.mubr.msk.bf16.gmra.mrb[48].mxu1 %vm1582_vm3, %v13457_v50 }
 0x387   :  { %10722 = vmatprep.mubr.msk.bf16.mxu1 %vm1582_vm3, %v13462_v38 }
 0x38e   :  { %10723 = vmatmul.mubr.msk.bf16.gmra.mrb[52].mxu1 %vm1582_vm3, %v13538_v52 }
 0x38f   :  { %10726 = vmatprep.mubr.msk.bf16.mxu1 %vm1582_vm3, %v1623_v2 }
 0x396   :  { %10727 = vmatmul.mubr.msk.bf16.gmra.mrb[56].mxu1 %vm1582_vm3, %v1624_v24 }
 0x397   :  { %10730 = vmatprep.mubr.msk.bf16.mxu1 %vm1582_vm3, %v1625_v18 }
 0x39e   :  { %10731 = vmatmul.mubr.msk.bf16.gmra.mrb[60].mxu1 %vm1582_vm3, %v1626_v31 }
 0x439   :  { %v10704_v41 = vpop.f32.mrb[32].mxu1 }
 0x43a   :  { %v3018_v19 = vadd.f32 %v10704_v41, %v13706_v32  ;;  %v2850_v29 = vpop.f32.mrb[33].mxu1 }
 0x43b   :  { %v3016_v53 = vadd.f32 %v13706_v32, %v2850_v29  ;;  %v10705_v20 = vpop.f32.mrb[34].mxu1 }
 0x43c   :  { %v3019_v54 = vadd.f32 %v10705_v20, %v13706_v32  ;;  %v2853_v56 = vpop.f32.mrb[35].mxu1  ;;  %v3050_v58 = vmax.f32 %v3018_v19, 0.0 }
 0x43d   :  { %v3017_v33 = vadd.f32 %v13706_v32, %v2853_v56  ;;  %v3048_v42 = vmax.f32 %v3016_v53, 0.0 }
 0x43e   :  { %v3051_v59 = vmax.f32 %v3019_v54, 0.0 }
 0x43f   :  { %v3049_v43 = vmax.f32 %v3017_v33, 0.0 }
 0x440   :  { %v3081_v60 = vpack.c.bf16 %v3051_v59, %v3050_v58 }
 0x441   :  { %v3080_v44 = vpack.c.bf16 %v3049_v43, %v3048_v42  ;;  %v10708_v21 = vpop.f32.mrb[36].mxu1 }
 0x442   :  { %3101 = vst.msk [vmem:[#allocation3 + $0x20] sm:$0xff] %vm3096_vm4, %v3081_v60  ;;  %v3022_v61 = vadd.f32 %v10708_v21, %v13706_v32  ;;  %v2866_v62 = vpop.f32.mrb[37].mxu1 }
 0x443   :  { %3100 = vst.msk [vmem:[#allocation3 + $0x18] sm:$0xff] %vm3096_vm4, %v3080_v44  ;;  %v3020_v63 = vadd.f32 %v13706_v32, %v2866_v62  ;;  %v10709_v0 = vpop.f32.mrb[38].mxu1 }
 0x444   :  { %v3023_v34 = vadd.f32 %v10709_v0, %v13706_v32  ;;  %v2869_v45 = vpop.f32.mrb[39].mxu1  ;;  %v3054_v36 = vmax.f32 %v3022_v61, 0.0 }
 0x445   :  { %v3021_v1 = vadd.f32 %v13706_v32, %v2869_v45  ;;  %v3052_v23 = vmax.f32 %v3020_v63, 0.0 }
 0x446   :  { %v3055_v3 = vmax.f32 %v3023_v34, 0.0 }
 0x447   :  { %v3053_v4 = vmax.f32 %v3021_v1, 0.0 }
 0x448   :  { %v3083_v27 = vpack.c.bf16 %v3055_v3, %v3054_v36 }
 0x449   :  { %v3082_v5 = vpack.c.bf16 %v3053_v4, %v3052_v23  ;;  %v10712_v6 = vpop.f32.mrb[40].mxu1  ;;  %v13726_v8 = vld [vmem:[#allocation3 + $0x20] sm:$0xff] }
 0x44a   :  { %3103 = vst.msk [vmem:[#allocation3 + $0x30] sm:$0xff] %vm3096_vm4, %v3083_v27  ;;  %v3026_v37 = vadd.f32 %v10712_v6, %v13706_v32  ;;  %v2882_v46 = vpop.f32.mrb[41].mxu1  ;;  %v13720_v48 = vld [vmem:[#allocation3 + $0x18] sm:$0xff] }
 0x44b   :  { %3102 = vst.msk [vmem:[#allocation3 + $0x28] sm:$0xff] %vm3096_vm4, %v3082_v5  ;;  %v3024_v7 = vadd.f32 %v13706_v32, %v2882_v46  ;;  %v10713_v49 = vpop.f32.mrb[42].mxu1  ;;  %10740 = vmatprep.mubr.msk.bf16.mxu0 %vm3096_vm4, %v13720_v48 }
 0x44c   :  { %v3027_v9 = vadd.f32 %v10713_v49, %v13706_v32  ;;  %v2885_v10 = vpop.f32.mrb[43].mxu1  ;;  %10741 = vmatmul.mubr.msk.bf16.gmra.mrb[36].mxu0 %vm3096_vm4, %v13726_v8  ;;  %v3058_v11 = vmax.f32 %v3026_v37, 0.0 }
 0x44d   :  { %v3025_v28 = vadd.f32 %v13706_v32, %v2885_v10  ;;  %v3056_v50 = vmax.f32 %v3024_v7, 0.0 }
 0x44e   :  { %v3059_v12 = vmax.f32 %v3027_v9, 0.0 }
 0x44f   :  { %v3057_v14 = vmax.f32 %v3025_v28, 0.0 }
 0x450   :  { %v3085_v38 = vpack.c.bf16 %v3059_v12, %v3058_v11 }
 0x451   :  { %v3084_v57 = vpack.c.bf16 %v3057_v14, %v3056_v50  ;;  %v10716_v15 = vpop.f32.mrb[44].mxu1  ;;  %v13740_v2 = vld [vmem:[#allocation3 + $0x30] sm:$0xff] }
 0x452   :  { %3105 = vst.msk [vmem:[#allocation3 + $0x40] sm:$0xff] %vm3096_vm4, %v3085_v38  ;;  %v3030_v51 = vadd.f32 %v10716_v15, %v13706_v32  ;;  %v2898_v55 = vpop.f32.mrb[45].mxu1  ;;  %v13734_v52 = vld [vmem:[#allocation3 + $0x28] sm:$0xff] }
 0x453   :  { %3104 = vst.msk [vmem:[#allocation3 + $0x38] sm:$0xff] %vm3096_vm4, %v3084_v57  ;;  %v3028_v40 = vadd.f32 %v13706_v32, %v2898_v55  ;;  %v10717_v16 = vpop.f32.mrb[46].mxu1  ;;  %10744 = vmatprep.mubr.msk.bf16.mxu0 %vm3096_vm4, %v13734_v52 }
 0x454   :  { %v3031_v17 = vadd.f32 %v10717_v16, %v13706_v32  ;;  %v2901_v25 = vpop.f32.mrb[47].mxu1  ;;  %10745 = vmatmul.mubr.msk.bf16.gmra.mrb[40].mxu0 %vm3096_vm4, %v13740_v2  ;;  %v3062_v30 = vmax.f32 %v3030_v51, 0.0 }
 0x455   :  { %v3029_v24 = vadd.f32 %v13706_v32, %v2901_v25  ;;  %v3060_v18 = vmax.f32 %v3028_v40, 0.0 }
 0x456   :  { %v3063_v26 = vmax.f32 %v3031_v17, 0.0 }
 0x457   :  { %v3061_v31 = vmax.f32 %v3029_v24, 0.0 }
 0x458   :  { %v3087_v13 = vpack.c.bf16 %v3063_v26, %v3062_v30 }
 0x459   :  { %v3086_v41 = vpack.c.bf16 %v3061_v31, %v3060_v18  ;;  %v10720_v19 = vpop.f32.mrb[48].mxu1  ;;  %v13754_v33 = vld [vmem:[#allocation3 + $0x40] sm:$0xff] }
 0x45a   :  { %3107 = vst.msk [vmem:[#allocation3 + $0x50] sm:$0xff] %vm3096_vm4, %v3087_v13  ;;  %v3034_v29 = vadd.f32 %v10720_v19, %v13706_v32  ;;  %v2914_v53 = vpop.f32.mrb[49].mxu1  ;;  %v13748_v20 = vld [vmem:[#allocation3 + $0x38] sm:$0xff] }
 0x45b   :  { %3106 = vst.msk [vmem:[#allocation3 + $0x48] sm:$0xff] %vm3096_vm4, %v3086_v41  ;;  %v3032_v54 = vadd.f32 %v13706_v32, %v2914_v53  ;;  %v10721_v56 = vpop.f32.mrb[50].mxu1  ;;  %10748 = vmatprep.mubr.msk.bf16.mxu0 %vm3096_vm4, %v13748_v20 }
 0x45c   :  { %v3035_v58 = vadd.f32 %v10721_v56, %v13706_v32  ;;  %v2917_v59 = vpop.f32.mrb[51].mxu1  ;;  %10749 = vmatmul.mubr.msk.bf16.gmra.mrb[44].mxu0 %vm3096_vm4, %v13754_v33  ;;  %v3066_v43 = vmax.f32 %v3034_v29, 0.0 }
 0x45d   :  { %v3033_v42 = vadd.f32 %v13706_v32, %v2917_v59  ;;  %v3064_v44 = vmax.f32 %v3032_v54, 0.0 }
 0x45e   :  { %v3067_v60 = vmax.f32 %v3035_v58, 0.0 }
 0x45f   :  { %v3065_v21 = vmax.f32 %v3033_v42, 0.0 }
 0x460   :  { %v3089_v61 = vpack.c.bf16 %v3067_v60, %v3066_v43 }
 0x461   :  { %v3088_v62 = vpack.c.bf16 %v3065_v21, %v3064_v44  ;;  %v10724_v63 = vpop.f32.mrb[52].mxu1  ;;  %v13768_v3 = vld [vmem:[#allocation3 + $0x50] sm:$0xff]  ;;  %v3119_v44 = vld [vmem:[#allocation3] sm:$0xff] }
 0x462   :  { %3109 = vst.msk [vmem:[#allocation3 + $0x60] sm:$0xff] %vm3096_vm4, %v3089_v61  ;;  %v3038_v0 = vadd.f32 %v10724_v63, %v13706_v32  ;;  %v2930_v34 = vpop.f32.mrb[53].mxu1  ;;  %v13762_v45 = vld [vmem:[#allocation3 + $0x48] sm:$0xff]  ;;  %v12629_v61 = vld [vmem:[%s15182_s5 + $0x30] sm:$0xff]  }
 0x463   :  { %3108 = vst.msk [vmem:[#allocation3 + $0x58] sm:$0xff] %vm3096_vm4, %v3088_v62  ;;  %v3036_v1 = vadd.f32 %v13706_v32, %v2930_v34  ;;  %v10725_v36 = vpop.f32.mrb[54].mxu1  ;;  %10752 = vmatprep.mubr.msk.bf16.mxu0 %vm3096_vm4, %v13762_v45  ;;  %v12630_v62 = vld [vmem:[%s15184_s7 + $0xc] sm:$0xff]   ;;  %v12631_v63 = vld [vmem:[%s15184_s7 + $0x14] ss:$0 sps:$4 sm:$0xff]   ;;  %v12632_v34 = vld [vmem:[%s15184_s7] sm:$0xff]  }
 0x464   :  { %v3039_v23 = vadd.f32 %v10725_v36, %v13706_v32  ;;  %v2933_v4 = vpop.f32.mrb[55].mxu1  ;;  %10753 = vmatmul.mubr.msk.bf16.gmra.mrb[48].mxu0 %vm3096_vm4, %v13768_v3  ;;  %v3070_v5 = vmax.f32 %v3038_v0, 0.0  ;;  %10972 = vmatprep.subr.bf16.mxu1 %v12630_v62  ;;  %v4761_v0 = vsel %vm1682_vm2, %v12631_v63, 0  ;;  %v14047_v36 = vld [vmem:[%s15184_s7 + $0x18] sm:$0xff]  }
 0x465   :  { %v3037_v27 = vadd.f32 %v13706_v32, %v2933_v4  ;;  %v3068_v37 = vmax.f32 %v3036_v1, 0.0  ;;  %10973 = vmatpush3.bf16.msra.mxu1 %v12630_v62 }
 0x466   :  { %v3071_v6 = vmax.f32 %v3039_v23, 0.0  ;;  %12610 = vmatprep.subr.msk.bf16.mxu1 %vm1682_vm2, %v12631_v63 }
 0x467   :  { %v3069_v46 = vmax.f32 %v3037_v27, 0.0 }
 0x468   :  { %v3091_v7 = vpack.c.bf16 %v3071_v6, %v3070_v5 }
 0x469   :  { %v3090_v49 = vpack.c.bf16 %v3069_v46, %v3068_v37  ;;  %v10728_v9 = vpop.f32.mrb[56].mxu1  ;;  %v13782_v14 = vld [vmem:[#allocation3 + $0x60] sm:$0xff]  ;;  %10975 = vmatpush3.bf16.msra.mxu1 %v4761_v0 }
 0x46a   :  { %3111 = vst.msk [vmem:[#allocation3 + $0x70] sm:$0xff] %vm3096_vm4, %v3091_v7  ;;  %v3042_v10 = vadd.f32 %v10728_v9, %v13706_v32  ;;  %v2946_v28 = vpop.f32.mrb[57].mxu1  ;;  %v13776_v11 = vld [vmem:[#allocation3 + $0x58] sm:$0xff]  ;;  %11008 = vmatprep.subr.bf16.mxu1 %v12632_v34 }
 0x46b   :  { %3110 = vst.msk [vmem:[#allocation3 + $0x68] sm:$0xff] %vm3096_vm4, %v3090_v49  ;;  %v3040_v12 = vadd.f32 %v13706_v32, %v2946_v28  ;;  %v10729_v50 = vpop.f32.mrb[58].mxu1  ;;  %10756 = vmatprep.mubr.msk.bf16.mxu0 %vm3096_vm4, %v13776_v11 }
 0x46c   :  { %v3043_v38 = vadd.f32 %v10729_v50, %v13706_v32  ;;  %v2949_v57 = vpop.f32.mrb[59].mxu1  ;;  %10757 = vmatmul.mubr.msk.bf16.gmra.mrb[52].mxu0 %vm3096_vm4, %v13782_v14  ;;  %v3074_v51 = vmax.f32 %v3042_v10, 0.0 }
 0x46d   :  { %v3041_v15 = vadd.f32 %v13706_v32, %v2949_v57  ;;  %v3072_v40 = vmax.f32 %v3040_v12, 0.0 }
 0x46e   :  { %v3075_v55 = vmax.f32 %v3043_v38, 0.0 }
 0x46f   :  { %v3073_v16 = vmax.f32 %v3041_v15, 0.0 }
 0x470   :  { %v3093_v17 = vpack.c.bf16 %v3075_v55, %v3074_v51 }
 0x471   :  { %v3092_v25 = vpack.c.bf16 %v3073_v16, %v3072_v40  ;;  %v10732_v24 = vpop.f32.mrb[60].mxu1  ;;  %v13796_v41 = vld [vmem:[#allocation3 + $0x70] sm:$0xff] }
 0x472   :  { %3113 = vst.msk [vmem:[#allocation3 + $0x80] sm:$0xff] %vm3096_vm4, %v3093_v17  ;;  %v3046_v30 = vadd.f32 %v10732_v24, %v13706_v32  ;;  %v2962_v26 = vpop.f32.mrb[61].mxu1  ;;  %v13790_v18 = vld [vmem:[#allocation3 + $0x68] sm:$0xff] }
 0x473   :  { %3112 = vst.msk [vmem:[#allocation3 + $0x78] sm:$0xff] %vm3096_vm4, %v3092_v25  ;;  %v3044_v31 = vadd.f32 %v13706_v32, %v2962_v26  ;;  %v10733_v13 = vpop.f32.mrb[62].mxu1  ;;  %10760 = vmatprep.mubr.msk.bf16.mxu0 %vm3096_vm4, %v13790_v18 }
 0x474   :  { %v3047_v19 = vadd.f32 %v10733_v13, %v13706_v32  ;;  %v2965_v29 = vpop.f32.mrb[63].mxu1  ;;  %10761 = vmatmul.mubr.msk.bf16.gmra.mrb[56].mxu0 %vm3096_vm4, %v13796_v41  ;;  %v3078_v54 = vmax.f32 %v3046_v30, 0.0 }
 0x475   :  { %v3045_v53 = vadd.f32 %v13706_v32, %v2965_v29  ;;  %v3076_v58 = vmax.f32 %v3044_v31, 0.0  ;;  %v12626_v32 = vld [vmem:[%s15182_s5 + $0x18] sm:$0xff]  }
 0x476   :  { %v3079_v56 = vmax.f32 %v3047_v19, 0.0 }
 0x477   :  { %v3077_v59 = vmax.f32 %v3045_v53, 0.0 }
 0x478   :  { %v3095_v42 = vpack.c.bf16 %v3079_v56, %v3078_v54 }
 0x479   :  { %v3094_v43 = vpack.c.bf16 %v3077_v59, %v3076_v58  ;;  %v13808_v21 = vld [vmem:[#allocation3 + $0x80] sm:$0xff] }
 0x47a   :  { %3115 = vst.msk [vmem:[#allocation3 + $0x90] sm:$0xff] %vm3096_vm4, %v3095_v42  ;;  %v13803_v60 = vld [vmem:[#allocation3 + $0x78] sm:$0xff] }
 0x47b   :  { %3114 = vst.msk [vmem:[#allocation3 + $0x88] sm:$0xff] %vm3096_vm4, %v3094_v43  ;;  %10764 = vmatprep.mubr.msk.bf16.mxu0 %vm3096_vm4, %v13803_v60 }
 0x47c   :  { %10765 = vmatmul.mubr.msk.bf16.gmra.mrb[60].mxu0 %vm3096_vm4, %v13808_v21 }
 0x47d   :  { %10770 = vmatprep.mubr.msk.bf16.mxu0 %vm3096_vm4, %v3119_v44 }
 0x484   :  { %10771 = vmatmul.mubr.msk.bf16.vlgmr.msra.gmra.mrb[32].mxu0 %vm3096_vm4, %v13686_v22  ;;  %v12627_v22 = vld [vmem:[%s15182_s5 + $0x20] sm:$0xff]  }
 0x485   :  { %10803 = vmatpush3.bf16.msra.mxu0 %v13700_v39  ;;  %10774 = vmatprep.mubr.msk.bf16.mxu0 %vm3096_vm4, %v13690_v35  ;;  %v12628_v39 = vld [vmem:[%s15182_s5 + $0x28] sm:$0xff]  }
 0x486   :  { %10836 = vmatprep.subr.bf16.mxu0 %v12626_v32 }
 0x48c   :  { %10775 = vmatmul.mubr.msk.bf16.gmra.mrb[36].mxu0 %vm3096_vm4, %v13720_v48 }
 0x48d   :  { %10778 = vmatprep.mubr.msk.bf16.mxu0 %vm3096_vm4, %v13726_v8 }
 0x494   :  { %10779 = vmatmul.mubr.msk.bf16.gmra.mrb[40].mxu0 %vm3096_vm4, %v13734_v52 }
 0x495   :  { %10782 = vmatprep.mubr.msk.bf16.mxu0 %vm3096_vm4, %v13740_v2 }
 0x49c   :  { %10783 = vmatmul.mubr.msk.bf16.gmra.mrb[44].mxu0 %vm3096_vm4, %v13748_v20 }
 0x49d   :  { %10786 = vmatprep.mubr.msk.bf16.mxu0 %vm3096_vm4, %v13754_v33 }
 0x4a4   :  { %10787 = vmatmul.mubr.msk.bf16.gmra.mrb[48].mxu0 %vm3096_vm4, %v13762_v45 }
 0x4a5   :  { %10790 = vmatprep.mubr.msk.bf16.mxu0 %vm3096_vm4, %v13768_v3 }
 0x4ac   :  { %10791 = vmatmul.mubr.msk.bf16.gmra.mrb[52].mxu0 %vm3096_vm4, %v13776_v11 }
 0x4ad   :  { %10794 = vmatprep.mubr.msk.bf16.mxu0 %vm3096_vm4, %v13782_v14 }
 0x4b4   :  { %10795 = vmatmul.mubr.msk.bf16.gmra.mrb[56].mxu0 %vm3096_vm4, %v13790_v18 }
 0x4b5   :  { %10798 = vmatprep.mubr.msk.bf16.mxu0 %vm3096_vm4, %v13796_v41 }
 0x4bc   :  { %10799 = vmatmul.mubr.msk.bf16.gmra.mrb[60].mxu0 %vm3096_vm4, %v13803_v60 }
 0x4bd   :  { %10804 = vmatprep.mubr.msk.bf16.mxu0 %vm3096_vm4, %v13690_v35  ;;  %v13880_v35 = vld [vmem:[#allocation3 + $0x88] sm:$0xff] }
 0x4c4   :  { %10805 = vmatmul.mubr.msk.bf16.vlgmr.msra.gmra.mrb[32].mxu0 %vm3096_vm4, %v13720_v48 }
 0x4c5   :  { %10808 = vmatprep.mubr.msk.bf16.mxu0 %vm3096_vm4, %v13726_v8  ;;  %10837 = vmatpush3.bf16.msra.mxu0 %v12626_v32 }
 0x4c6   :  { %10870 = vmatprep.subr.bf16.mxu0 %v12627_v22 }
 0x4cc   :  { %10809 = vmatmul.mubr.msk.bf16.gmra.mrb[36].mxu0 %vm3096_vm4, %v13734_v52 }
 0x4cd   :  { %10812 = vmatprep.mubr.msk.bf16.mxu0 %vm3096_vm4, %v13740_v2 }
 0x4d4   :  { %10813 = vmatmul.mubr.msk.bf16.gmra.mrb[40].mxu0 %vm3096_vm4, %v13748_v20 }
 0x4d5   :  { %10816 = vmatprep.mubr.msk.bf16.mxu0 %vm3096_vm4, %v13754_v33 }
 0x4dc   :  { %10817 = vmatmul.mubr.msk.bf16.gmra.mrb[44].mxu0 %vm3096_vm4, %v13762_v45 }
 0x4dd   :  { %10820 = vmatprep.mubr.msk.bf16.mxu0 %vm3096_vm4, %v13768_v3 }
 0x4e4   :  { %10821 = vmatmul.mubr.msk.bf16.gmra.mrb[48].mxu0 %vm3096_vm4, %v13776_v11 }
 0x4e5   :  { %10824 = vmatprep.mubr.msk.bf16.mxu0 %vm3096_vm4, %v13782_v14 }
 0x4ec   :  { %10825 = vmatmul.mubr.msk.bf16.gmra.mrb[52].mxu0 %vm3096_vm4, %v13790_v18 }
 0x4ed   :  { %10828 = vmatprep.mubr.msk.bf16.mxu0 %vm3096_vm4, %v13796_v41 }
 0x4f4   :  { %10829 = vmatmul.mubr.msk.bf16.gmra.mrb[56].mxu0 %vm3096_vm4, %v13803_v60 }
 0x4f5   :  { %10832 = vmatprep.mubr.msk.bf16.mxu0 %vm3096_vm4, %v13808_v21 }
 0x4fc   :  { %10833 = vmatmul.mubr.msk.bf16.gmra.mrb[60].mxu0 %vm3096_vm4, %v13880_v35 }
 0x4fd   :  { %10838 = vmatprep.mubr.msk.bf16.mxu0 %vm3096_vm4, %v13720_v48  ;;  %v3137_v48 = vld [vmem:[#allocation3 + $0x90] sm:$0xff] }
 0x504   :  { %10839 = vmatmul.mubr.msk.bf16.vlgmr.msra.gmra.mrb[32].mxu0 %vm3096_vm4, %v13726_v8 }
 0x505   :  { %10842 = vmatprep.mubr.msk.bf16.mxu0 %vm3096_vm4, %v13734_v52  ;;  %10871 = vmatpush3.bf16.msra.mxu0 %v12627_v22 }
 0x506   :  { %10904 = vmatprep.subr.bf16.mxu0 %v12628_v39 }
 0x50c   :  { %10843 = vmatmul.mubr.msk.bf16.gmra.mrb[36].mxu0 %vm3096_vm4, %v13740_v2 }
 0x50d   :  { %10846 = vmatprep.mubr.msk.bf16.mxu0 %vm3096_vm4, %v13748_v20 }
 0x514   :  { %10847 = vmatmul.mubr.msk.bf16.gmra.mrb[40].mxu0 %vm3096_vm4, %v13754_v33 }
 0x515   :  { %10850 = vmatprep.mubr.msk.bf16.mxu0 %vm3096_vm4, %v13762_v45 }
 0x51c   :  { %10851 = vmatmul.mubr.msk.bf16.gmra.mrb[44].mxu0 %vm3096_vm4, %v13768_v3 }
 0x51d   :  { %10854 = vmatprep.mubr.msk.bf16.mxu0 %vm3096_vm4, %v13776_v11 }
 0x524   :  { %10855 = vmatmul.mubr.msk.bf16.gmra.mrb[48].mxu0 %vm3096_vm4, %v13782_v14 }
 0x525   :  { %10858 = vmatprep.mubr.msk.bf16.mxu0 %vm3096_vm4, %v13790_v18 }
 0x52c   :  { %10859 = vmatmul.mubr.msk.bf16.gmra.mrb[52].mxu0 %vm3096_vm4, %v13796_v41 }
 0x52d   :  { %10862 = vmatprep.mubr.msk.bf16.mxu0 %vm3096_vm4, %v13803_v60 }
 0x534   :  { %10863 = vmatmul.mubr.msk.bf16.gmra.mrb[56].mxu0 %vm3096_vm4, %v13808_v21 }
 0x535   :  { %10866 = vmatprep.mubr.msk.bf16.mxu0 %vm3096_vm4, %v13880_v35 }
 0x53c   :  { %10867 = vmatmul.mubr.msk.bf16.gmra.mrb[60].mxu0 %vm3096_vm4, %v3137_v48 }
 0x53d   :  { %10872 = vmatprep.mubr.msk.bf16.mxu0 %vm3096_vm4, %v13726_v8  ;;  %v3138_v8 = vld [vmem:[#allocation3 + $0x98] sm:$0xff] }
 0x544   :  { %10873 = vmatmul.mubr.msk.bf16.vlgmr.msra.gmra.mrb[32].mxu0 %vm3096_vm4, %v13734_v52 }
 0x545   :  { %10876 = vmatprep.mubr.msk.bf16.mxu0 %vm3096_vm4, %v13740_v2  ;;  %10905 = vmatpush3.bf16.msra.mxu0 %v12628_v39 }
 0x546   :  { %10938 = vmatprep.subr.bf16.mxu0 %v12629_v61 }
 0x54c   :  { %10877 = vmatmul.mubr.msk.bf16.gmra.mrb[36].mxu0 %vm3096_vm4, %v13748_v20 }
 0x54d   :  { %10880 = vmatprep.mubr.msk.bf16.mxu0 %vm3096_vm4, %v13754_v33 }
 0x554   :  { %10881 = vmatmul.mubr.msk.bf16.gmra.mrb[40].mxu0 %vm3096_vm4, %v13762_v45 }
 0x555   :  { %10884 = vmatprep.mubr.msk.bf16.mxu0 %vm3096_vm4, %v13768_v3 }
 0x55c   :  { %10885 = vmatmul.mubr.msk.bf16.gmra.mrb[44].mxu0 %vm3096_vm4, %v13776_v11 }
 0x55d   :  { %10888 = vmatprep.mubr.msk.bf16.mxu0 %vm3096_vm4, %v13782_v14 }
 0x564   :  { %10889 = vmatmul.mubr.msk.bf16.gmra.mrb[48].mxu0 %vm3096_vm4, %v13790_v18 }
 0x565   :  { %10892 = vmatprep.mubr.msk.bf16.mxu0 %vm3096_vm4, %v13796_v41 }
 0x56c   :  { %10893 = vmatmul.mubr.msk.bf16.gmra.mrb[52].mxu0 %vm3096_vm4, %v13803_v60 }
 0x56d   :  { %10896 = vmatprep.mubr.msk.bf16.mxu0 %vm3096_vm4, %v13808_v21 }
 0x574   :  { %10897 = vmatmul.mubr.msk.bf16.gmra.mrb[56].mxu0 %vm3096_vm4, %v13880_v35 }
 0x575   :  { %10900 = vmatprep.mubr.msk.bf16.mxu0 %vm3096_vm4, %v3137_v48 }
 0x57c   :  { %10901 = vmatmul.mubr.msk.bf16.gmra.mrb[60].mxu0 %vm3096_vm4, %v3138_v8 }
 0x57d   :  { %10906 = vmatprep.mubr.msk.bf16.mxu0 %vm3096_vm4, %v13734_v52  ;;  %v3139_v52 = vld [vmem:[#allocation3 + $0xa0] sm:$0xff] }
 0x584   :  { %10907 = vmatmul.mubr.msk.bf16.vlgmr.msra.gmra.mrb[32].mxu0 %vm3096_vm4, %v13740_v2 }
 0x585   :  { %10910 = vmatprep.mubr.msk.bf16.mxu0 %vm3096_vm4, %v13748_v20  ;;  %10939 = vmatpush3.bf16.msra.mxu0 %v12629_v61 }
 0x58c   :  { %10911 = vmatmul.mubr.msk.bf16.gmra.mrb[36].mxu0 %vm3096_vm4, %v13754_v33 }
 0x58d   :  { %10914 = vmatprep.mubr.msk.bf16.mxu0 %vm3096_vm4, %v13762_v45 }
 0x594   :  { %10915 = vmatmul.mubr.msk.bf16.gmra.mrb[40].mxu0 %vm3096_vm4, %v13768_v3 }
 0x595   :  { %10918 = vmatprep.mubr.msk.bf16.mxu0 %vm3096_vm4, %v13776_v11 }
 0x59c   :  { %10919 = vmatmul.mubr.msk.bf16.gmra.mrb[44].mxu0 %vm3096_vm4, %v13782_v14 }
 0x59d   :  { %10922 = vmatprep.mubr.msk.bf16.mxu0 %vm3096_vm4, %v13790_v18 }
 0x5a4   :  { %10923 = vmatmul.mubr.msk.bf16.gmra.mrb[48].mxu0 %vm3096_vm4, %v13796_v41 }
 0x5a5   :  { %10926 = vmatprep.mubr.msk.bf16.mxu0 %vm3096_vm4, %v13803_v60 }
 0x5ac   :  { %10927 = vmatmul.mubr.msk.bf16.gmra.mrb[52].mxu0 %vm3096_vm4, %v13808_v21 }
 0x5ad   :  { %10930 = vmatprep.mubr.msk.bf16.mxu0 %vm3096_vm4, %v13880_v35 }
 0x5b4   :  { %10931 = vmatmul.mubr.msk.bf16.gmra.mrb[56].mxu0 %vm3096_vm4, %v3137_v48 }
 0x5b5   :  { %10934 = vmatprep.mubr.msk.bf16.mxu0 %vm3096_vm4, %v3138_v8 }
 0x5bc   :  { %10935 = vmatmul.mubr.msk.bf16.gmra.mrb[60].mxu0 %vm3096_vm4, %v3139_v52 }
 0x5bd   :  { %10940 = vmatprep.mubr.msk.bf16.mxu0 %vm3096_vm4, %v13740_v2  ;;  %v3140_v2 = vld [vmem:[#allocation3 + $0xa8] sm:$0xff] }
 0x5c4   :  { %10941 = vmatmul.mubr.msk.bf16.vlgmr.msra.gmra.mrb[32].mxu0 %vm3096_vm4, %v13748_v20  ;;  %v14028_v20 = vld [vmem:[#allocation4 + $0x8] sm:$0xff] }
 0x5c5   :  { %10944 = vmatprep.mubr.msk.bf16.mxu0 %vm3096_vm4, %v13754_v33  ;;  %10976 = vmatprep.mubr.msk.bf16.mxu1 %vm4637_vm5, %v14028_v20  ;;  %v14032_v33 = vld [vmem:[#allocation4 + $0x10] sm:$0xff] }
 0x5c6   :  { %10977 = vmatmul.mubr.msk.bf16.vlgmr.msra.gmra.mrb[64].mxu1 %vm4637_vm5, %v14032_v33 }
 0x5c7   :  { %11009 = vmatpush3.bf16.msra.mxu1 %v12632_v34 }
 0x5cc   :  { %10945 = vmatmul.mubr.msk.bf16.gmra.mrb[36].mxu0 %vm3096_vm4, %v13762_v45  ;;  %v12633_v45 = vld [vmem:[%s15184_s7 + $0x8] ss:$0 sps:$4 sm:$0xff]  }
 0x5cd   :  { %10948 = vmatprep.mubr.msk.bf16.mxu0 %vm3096_vm4, %v13768_v3  ;;  %12611 = vmatprep.subr.msk.bf16.mxu1 %vm1682_vm2, %v12633_v45  ;;  %v4937_v1 = vsel %vm1682_vm2, %v12633_v45, 0  ;;  %v14053_v3 = vld [vmem:[%s15183_s6] ss:$0 sm:$0xff] }
 0x5ce   :  { %11011 = vmatpush3.bf16.msra.mxu1 %v4937_v1 }
 0x5cf   :  { %11044 = vmatprep.subr.bf16.mxu1 %v14047_v36 }
 0x5d4   :  { %10949 = vmatmul.mubr.msk.bf16.gmra.mrb[40].mxu0 %vm3096_vm4, %v13776_v11 }
 0x5d5   :  { %10952 = vmatprep.mubr.msk.bf16.mxu0 %vm3096_vm4, %v13782_v14 }
 0x5dc   :  { %10953 = vmatmul.mubr.msk.bf16.gmra.mrb[44].mxu0 %vm3096_vm4, %v13790_v18 }
 0x5dd   :  { %10956 = vmatprep.mubr.msk.bf16.mxu0 %vm3096_vm4, %v13796_v41 }
 0x5e4   :  { %10957 = vmatmul.mubr.msk.bf16.gmra.mrb[48].mxu0 %vm3096_vm4, %v13803_v60 }
 0x5e5   :  { %10960 = vmatprep.mubr.msk.bf16.mxu0 %vm3096_vm4, %v13808_v21 }
 0x5ec   :  { %10961 = vmatmul.mubr.msk.bf16.gmra.mrb[52].mxu0 %vm3096_vm4, %v13880_v35 }
 0x5ed   :  { %10964 = vmatprep.mubr.msk.bf16.mxu0 %vm3096_vm4, %v3137_v48 }
 0x5f4   :  { %10965 = vmatmul.mubr.msk.bf16.gmra.mrb[56].mxu0 %vm3096_vm4, %v3138_v8 }
 0x5f5   :  { %10968 = vmatprep.mubr.msk.bf16.mxu0 %vm3096_vm4, %v3139_v52 }
 0x5fc   :  { %10969 = vmatmul.mubr.msk.bf16.gmra.mrb[60].mxu0 %vm3096_vm4, %v3140_v2 }
 0x697   :  { %v10942_v23 = vpop.f32.mrb[32].mxu0 }
 0x698   :  { %v4559_v4 = vadd.f32 %v10942_v23, %v14053_v3  ;;  %v4391_v27 = vpop.f32.mrb[33].mxu0 }
 0x699   :  { %v4557_v5 = vadd.f32 %v14053_v3, %v4391_v27  ;;  %v10943_v6 = vpop.f32.mrb[34].mxu0 }
 0x69a   :  { %v4560_v37 = vadd.f32 %v10943_v6, %v14053_v3  ;;  %v4394_v46 = vpop.f32.mrb[35].mxu0  ;;  %v4591_v49 = vmax.f32 %v4559_v4, 0.0 }
 0x69b   :  { %v4558_v7 = vadd.f32 %v14053_v3, %v4394_v46  ;;  %v4589_v10 = vmax.f32 %v4557_v5, 0.0 }
 0x69c   :  { %v4592_v9 = vmax.f32 %v4560_v37, 0.0 }
 0x69d   :  { %v4590_v28 = vmax.f32 %v4558_v7, 0.0 }
 0x69e   :  { %v4622_v11 = vpack.c.bf16 %v4592_v9, %v4591_v49 }
 0x69f   :  { %v4621_v12 = vpack.c.bf16 %v4590_v28, %v4589_v10  ;;  %v10946_v50 = vpop.f32.mrb[36].mxu0 }
 0x6a0   :  { %4642 = vst.msk [vmem:[#allocation4 + $0x20] sm:$0xff] %vm4637_vm5, %v4622_v11  ;;  %v4563_v14 = vadd.f32 %v10946_v50, %v14053_v3  ;;  %v4407_v38 = vpop.f32.mrb[37].mxu0 }
 0x6a1   :  { %4641 = vst.msk [vmem:[#allocation4 + $0x18] sm:$0xff] %vm4637_vm5, %v4621_v12  ;;  %v4561_v57 = vadd.f32 %v14053_v3, %v4407_v38  ;;  %v10947_v15 = vpop.f32.mrb[38].mxu0 }
 0x6a2   :  { %v4564_v51 = vadd.f32 %v10947_v15, %v14053_v3  ;;  %v4410_v55 = vpop.f32.mrb[39].mxu0  ;;  %v4595_v16 = vmax.f32 %v4563_v14, 0.0 }
 0x6a3   :  { %v4562_v40 = vadd.f32 %v14053_v3, %v4410_v55  ;;  %v4593_v25 = vmax.f32 %v4561_v57, 0.0 }
 0x6a4   :  { %v4596_v17 = vmax.f32 %v4564_v51, 0.0 }
 0x6a5   :  { %v4594_v24 = vmax.f32 %v4562_v40, 0.0 }
 0x6a6   :  { %v4624_v30 = vpack.c.bf16 %v4596_v17, %v4595_v16 }
 0x6a7   :  { %v4623_v26 = vpack.c.bf16 %v4594_v24, %v4593_v25  ;;  %v10950_v18 = vpop.f32.mrb[40].mxu0  ;;  %v14073_v53 = vld [vmem:[#allocation4 + $0x20] sm:$0xff] }
 0x6a8   :  { %4644 = vst.msk [vmem:[#allocation4 + $0x30] sm:$0xff] %vm4637_vm5, %v4624_v30  ;;  %v4567_v31 = vadd.f32 %v10950_v18, %v14053_v3  ;;  %v4423_v13 = vpop.f32.mrb[41].mxu0  ;;  %v14067_v41 = vld [vmem:[#allocation4 + $0x18] sm:$0xff] }
 0x6a9   :  { %4643 = vst.msk [vmem:[#allocation4 + $0x28] sm:$0xff] %vm4637_vm5, %v4623_v26  ;;  %v4565_v19 = vadd.f32 %v14053_v3, %v4423_v13  ;;  %v10951_v29 = vpop.f32.mrb[42].mxu0  ;;  %10980 = vmatprep.mubr.msk.bf16.mxu1 %vm4637_vm5, %v14067_v41 }
 0x6aa   :  { %v4568_v54 = vadd.f32 %v10951_v29, %v14053_v3  ;;  %v4426_v56 = vpop.f32.mrb[43].mxu0  ;;  %10981 = vmatmul.mubr.msk.bf16.gmra.mrb[68].mxu1 %vm4637_vm5, %v14073_v53  ;;  %v4599_v59 = vmax.f32 %v4567_v31, 0.0 }
 0x6ab   :  { %v4566_v58 = vadd.f32 %v14053_v3, %v4426_v56  ;;  %v4597_v43 = vmax.f32 %v4565_v19, 0.0 }
 0x6ac   :  { %v4600_v42 = vmax.f32 %v4568_v54, 0.0 }
 0x6ad   :  { %v4598_v60 = vmax.f32 %v4566_v58, 0.0 }
 0x6ae   :  { %v4626_v44 = vpack.c.bf16 %v4600_v42, %v4599_v59 }
 0x6af   :  { %v4625_v21 = vpack.c.bf16 %v4598_v60, %v4597_v43  ;;  %v10954_v32 = vpop.f32.mrb[44].mxu0  ;;  %v14087_v8 = vld [vmem:[#allocation4 + $0x30] sm:$0xff] }
 0x6b0   :  { %4646 = vst.msk [vmem:[#allocation4 + $0x40] sm:$0xff] %vm4637_vm5, %v4626_v44  ;;  %v4571_v22 = vadd.f32 %v10954_v32, %v14053_v3  ;;  %v4439_v35 = vpop.f32.mrb[45].mxu0  ;;  %v14081_v39 = vld [vmem:[#allocation4 + $0x28] sm:$0xff] }
 0x6b1   :  { %4645 = vst.msk [vmem:[#allocation4 + $0x38] sm:$0xff] %vm4637_vm5, %v4625_v21  ;;  %v4569_v48 = vadd.f32 %v14053_v3, %v4439_v35  ;;  %v10955_v61 = vpop.f32.mrb[46].mxu0  ;;  %10984 = vmatprep.mubr.msk.bf16.mxu1 %vm4637_vm5, %v14081_v39 }
 0x6b2   :  { %v4572_v62 = vadd.f32 %v10955_v61, %v14053_v3  ;;  %v4442_v63 = vpop.f32.mrb[47].mxu0  ;;  %10985 = vmatmul.mubr.msk.bf16.gmra.mrb[72].mxu1 %vm4637_vm5, %v14087_v8  ;;  %v4603_v52 = vmax.f32 %v4571_v22, 0.0 }
 0x6b3   :  { %v4570_v0 = vadd.f32 %v14053_v3, %v4442_v63  ;;  %v4601_v34 = vmax.f32 %v4569_v48, 0.0 }
 0x6b4   :  { %v4604_v2 = vmax.f32 %v4572_v62, 0.0 }
 0x6b5   :  { %v4602_v45 = vmax.f32 %v4570_v0, 0.0 }
 0x6b6   :  { %v4628_v1 = vpack.c.bf16 %v4604_v2, %v4603_v52 }
 0x6b7   :  { %v4627_v23 = vpack.c.bf16 %v4602_v45, %v4601_v34  ;;  %v10958_v4 = vpop.f32.mrb[48].mxu0  ;;  %v14101_v7 = vld [vmem:[#allocation4 + $0x40] sm:$0xff] }
 0x6b8   :  { %4648 = vst.msk [vmem:[#allocation4 + $0x50] sm:$0xff] %vm4637_vm5, %v4628_v1  ;;  %v4575_v27 = vadd.f32 %v10958_v4, %v14053_v3  ;;  %v4455_v5 = vpop.f32.mrb[49].mxu0  ;;  %v14095_v6 = vld [vmem:[#allocation4 + $0x38] sm:$0xff] }
 0x6b9   :  { %4647 = vst.msk [vmem:[#allocation4 + $0x48] sm:$0xff] %vm4637_vm5, %v4627_v23  ;;  %v4573_v37 = vadd.f32 %v14053_v3, %v4455_v5  ;;  %v10959_v46 = vpop.f32.mrb[50].mxu0  ;;  %10988 = vmatprep.mubr.msk.bf16.mxu1 %vm4637_vm5, %v14095_v6 }
 0x6ba   :  { %v4576_v49 = vadd.f32 %v10959_v46, %v14053_v3  ;;  %v4458_v9 = vpop.f32.mrb[51].mxu0  ;;  %10989 = vmatmul.mubr.msk.bf16.gmra.mrb[76].mxu1 %vm4637_vm5, %v14101_v7  ;;  %v4607_v28 = vmax.f32 %v4575_v27, 0.0 }
 0x6bb   :  { %v4574_v10 = vadd.f32 %v14053_v3, %v4458_v9  ;;  %v4605_v12 = vmax.f32 %v4573_v37, 0.0 }
 0x6bc   :  { %v4608_v11 = vmax.f32 %v4576_v49, 0.0 }
 0x6bd   :  { %v4606_v50 = vmax.f32 %v4574_v10, 0.0 }
 0x6be   :  { %v4630_v14 = vpack.c.bf16 %v4608_v11, %v4607_v28 }
 0x6bf   :  { %v4629_v38 = vpack.c.bf16 %v4606_v50, %v4605_v12  ;;  %v10962_v57 = vpop.f32.mrb[52].mxu0  ;;  %v14115_v17 = vld [vmem:[#allocation4 + $0x50] sm:$0xff]  ;;  %v4660_v12 = vld [vmem:[#allocation4] sm:$0xff] }
 0x6c0   :  { %4650 = vst.msk [vmem:[#allocation4 + $0x60] sm:$0xff] %vm4637_vm5, %v4630_v14  ;;  %v4579_v15 = vadd.f32 %v10962_v57, %v14053_v3  ;;  %v4471_v51 = vpop.f32.mrb[53].mxu0  ;;  %v14109_v55 = vld [vmem:[#allocation4 + $0x48] sm:$0xff]  ;;  %v12638_v57 = vld [vmem:[%s15184_s7 + $0x30] sm:$0xff]  }
 0x6c1   :  { %4649 = vst.msk [vmem:[#allocation4 + $0x58] sm:$0xff] %vm4637_vm5, %v4629_v38  ;;  %v4577_v40 = vadd.f32 %v14053_v3, %v4471_v51  ;;  %v10963_v16 = vpop.f32.mrb[54].mxu0  ;;  %10992 = vmatprep.mubr.msk.bf16.mxu1 %vm4637_vm5, %v14109_v55  ;;  %v12636_v38 = vld [vmem:[%s15184_s7 + $0x24] sm:$0xff]  }
 0x6c2   :  { %v4580_v25 = vadd.f32 %v10963_v16, %v14053_v3  ;;  %v4474_v24 = vpop.f32.mrb[55].mxu0  ;;  %10993 = vmatmul.mubr.msk.bf16.gmra.mrb[80].mxu1 %vm4637_vm5, %v14115_v17  ;;  %v4611_v26 = vmax.f32 %v4579_v15, 0.0  ;;  %v12639_v15 = vld [vmem:[%s15184_s7 + $0x38] ss:$0 sps:$4 sm:$0xff]   ;;  %v12641_v16 = vld [vmem:[%s15184_s7 + $0x44] ss:$0 sps:$4 sm:$0xff]  }
 0x6c3   :  { %v4578_v30 = vadd.f32 %v14053_v3, %v4474_v24  ;;  %v4609_v31 = vmax.f32 %v4577_v40, 0.0  ;;  %v5529_v51 = vsel %vm1682_vm2, %v12639_v15, 0  ;;  %v12640_v40 = vld [vmem:[%s15184_s7 + $0x3c] sm:$0xff]   ;;  %v12642_v24 = vld [vmem:[%s15184_s7 + $0x48] sm:$0xff]  }
 0x6c4   :  { %v4612_v18 = vmax.f32 %v4580_v25, 0.0  ;;  %v5737_v25 = vsel %vm1682_vm2, %v12641_v16, 0 }
 0x6c5   :  { %v4610_v13 = vmax.f32 %v4578_v30, 0.0  ;;  %v12644_v30 = vld [vmem:[%s15186_s9 + $0x10] sm:$0xff]  }
 0x6c6   :  { %v4632_v19 = vpack.c.bf16 %v4612_v18, %v4611_v26  ;;  %v12645_v26 = vld [vmem:[%s15186_s9 + $0x18] sm:$0xff]   ;;  %11224 = vmatprep.subr.bf16.mxu0 %v12644_v30  ;;  %v12643_v18 = vld [vmem:[%s15184_s7 + $0x50] ss:$0 sps:$4 sm:$0xff]  }
 0x6c7   :  { %v4631_v29 = vpack.c.bf16 %v4610_v13, %v4609_v31  ;;  %v10966_v54 = vpop.f32.mrb[56].mxu0  ;;  %v14129_v60 = vld [vmem:[#allocation4 + $0x60] sm:$0xff]  ;;  %11225 = vmatpush3.bf16.msra.mxu0 %v12644_v30  ;;  %v5945_v31 = vsel %vm1682_vm2, %v12643_v18, 0 }
 0x6c8   :  { %4652 = vst.msk [vmem:[#allocation4 + $0x70] sm:$0xff] %vm4637_vm5, %v4632_v19  ;;  %v4583_v56 = vadd.f32 %v10966_v54, %v14053_v3  ;;  %v4487_v58 = vpop.f32.mrb[57].mxu0  ;;  %v14123_v59 = vld [vmem:[#allocation4 + $0x58] sm:$0xff]  ;;  %11226 = vmatprep.subr.bf16.mxu0 %v12645_v26  ;;  %v14427_v13 = vld [vmem:[%s15185_s8] ss:$0 sm:$0xff] }
 0x6c9   :  { %4651 = vst.msk [vmem:[#allocation4 + $0x68] sm:$0xff] %vm4637_vm5, %v4631_v29  ;;  %v4581_v42 = vadd.f32 %v14053_v3, %v4487_v58  ;;  %v10967_v43 = vpop.f32.mrb[58].mxu0  ;;  %10996 = vmatprep.mubr.msk.bf16.mxu1 %vm4637_vm5, %v14123_v59 }
 0x6ca   :  { %v4584_v44 = vadd.f32 %v10967_v43, %v14053_v3  ;;  %v4490_v21 = vpop.f32.mrb[59].mxu0  ;;  %10997 = vmatmul.mubr.msk.bf16.gmra.mrb[84].mxu1 %vm4637_vm5, %v14129_v60  ;;  %v4615_v22 = vmax.f32 %v4583_v56, 0.0 }
 0x6cb   :  { %v4582_v32 = vadd.f32 %v14053_v3, %v4490_v21  ;;  %v4613_v48 = vmax.f32 %v4581_v42, 0.0  ;;  %11227 = vmatpush3.bf16.msra.mxu0 %v12645_v26 }
 0x6cc   :  { %v4616_v35 = vmax.f32 %v4584_v44, 0.0 }
 0x6cd   :  { %v4614_v61 = vmax.f32 %v4582_v32, 0.0 }
 0x6ce   :  { %v4634_v62 = vpack.c.bf16 %v4616_v35, %v4615_v22 }
 0x6cf   :  { %v4633_v63 = vpack.c.bf16 %v4614_v61, %v4613_v48  ;;  %v10970_v0 = vpop.f32.mrb[60].mxu0  ;;  %v14143_v23 = vld [vmem:[#allocation4 + $0x70] sm:$0xff] }
 0x6d0   :  { %4654 = vst.msk [vmem:[#allocation4 + $0x80] sm:$0xff] %vm4637_vm5, %v4634_v62  ;;  %v4587_v52 = vadd.f32 %v10970_v0, %v14053_v3  ;;  %v4503_v2 = vpop.f32.mrb[61].mxu0  ;;  %v14137_v34 = vld [vmem:[#allocation4 + $0x68] sm:$0xff] }
 0x6d1   :  { %4653 = vst.msk [vmem:[#allocation4 + $0x78] sm:$0xff] %vm4637_vm5, %v4633_v63  ;;  %v4585_v45 = vadd.f32 %v14053_v3, %v4503_v2  ;;  %v10971_v1 = vpop.f32.mrb[62].mxu0  ;;  %11000 = vmatprep.mubr.msk.bf16.mxu1 %vm4637_vm5, %v14137_v34 }
 0x6d2   :  { %v4588_v4 = vadd.f32 %v10971_v1, %v14053_v3  ;;  %v4506_v27 = vpop.f32.mrb[63].mxu0  ;;  %11001 = vmatmul.mubr.msk.bf16.gmra.mrb[88].mxu1 %vm4637_vm5, %v14143_v23  ;;  %v4619_v37 = vmax.f32 %v4587_v52, 0.0 }
 0x6d3   :  { %v4586_v5 = vadd.f32 %v14053_v3, %v4506_v27  ;;  %v4617_v49 = vmax.f32 %v4585_v45, 0.0  ;;  %v12635_v3 = vld [vmem:[%s15184_s7 + $0x20] ss:$0 sps:$4 sm:$0xff]  }
 0x6d4   :  { %v4620_v46 = vmax.f32 %v4588_v4, 0.0  ;;  %v5113_v14 = vsel %vm1682_vm2, %v12635_v3, 0 }
 0x6d5   :  { %v4618_v9 = vmax.f32 %v4586_v5, 0.0 }
 0x6d6   :  { %v4636_v10 = vpack.c.bf16 %v4620_v46, %v4619_v37 }
 0x6d7   :  { %v4635_v28 = vpack.c.bf16 %v4618_v9, %v4617_v49  ;;  %v14155_v50 = vld [vmem:[#allocation4 + $0x80] sm:$0xff] }
 0x6d8   :  { %4656 = vst.msk [vmem:[#allocation4 + $0x90] sm:$0xff] %vm4637_vm5, %v4636_v10  ;;  %v14150_v11 = vld [vmem:[#allocation4 + $0x78] sm:$0xff] }
 0x6d9   :  { %4655 = vst.msk [vmem:[#allocation4 + $0x88] sm:$0xff] %vm4637_vm5, %v4635_v28  ;;  %11004 = vmatprep.mubr.msk.bf16.mxu1 %vm4637_vm5, %v14150_v11 }
 0x6da   :  { %11005 = vmatmul.mubr.msk.bf16.gmra.mrb[92].mxu1 %vm4637_vm5, %v14155_v50 }
 0x6db   :  { %11012 = vmatprep.mubr.msk.bf16.mxu1 %vm4637_vm5, %v4660_v12 }
 0x6e2   :  { %11013 = vmatmul.mubr.msk.bf16.vlgmr.msra.gmra.mrb[64].mxu1 %vm4637_vm5, %v14028_v20  ;;  %v12637_v20 = vld [vmem:[%s15184_s7 + $0x2c] ss:$0 sps:$4 sm:$0xff]  }
 0x6e3   :  { %11045 = vmatpush3.bf16.msra.mxu1 %v14047_v36  ;;  %11016 = vmatprep.mubr.msk.bf16.mxu1 %vm4637_vm5, %v14032_v33  ;;  %v5321_v36 = vsel %vm1682_vm2, %v12637_v20, 0 }
 0x6e4   :  { %12612 = vmatprep.subr.msk.bf16.mxu1 %vm1682_vm2, %v12635_v3 }
 0x6e7   :  { %11047 = vmatpush3.bf16.msra.mxu1 %v5113_v14 }
 0x6e8   :  { %11080 = vmatprep.subr.bf16.mxu1 %v12636_v38 }
 0x6ea   :  { %11017 = vmatmul.mubr.msk.bf16.gmra.mrb[68].mxu1 %vm4637_vm5, %v14067_v41 }
 0x6eb   :  { %11020 = vmatprep.mubr.msk.bf16.mxu1 %vm4637_vm5, %v14073_v53 }
 0x6f2   :  { %11021 = vmatmul.mubr.msk.bf16.gmra.mrb[72].mxu1 %vm4637_vm5, %v14081_v39 }
 0x6f3   :  { %11024 = vmatprep.mubr.msk.bf16.mxu1 %vm4637_vm5, %v14087_v8 }
 0x6fa   :  { %11025 = vmatmul.mubr.msk.bf16.gmra.mrb[76].mxu1 %vm4637_vm5, %v14095_v6 }
 0x6fb   :  { %11028 = vmatprep.mubr.msk.bf16.mxu1 %vm4637_vm5, %v14101_v7 }
 0x702   :  { %11029 = vmatmul.mubr.msk.bf16.gmra.mrb[80].mxu1 %vm4637_vm5, %v14109_v55 }
 0x703   :  { %11032 = vmatprep.mubr.msk.bf16.mxu1 %vm4637_vm5, %v14115_v17 }
 0x70a   :  { %11033 = vmatmul.mubr.msk.bf16.gmra.mrb[84].mxu1 %vm4637_vm5, %v14123_v59 }
 0x70b   :  { %11036 = vmatprep.mubr.msk.bf16.mxu1 %vm4637_vm5, %v14129_v60 }
 0x712   :  { %11037 = vmatmul.mubr.msk.bf16.gmra.mrb[88].mxu1 %vm4637_vm5, %v14137_v34 }
 0x713   :  { %11040 = vmatprep.mubr.msk.bf16.mxu1 %vm4637_vm5, %v14143_v23 }
 0x71a   :  { %11041 = vmatmul.mubr.msk.bf16.gmra.mrb[92].mxu1 %vm4637_vm5, %v14150_v11 }
 0x71b   :  { %11048 = vmatprep.mubr.msk.bf16.mxu1 %vm4637_vm5, %v14032_v33  ;;  %v14237_v33 = vld [vmem:[#allocation4 + $0x88] sm:$0xff] }
 0x722   :  { %11049 = vmatmul.mubr.msk.bf16.vlgmr.msra.gmra.mrb[64].mxu1 %vm4637_vm5, %v14067_v41 }
 0x723   :  { %11052 = vmatprep.mubr.msk.bf16.mxu1 %vm4637_vm5, %v14073_v53  ;;  %11081 = vmatpush3.bf16.msra.mxu1 %v12636_v38 }
 0x724   :  { %12613 = vmatprep.subr.msk.bf16.mxu1 %vm1682_vm2, %v12637_v20 }
 0x727   :  { %11083 = vmatpush3.bf16.msra.mxu1 %v5321_v36 }
 0x728   :  { %11116 = vmatprep.subr.bf16.mxu1 %v12638_v57 }
 0x72a   :  { %11053 = vmatmul.mubr.msk.bf16.gmra.mrb[68].mxu1 %vm4637_vm5, %v14081_v39 }
 0x72b   :  { %11056 = vmatprep.mubr.msk.bf16.mxu1 %vm4637_vm5, %v14087_v8 }
 0x732   :  { %11057 = vmatmul.mubr.msk.bf16.gmra.mrb[72].mxu1 %vm4637_vm5, %v14095_v6 }
 0x733   :  { %11060 = vmatprep.mubr.msk.bf16.mxu1 %vm4637_vm5, %v14101_v7 }
 0x73a   :  { %11061 = vmatmul.mubr.msk.bf16.gmra.mrb[76].mxu1 %vm4637_vm5, %v14109_v55 }
 0x73b   :  { %11064 = vmatprep.mubr.msk.bf16.mxu1 %vm4637_vm5, %v14115_v17 }
 0x742   :  { %11065 = vmatmul.mubr.msk.bf16.gmra.mrb[80].mxu1 %vm4637_vm5, %v14123_v59 }
 0x743   :  { %11068 = vmatprep.mubr.msk.bf16.mxu1 %vm4637_vm5, %v14129_v60 }
 0x74a   :  { %11069 = vmatmul.mubr.msk.bf16.gmra.mrb[84].mxu1 %vm4637_vm5, %v14137_v34 }
 0x74b   :  { %11072 = vmatprep.mubr.msk.bf16.mxu1 %vm4637_vm5, %v14143_v23 }
 0x752   :  { %11073 = vmatmul.mubr.msk.bf16.gmra.mrb[88].mxu1 %vm4637_vm5, %v14150_v11 }
 0x753   :  { %11076 = vmatprep.mubr.msk.bf16.mxu1 %vm4637_vm5, %v14155_v50 }
 0x75a   :  { %11077 = vmatmul.mubr.msk.bf16.gmra.mrb[92].mxu1 %vm4637_vm5, %v14237_v33 }
 0x75b   :  { %11084 = vmatprep.mubr.msk.bf16.mxu1 %vm4637_vm5, %v14067_v41  ;;  %v14279_v41 = vld [vmem:[#allocation4 + $0x90] sm:$0xff] }
 0x762   :  { %11085 = vmatmul.mubr.msk.bf16.vlgmr.msra.gmra.mrb[64].mxu1 %vm4637_vm5, %v14073_v53 }
 0x763   :  { %11088 = vmatprep.mubr.msk.bf16.mxu1 %vm4637_vm5, %v14081_v39  ;;  %11117 = vmatpush3.bf16.msra.mxu1 %v12638_v57 }
 0x764   :  { %12614 = vmatprep.subr.msk.bf16.mxu1 %vm1682_vm2, %v12639_v15 }
 0x767   :  { %11119 = vmatpush3.bf16.msra.mxu1 %v5529_v51 }
 0x768   :  { %11152 = vmatprep.subr.bf16.mxu1 %v12640_v40 }
 0x76a   :  { %11089 = vmatmul.mubr.msk.bf16.gmra.mrb[68].mxu1 %vm4637_vm5, %v14087_v8 }
 0x76b   :  { %11092 = vmatprep.mubr.msk.bf16.mxu1 %vm4637_vm5, %v14095_v6 }
 0x772   :  { %11093 = vmatmul.mubr.msk.bf16.gmra.mrb[72].mxu1 %vm4637_vm5, %v14101_v7 }
 0x773   :  { %11096 = vmatprep.mubr.msk.bf16.mxu1 %vm4637_vm5, %v14109_v55 }
 0x77a   :  { %11097 = vmatmul.mubr.msk.bf16.gmra.mrb[76].mxu1 %vm4637_vm5, %v14115_v17 }
 0x77b   :  { %11100 = vmatprep.mubr.msk.bf16.mxu1 %vm4637_vm5, %v14123_v59 }
 0x782   :  { %11101 = vmatmul.mubr.msk.bf16.gmra.mrb[80].mxu1 %vm4637_vm5, %v14129_v60 }
 0x783   :  { %11104 = vmatprep.mubr.msk.bf16.mxu1 %vm4637_vm5, %v14137_v34 }
 0x78a   :  { %11105 = vmatmul.mubr.msk.bf16.gmra.mrb[84].mxu1 %vm4637_vm5, %v14143_v23 }
 0x78b   :  { %11108 = vmatprep.mubr.msk.bf16.mxu1 %vm4637_vm5, %v14150_v11 }
 0x792   :  { %11109 = vmatmul.mubr.msk.bf16.gmra.mrb[88].mxu1 %vm4637_vm5, %v14155_v50 }
 0x793   :  { %11112 = vmatprep.mubr.msk.bf16.mxu1 %vm4637_vm5, %v14237_v33 }
 0x79a   :  { %11113 = vmatmul.mubr.msk.bf16.gmra.mrb[92].mxu1 %vm4637_vm5, %v14279_v41 }
 0x79b   :  { %11120 = vmatprep.mubr.msk.bf16.mxu1 %vm4637_vm5, %v14073_v53  ;;  %v4679_v53 = vld [vmem:[#allocation4 + $0x98] sm:$0xff] }
 0x7a2   :  { %11121 = vmatmul.mubr.msk.bf16.vlgmr.msra.gmra.mrb[64].mxu1 %vm4637_vm5, %v14081_v39 }
 0x7a3   :  { %11124 = vmatprep.mubr.msk.bf16.mxu1 %vm4637_vm5, %v14087_v8  ;;  %11153 = vmatpush3.bf16.msra.mxu1 %v12640_v40 }
 0x7a4   :  { %12615 = vmatprep.subr.msk.bf16.mxu1 %vm1682_vm2, %v12641_v16 }
 0x7a7   :  { %11155 = vmatpush3.bf16.msra.mxu1 %v5737_v25 }
 0x7a8   :  { %11188 = vmatprep.subr.bf16.mxu1 %v12642_v24 }
 0x7aa   :  { %11125 = vmatmul.mubr.msk.bf16.gmra.mrb[68].mxu1 %vm4637_vm5, %v14095_v6 }
 0x7ab   :  { %11128 = vmatprep.mubr.msk.bf16.mxu1 %vm4637_vm5, %v14101_v7 }
 0x7b2   :  { %11129 = vmatmul.mubr.msk.bf16.gmra.mrb[72].mxu1 %vm4637_vm5, %v14109_v55 }
 0x7b3   :  { %11132 = vmatprep.mubr.msk.bf16.mxu1 %vm4637_vm5, %v14115_v17 }
 0x7ba   :  { %11133 = vmatmul.mubr.msk.bf16.gmra.mrb[76].mxu1 %vm4637_vm5, %v14123_v59 }
 0x7bb   :  { %11136 = vmatprep.mubr.msk.bf16.mxu1 %vm4637_vm5, %v14129_v60 }
 0x7c2   :  { %11137 = vmatmul.mubr.msk.bf16.gmra.mrb[80].mxu1 %vm4637_vm5, %v14137_v34 }
 0x7c3   :  { %11140 = vmatprep.mubr.msk.bf16.mxu1 %vm4637_vm5, %v14143_v23 }
 0x7ca   :  { %11141 = vmatmul.mubr.msk.bf16.gmra.mrb[84].mxu1 %vm4637_vm5, %v14150_v11 }
 0x7cb   :  { %11144 = vmatprep.mubr.msk.bf16.mxu1 %vm4637_vm5, %v14155_v50 }
 0x7d2   :  { %11145 = vmatmul.mubr.msk.bf16.gmra.mrb[88].mxu1 %vm4637_vm5, %v14237_v33 }
 0x7d3   :  { %11148 = vmatprep.mubr.msk.bf16.mxu1 %vm4637_vm5, %v14279_v41 }
 0x7da   :  { %11149 = vmatmul.mubr.msk.bf16.gmra.mrb[92].mxu1 %vm4637_vm5, %v4679_v53 }
 0x7db   :  { %11156 = vmatprep.mubr.msk.bf16.mxu1 %vm4637_vm5, %v14081_v39  ;;  %v4680_v39 = vld [vmem:[#allocation4 + $0xa0] sm:$0xff] }
 0x7e2   :  { %11157 = vmatmul.mubr.msk.bf16.vlgmr.msra.gmra.mrb[64].mxu1 %vm4637_vm5, %v14087_v8 }
 0x7e3   :  { %11160 = vmatprep.mubr.msk.bf16.mxu1 %vm4637_vm5, %v14095_v6  ;;  %11189 = vmatpush3.bf16.msra.mxu1 %v12642_v24 }
 0x7e4   :  { %12616 = vmatprep.subr.msk.bf16.mxu1 %vm1682_vm2, %v12643_v18 }
 0x7e7   :  { %11191 = vmatpush3.bf16.msra.mxu1 %v5945_v31 }
 0x7ea   :  { %11161 = vmatmul.mubr.msk.bf16.gmra.mrb[68].mxu1 %vm4637_vm5, %v14101_v7 }
 0x7eb   :  { %11164 = vmatprep.mubr.msk.bf16.mxu1 %vm4637_vm5, %v14109_v55 }
 0x7f2   :  { %11165 = vmatmul.mubr.msk.bf16.gmra.mrb[72].mxu1 %vm4637_vm5, %v14115_v17 }
 0x7f3   :  { %11168 = vmatprep.mubr.msk.bf16.mxu1 %vm4637_vm5, %v14123_v59 }
 0x7fa   :  { %11169 = vmatmul.mubr.msk.bf16.gmra.mrb[76].mxu1 %vm4637_vm5, %v14129_v60 }
 0x7fb   :  { %11172 = vmatprep.mubr.msk.bf16.mxu1 %vm4637_vm5, %v14137_v34 }
 0x802   :  { %11173 = vmatmul.mubr.msk.bf16.gmra.mrb[80].mxu1 %vm4637_vm5, %v14143_v23 }
 0x803   :  { %11176 = vmatprep.mubr.msk.bf16.mxu1 %vm4637_vm5, %v14150_v11 }
 0x80a   :  { %11177 = vmatmul.mubr.msk.bf16.gmra.mrb[84].mxu1 %vm4637_vm5, %v14155_v50 }
 0x80b   :  { %11180 = vmatprep.mubr.msk.bf16.mxu1 %vm4637_vm5, %v14237_v33 }
 0x812   :  { %11181 = vmatmul.mubr.msk.bf16.gmra.mrb[88].mxu1 %vm4637_vm5, %v14279_v41 }
 0x813   :  { %11184 = vmatprep.mubr.msk.bf16.mxu1 %vm4637_vm5, %v4679_v53 }
 0x81a   :  { %11185 = vmatmul.mubr.msk.bf16.gmra.mrb[92].mxu1 %vm4637_vm5, %v4680_v39 }
 0x81b   :  { %11192 = vmatprep.mubr.msk.bf16.mxu1 %vm4637_vm5, %v14087_v8  ;;  %v4681_v8 = vld [vmem:[#allocation4 + $0xa8] sm:$0xff] }
 0x822   :  { %11193 = vmatmul.mubr.msk.bf16.vlgmr.msra.gmra.mrb[64].mxu1 %vm4637_vm5, %v14095_v6  ;;  %v14404_v6 = vld [vmem:[#allocation5 + $0x8] sm:$0xff] }
 0x823   :  { %11196 = vmatprep.mubr.msk.bf16.mxu1 %vm4637_vm5, %v14101_v7  ;;  %11228 = vmatprep.mubr.msk.bf16.mxu0 %vm6227_vm6, %v14404_v6  ;;  %v14408_v7 = vld [vmem:[#allocation5 + $0x10] sm:$0xff] }
 0x824   :  { %11229 = vmatmul.mubr.msk.bf16.vlgmr.msra.gmra.mrb[64].mxu0 %vm6227_vm6, %v14408_v7 }
 0x82a   :  { %11197 = vmatmul.mubr.msk.bf16.gmra.mrb[68].mxu1 %vm4637_vm5, %v14109_v55  ;;  %v12646_v55 = vld [vmem:[%s15186_s9] sm:$0xff]  }
 0x82b   :  { %11200 = vmatprep.mubr.msk.bf16.mxu1 %vm4637_vm5, %v14115_v17  ;;  %11260 = vmatprep.subr.bf16.mxu0 %v12646_v55  ;;  %v14421_v17 = vld [vmem:[%s15186_s9 + $0x20] sm:$0xff]  }
 0x82c   :  { %11261 = vmatpush3.bf16.msra.mxu0 %v12646_v55 }
 0x82d   :  { %11262 = vmatprep.subr.bf16.mxu0 %v12647_v47 }
 0x830   :  { %11263 = vmatpush3.bf16.msra.mxu0 %v12647_v47 }
 0x831   :  { %11296 = vmatprep.subr.bf16.mxu0 %v14421_v17 }
 0x832   :  { %11201 = vmatmul.mubr.msk.bf16.gmra.mrb[72].mxu1 %vm4637_vm5, %v14123_v59 }
 0x833   :  { %11204 = vmatprep.mubr.msk.bf16.mxu1 %vm4637_vm5, %v14129_v60 }
 0x83a   :  { %11205 = vmatmul.mubr.msk.bf16.gmra.mrb[76].mxu1 %vm4637_vm5, %v14137_v34 }
 0x83b   :  { %11208 = vmatprep.mubr.msk.bf16.mxu1 %vm4637_vm5, %v14143_v23 }
 0x842   :  { %11209 = vmatmul.mubr.msk.bf16.gmra.mrb[80].mxu1 %vm4637_vm5, %v14150_v11 }
 0x843   :  { %11212 = vmatprep.mubr.msk.bf16.mxu1 %vm4637_vm5, %v14155_v50 }
 0x84a   :  { %11213 = vmatmul.mubr.msk.bf16.gmra.mrb[84].mxu1 %vm4637_vm5, %v14237_v33 }
 0x84b   :  { %11216 = vmatprep.mubr.msk.bf16.mxu1 %vm4637_vm5, %v14279_v41 }
 0x852   :  { %11217 = vmatmul.mubr.msk.bf16.gmra.mrb[88].mxu1 %vm4637_vm5, %v4679_v53 }
 0x853   :  { %11220 = vmatprep.mubr.msk.bf16.mxu1 %vm4637_vm5, %v4680_v39 }
 0x85a   :  { %11221 = vmatmul.mubr.msk.bf16.gmra.mrb[92].mxu1 %vm4637_vm5, %v4681_v8 }
 0x8f5   :  { %v11194_v19 = vpop.f32.mrb[64].mxu1 }
 0x8f6   :  { %v6149_v29 = vadd.f32 %v11194_v19, %v14427_v13  ;;  %v5981_v54 = vpop.f32.mrb[65].mxu1 }
 0x8f7   :  { %v6147_v56 = vadd.f32 %v14427_v13, %v5981_v54  ;;  %v11195_v58 = vpop.f32.mrb[66].mxu1 }
 0x8f8   :  { %v6150_v59 = vadd.f32 %v11195_v58, %v14427_v13  ;;  %v5984_v42 = vpop.f32.mrb[67].mxu1  ;;  %v6181_v60 = vmax.f32 %v6149_v29, 0.0 }
 0x8f9   :  { %v6148_v43 = vadd.f32 %v14427_v13, %v5984_v42  ;;  %v6179_v21 = vmax.f32 %v6147_v56, 0.0 }
 0x8fa   :  { %v6182_v44 = vmax.f32 %v6150_v59, 0.0 }
 0x8fb   :  { %v6180_v32 = vmax.f32 %v6148_v43, 0.0 }
 0x8fc   :  { %v6212_v22 = vpack.c.bf16 %v6182_v44, %v6181_v60 }
 0x8fd   :  { %v6211_v35 = vpack.c.bf16 %v6180_v32, %v6179_v21  ;;  %v11198_v48 = vpop.f32.mrb[68].mxu1 }
 0x8fe   :  { %6232 = vst.msk [vmem:[#allocation5 + $0x20] sm:$0xff] %vm6227_vm6, %v6212_v22  ;;  %v6153_v61 = vadd.f32 %v11198_v48, %v14427_v13  ;;  %v5997_v62 = vpop.f32.mrb[69].mxu1 }
 0x8ff   :  { %6231 = vst.msk [vmem:[#allocation5 + $0x18] sm:$0xff] %vm6227_vm6, %v6211_v35  ;;  %v6151_v63 = vadd.f32 %v14427_v13, %v5997_v62  ;;  %v11199_v0 = vpop.f32.mrb[70].mxu1 }
 0x900   :  { %v6154_v52 = vadd.f32 %v11199_v0, %v14427_v13  ;;  %v6000_v2 = vpop.f32.mrb[71].mxu1  ;;  %v6185_v45 = vmax.f32 %v6153_v61, 0.0 }
 0x901   :  { %v6152_v34 = vadd.f32 %v14427_v13, %v6000_v2  ;;  %v6183_v23 = vmax.f32 %v6151_v63, 0.0 }
 0x902   :  { %v6186_v1 = vmax.f32 %v6154_v52, 0.0 }
 0x903   :  { %v6184_v4 = vmax.f32 %v6152_v34, 0.0 }
 0x904   :  { %v6214_v27 = vpack.c.bf16 %v6186_v1, %v6185_v45 }
 0x905   :  { %v6213_v5 = vpack.c.bf16 %v6184_v4, %v6183_v23  ;;  %v11202_v37 = vpop.f32.mrb[72].mxu1  ;;  %v14447_v11 = vld [vmem:[#allocation5 + $0x20] sm:$0xff] }
 0x906   :  { %6234 = vst.msk [vmem:[#allocation5 + $0x30] sm:$0xff] %vm6227_vm6, %v6214_v27  ;;  %v6157_v46 = vadd.f32 %v11202_v37, %v14427_v13  ;;  %v6013_v49 = vpop.f32.mrb[73].mxu1  ;;  %v14441_v9 = vld [vmem:[#allocation5 + $0x18] sm:$0xff] }
 0x907   :  { %6233 = vst.msk [vmem:[#allocation5 + $0x28] sm:$0xff] %vm6227_vm6, %v6213_v5  ;;  %v6155_v10 = vadd.f32 %v14427_v13, %v6013_v49  ;;  %v11203_v28 = vpop.f32.mrb[74].mxu1  ;;  %11232 = vmatprep.mubr.msk.bf16.mxu0 %vm6227_vm6, %v14441_v9 }
 0x908   :  { %v6158_v12 = vadd.f32 %v11203_v28, %v14427_v13  ;;  %v6016_v50 = vpop.f32.mrb[75].mxu1  ;;  %11233 = vmatmul.mubr.msk.bf16.gmra.mrb[68].mxu0 %vm6227_vm6, %v14447_v11  ;;  %v6189_v14 = vmax.f32 %v6157_v46, 0.0 }
 0x909   :  { %v6156_v3 = vadd.f32 %v14427_v13, %v6016_v50  ;;  %v6187_v20 = vmax.f32 %v6155_v10, 0.0 }
 0x90a   :  { %v6190_v38 = vmax.f32 %v6158_v12, 0.0 }
 0x90b   :  { %v6188_v36 = vmax.f32 %v6156_v3, 0.0 }
 0x90c   :  { %v6216_v57 = vpack.c.bf16 %v6190_v38, %v6189_v14 }
 0x90d   :  { %v6215_v33 = vpack.c.bf16 %v6188_v36, %v6187_v20  ;;  %v11206_v15 = vpop.f32.mrb[76].mxu1  ;;  %v14461_v24 = vld [vmem:[#allocation5 + $0x30] sm:$0xff] }
 0x90e   :  { %6236 = vst.msk [vmem:[#allocation5 + $0x40] sm:$0xff] %vm6227_vm6, %v6216_v57  ;;  %v6161_v51 = vadd.f32 %v11206_v15, %v14427_v13  ;;  %v6029_v40 = vpop.f32.mrb[77].mxu1  ;;  %v14455_v41 = vld [vmem:[#allocation5 + $0x28] sm:$0xff] }
 0x90f   :  { %6235 = vst.msk [vmem:[#allocation5 + $0x38] sm:$0xff] %vm6227_vm6, %v6215_v33  ;;  %v6159_v16 = vadd.f32 %v14427_v13, %v6029_v40  ;;  %v11207_v25 = vpop.f32.mrb[78].mxu1  ;;  %11236 = vmatprep.mubr.msk.bf16.mxu0 %vm6227_vm6, %v14455_v41 }
 0x910   :  { %v6162_v53 = vadd.f32 %v11207_v25, %v14427_v13  ;;  %v6032_v30 = vpop.f32.mrb[79].mxu1  ;;  %11237 = vmatmul.mubr.msk.bf16.gmra.mrb[72].mxu0 %vm6227_vm6, %v14461_v24  ;;  %v6193_v18 = vmax.f32 %v6161_v51, 0.0 }
 0x911   :  { %v6160_v26 = vadd.f32 %v14427_v13, %v6032_v30  ;;  %v6191_v39 = vmax.f32 %v6159_v16, 0.0 }
 0x912   :  { %v6194_v31 = vmax.f32 %v6162_v53, 0.0 }
 0x913   :  { %v6192_v8 = vmax.f32 %v6160_v26, 0.0 }
 0x914   :  { %v6218_v55 = vpack.c.bf16 %v6194_v31, %v6193_v18 }
 0x915   :  { %v6217_v47 = vpack.c.bf16 %v6192_v8, %v6191_v39  ;;  %v11210_v19 = vpop.f32.mrb[80].mxu1  ;;  %v14475_v42 = vld [vmem:[#allocation5 + $0x40] sm:$0xff] }
 0x916   :  { %6238 = vst.msk [vmem:[#allocation5 + $0x50] sm:$0xff] %vm6227_vm6, %v6218_v55  ;;  %v6165_v29 = vadd.f32 %v11210_v19, %v14427_v13  ;;  %v6045_v54 = vpop.f32.mrb[81].mxu1  ;;  %v14469_v56 = vld [vmem:[#allocation5 + $0x38] sm:$0xff] }
 0x917   :  { %6237 = vst.msk [vmem:[#allocation5 + $0x48] sm:$0xff] %vm6227_vm6, %v6217_v47  ;;  %v6163_v58 = vadd.f32 %v14427_v13, %v6045_v54  ;;  %v11211_v59 = vpop.f32.mrb[82].mxu1  ;;  %11240 = vmatprep.mubr.msk.bf16.mxu0 %vm6227_vm6, %v14469_v56 }
 0x918   :  { %v6166_v43 = vadd.f32 %v11211_v59, %v14427_v13  ;;  %v6048_v60 = vpop.f32.mrb[83].mxu1  ;;  %11241 = vmatmul.mubr.msk.bf16.gmra.mrb[76].mxu0 %vm6227_vm6, %v14475_v42  ;;  %v6197_v21 = vmax.f32 %v6165_v29, 0.0 }
 0x919   :  { %v6164_v44 = vadd.f32 %v14427_v13, %v6048_v60  ;;  %v6195_v22 = vmax.f32 %v6163_v58, 0.0 }
 0x91a   :  { %v6198_v32 = vmax.f32 %v6166_v43, 0.0 }
 0x91b   :  { %v6196_v35 = vmax.f32 %v6164_v44, 0.0 }
 0x91c   :  { %v6220_v48 = vpack.c.bf16 %v6198_v32, %v6197_v21  ;;  %v6250_v32 = vld [vmem:[#allocation5] sm:$0xff] }
 0x91d   :  { %v6219_v61 = vpack.c.bf16 %v6196_v35, %v6195_v22  ;;  %v11214_v62 = vpop.f32.mrb[84].mxu1  ;;  %v14489_v45 = vld [vmem:[#allocation5 + $0x50] sm:$0xff]  ;;  %v12650_v35 = vld [vmem:[%s15186_s9 + $0x30] sm:$0xff]  }
 0x91e   :  { %6240 = vst.msk [vmem:[#allocation5 + $0x60] sm:$0xff] %vm6227_vm6, %v6220_v48  ;;  %v6169_v63 = vadd.f32 %v11214_v62, %v14427_v13  ;;  %v6061_v0 = vpop.f32.mrb[85].mxu1  ;;  %v14483_v52 = vld [vmem:[#allocation5 + $0x48] sm:$0xff]  ;;  %v12653_v48 = vld [vmem:[%s15186_s9 + $0x48] sm:$0xff]  }
 0x91f   :  { %6239 = vst.msk [vmem:[#allocation5 + $0x58] sm:$0xff] %vm6227_vm6, %v6219_v61  ;;  %v6167_v2 = vadd.f32 %v14427_v13, %v6061_v0  ;;  %v11215_v34 = vpop.f32.mrb[86].mxu1  ;;  %11244 = vmatprep.mubr.msk.bf16.mxu0 %vm6227_vm6, %v14483_v52  ;;  %v12654_v61 = vld [vmem:[%s15186_s9 + $0x50] sm:$0xff]   ;;  %v12655_v62 = vld [vmem:[%s15186_s9 + $0x58] sm:$0xff]  }
 0x920   :  { %v6170_v1 = vadd.f32 %v11215_v34, %v14427_v13  ;;  %v6064_v23 = vpop.f32.mrb[87].mxu1  ;;  %11245 = vmatmul.mubr.msk.bf16.gmra.mrb[80].mxu0 %vm6227_vm6, %v14489_v45  ;;  %v6201_v27 = vmax.f32 %v6169_v63, 0.0  ;;  %v12656_v63 = vld [vmem:[%s15186_s9 + $0x60] sm:$0xff]   ;;  %v12658_v0 = vld [vmem:[%s15188_s11 + $0x14] sm:$0xff]  }
 0x921   :  { %v6168_v4 = vadd.f32 %v14427_v13, %v6064_v23  ;;  %v6199_v37 = vmax.f32 %v6167_v2, 0.0  ;;  %v12731_v2 = vmov 0.0   ;;  %v12659_v34 = vld [vmem:[%s15188_s11 + $0x1c] sm:$0xff]   ;;  %v12657_v23 = vld [vmem:[%s15186_s9 + $0x68] sm:$0xff]  }
 0x922   :  { %v6202_v5 = vmax.f32 %v6170_v1, 0.0  ;;  %11476 = vmatprep.subr.bf16.mxu1 %v12731_v2  ;;  %v12660_v1 = vld [vmem:[%s15188_s11 + $0x24] ss:$0 sps:$4 sm:$0xff]   ;;  %11482 = vmatprep.mubr.msk.bf16.mxu1 %vm12732_vm7, %v12731_v2 }
 0x923   :  { %v6200_v46 = vmax.f32 %v6168_v4, 0.0  ;;  %11477 = vmatpush3.bf16.msra.mxu1 %v12658_v0  ;;  %v6270_v4 = vld [vmem:[#allocation5 + $0xa0] sm:$0xff] }
 0x924   :  { %v6222_v49 = vpack.c.bf16 %v6202_v5, %v6201_v27  ;;  %11478 = vmatprep.subr.bf16.mxu1 %v12731_v2 }
 0x925   :  { %v6221_v10 = vpack.c.bf16 %v6200_v46, %v6199_v37  ;;  %v11218_v28 = vpop.f32.mrb[88].mxu1  ;;  %v14503_v20 = vld [vmem:[#allocation5 + $0x60] sm:$0xff] }
 0x926   :  { %6242 = vst.msk [vmem:[#allocation5 + $0x70] sm:$0xff] %vm6227_vm6, %v6222_v49  ;;  %v6173_v12 = vadd.f32 %v11218_v28, %v14427_v13  ;;  %v6077_v50 = vpop.f32.mrb[89].mxu1  ;;  %v14497_v3 = vld [vmem:[#allocation5 + $0x58] sm:$0xff] }
 0x927   :  { %6241 = vst.msk [vmem:[#allocation5 + $0x68] sm:$0xff] %vm6227_vm6, %v6221_v10  ;;  %v6171_v14 = vadd.f32 %v14427_v13, %v6077_v50  ;;  %v11219_v38 = vpop.f32.mrb[90].mxu1  ;;  %11248 = vmatprep.mubr.msk.bf16.mxu0 %vm6227_vm6, %v14497_v3  ;;  %11479 = vmatpush3.bf16.msra.mxu1 %v12659_v34  ;;  %v12661_v10 = vld [vmem:[%s15188_s11] sm:$0xff]  }
 0x928   :  { %v6174_v36 = vadd.f32 %v11219_v38, %v14427_v13  ;;  %v6080_v57 = vpop.f32.mrb[91].mxu1  ;;  %11249 = vmatmul.mubr.msk.bf16.gmra.mrb[84].mxu0 %vm6227_vm6, %v14503_v20  ;;  %v6205_v15 = vmax.f32 %v6173_v12, 0.0  ;;  %11480 = vmatprep.subr.bf16.mxu1 %v12731_v2  ;;  %v12663_v38 = vld [vmem:[%s15188_s11 + $0x10] ss:$0 sps:$4 sm:$0xff]  }
 0x929   :  { %v6172_v33 = vadd.f32 %v14427_v13, %v6080_v57  ;;  %v6203_v40 = vmax.f32 %v6171_v14, 0.0 }
 0x92a   :  { %v6206_v51 = vmax.f32 %v6174_v36, 0.0 }
 0x92b   :  { %v6204_v16 = vmax.f32 %v6172_v33, 0.0 }
 0x92c   :  { %v6224_v25 = vpack.c.bf16 %v6206_v51, %v6205_v15 }
 0x92d   :  { %v6223_v53 = vpack.c.bf16 %v6204_v16, %v6203_v40  ;;  %v11222_v30 = vpop.f32.mrb[92].mxu1  ;;  %v14517_v55 = vld [vmem:[#allocation5 + $0x70] sm:$0xff]  ;;  %v7954_v16 = vsel %vm1682_vm2, %v12663_v38, 0 }
 0x92e   :  { %6244 = vst.msk [vmem:[#allocation5 + $0x80] sm:$0xff] %vm6227_vm6, %v6224_v25  ;;  %v6177_v26 = vadd.f32 %v11222_v30, %v14427_v13  ;;  %v6093_v18 = vpop.f32.mrb[93].mxu1  ;;  %v14511_v31 = vld [vmem:[#allocation5 + $0x68] sm:$0xff]  ;;  %v12664_v30 = vld [vmem:[%s15188_s11 + $0x28] sm:$0xff]  }
 0x92f   :  { %6243 = vst.msk [vmem:[#allocation5 + $0x78] sm:$0xff] %vm6227_vm6, %v6223_v53  ;;  %v6175_v39 = vadd.f32 %v14427_v13, %v6093_v18  ;;  %v11223_v8 = vpop.f32.mrb[94].mxu1  ;;  %11252 = vmatprep.mubr.msk.bf16.mxu0 %vm6227_vm6, %v14511_v31 }
 0x930   :  { %v6178_v47 = vadd.f32 %v11223_v8, %v14427_v13  ;;  %v6096_v19 = vpop.f32.mrb[95].mxu1  ;;  %11253 = vmatmul.mubr.msk.bf16.gmra.mrb[88].mxu0 %vm6227_vm6, %v14517_v55  ;;  %v6209_v54 = vmax.f32 %v6177_v26, 0.0 }
 0x931   :  { %v6176_v29 = vadd.f32 %v14427_v13, %v6096_v19  ;;  %v6207_v59 = vmax.f32 %v6175_v39, 0.0  ;;  %v12649_v13 = vld [vmem:[%s15186_s9 + $0x28] sm:$0xff]   ;;  %v12665_v19 = vld [vmem:[%s15188_s11 + $0x30] sm:$0xff]  }
 0x932   :  { %v6210_v58 = vmax.f32 %v6178_v47, 0.0 }
 0x933   :  { %v6208_v43 = vmax.f32 %v6176_v29, 0.0 }
 0x934   :  { %v6226_v60 = vpack.c.bf16 %v6210_v58, %v6209_v54  ;;  %v12666_v54 = vld [vmem:[%s15188_s11 + $0x38] ss:$0 sps:$4 sm:$0xff]  }
 0x935   :  { %v6225_v44 = vpack.c.bf16 %v6208_v43, %v6207_v59  ;;  %v14529_v22 = vld [vmem:[#allocation5 + $0x80] sm:$0xff] }
 0x936   :  { %6246 = vst.msk [vmem:[#allocation5 + $0x90] sm:$0xff] %vm6227_vm6, %v6226_v60  ;;  %v14524_v21 = vld [vmem:[#allocation5 + $0x78] sm:$0xff] }
 0x937   :  { %6245 = vst.msk [vmem:[#allocation5 + $0x88] sm:$0xff] %vm6227_vm6, %v6225_v44  ;;  %11256 = vmatprep.mubr.msk.bf16.mxu0 %vm6227_vm6, %v14524_v21  ;;  %v8016_v44 = vsel %vm1682_vm2, %v12666_v54, 0 }
 0x938   :  { %11257 = vmatmul.mubr.msk.bf16.gmra.mrb[92].mxu0 %vm6227_vm6, %v14529_v22 }
 0x939   :  { %11264 = vmatprep.mubr.msk.bf16.mxu0 %vm6227_vm6, %v6250_v32 }
 0x940   :  { %11265 = vmatmul.mubr.msk.bf16.vlgmr.msra.gmra.mrb[64].mxu0 %vm6227_vm6, %v14404_v6  ;;  %v12651_v6 = vld [vmem:[%s15186_s9 + $0x38] sm:$0xff]  }
 0x941   :  { %11297 = vmatpush3.bf16.msra.mxu0 %v14421_v17  ;;  %11268 = vmatprep.mubr.msk.bf16.mxu0 %vm6227_vm6, %v14408_v7  ;;  %v12652_v17 = vld [vmem:[%s15186_s9 + $0x40] sm:$0xff]  }
 0x942   :  { %11298 = vmatprep.subr.bf16.mxu0 %v12649_v13 }
 0x945   :  { %11299 = vmatpush3.bf16.msra.mxu0 %v12649_v13 }
 0x946   :  { %11332 = vmatprep.subr.bf16.mxu0 %v12650_v35 }
 0x948   :  { %11269 = vmatmul.mubr.msk.bf16.gmra.mrb[68].mxu0 %vm6227_vm6, %v14441_v9 }
 0x949   :  { %11272 = vmatprep.mubr.msk.bf16.mxu0 %vm6227_vm6, %v14447_v11 }
 0x950   :  { %11273 = vmatmul.mubr.msk.bf16.gmra.mrb[72].mxu0 %vm6227_vm6, %v14455_v41 }
 0x951   :  { %11276 = vmatprep.mubr.msk.bf16.mxu0 %vm6227_vm6, %v14461_v24 }
 0x958   :  { %11277 = vmatmul.mubr.msk.bf16.gmra.mrb[76].mxu0 %vm6227_vm6, %v14469_v56 }
 0x959   :  { %11280 = vmatprep.mubr.msk.bf16.mxu0 %vm6227_vm6, %v14475_v42 }
 0x960   :  { %11281 = vmatmul.mubr.msk.bf16.gmra.mrb[80].mxu0 %vm6227_vm6, %v14483_v52 }
 0x961   :  { %11284 = vmatprep.mubr.msk.bf16.mxu0 %vm6227_vm6, %v14489_v45 }
 0x968   :  { %11285 = vmatmul.mubr.msk.bf16.gmra.mrb[84].mxu0 %vm6227_vm6, %v14497_v3 }
 0x969   :  { %11288 = vmatprep.mubr.msk.bf16.mxu0 %vm6227_vm6, %v14503_v20 }
 0x970   :  { %11289 = vmatmul.mubr.msk.bf16.gmra.mrb[88].mxu0 %vm6227_vm6, %v14511_v31 }
 0x971   :  { %11292 = vmatprep.mubr.msk.bf16.mxu0 %vm6227_vm6, %v14517_v55 }
 0x978   :  { %11293 = vmatmul.mubr.msk.bf16.gmra.mrb[92].mxu0 %vm6227_vm6, %v14524_v21 }
 0x979   :  { %11300 = vmatprep.mubr.msk.bf16.mxu0 %vm6227_vm6, %v14408_v7  ;;  %v14607_v7 = vld [vmem:[#allocation5 + $0x88] sm:$0xff] }
 0x980   :  { %11301 = vmatmul.mubr.msk.bf16.vlgmr.msra.gmra.mrb[64].mxu0 %vm6227_vm6, %v14441_v9 }
 0x981   :  { %11304 = vmatprep.mubr.msk.bf16.mxu0 %vm6227_vm6, %v14447_v11  ;;  %11333 = vmatpush3.bf16.msra.mxu0 %v12650_v35 }
 0x982   :  { %11334 = vmatprep.subr.bf16.mxu0 %v12651_v6 }
 0x985   :  { %11335 = vmatpush3.bf16.msra.mxu0 %v12651_v6  ;;  %v12667_v6 = vld [vmem:[%s15188_s11 + $0x3c] sm:$0xff]  }
 0x986   :  { %11368 = vmatprep.subr.bf16.mxu0 %v12652_v17 }
 0x988   :  { %11305 = vmatmul.mubr.msk.bf16.gmra.mrb[68].mxu0 %vm6227_vm6, %v14455_v41 }
 0x989   :  { %11308 = vmatprep.mubr.msk.bf16.mxu0 %vm6227_vm6, %v14461_v24 }
 0x990   :  { %11309 = vmatmul.mubr.msk.bf16.gmra.mrb[72].mxu0 %vm6227_vm6, %v14469_v56 }
 0x991   :  { %11312 = vmatprep.mubr.msk.bf16.mxu0 %vm6227_vm6, %v14475_v42 }
 0x998   :  { %11313 = vmatmul.mubr.msk.bf16.gmra.mrb[76].mxu0 %vm6227_vm6, %v14483_v52 }
 0x999   :  { %11316 = vmatprep.mubr.msk.bf16.mxu0 %vm6227_vm6, %v14489_v45 }
 0x9a0   :  { %11317 = vmatmul.mubr.msk.bf16.gmra.mrb[80].mxu0 %vm6227_vm6, %v14497_v3 }
 0x9a1   :  { %11320 = vmatprep.mubr.msk.bf16.mxu0 %vm6227_vm6, %v14503_v20 }
 0x9a8   :  { %11321 = vmatmul.mubr.msk.bf16.gmra.mrb[84].mxu0 %vm6227_vm6, %v14511_v31 }
 0x9a9   :  { %11324 = vmatprep.mubr.msk.bf16.mxu0 %vm6227_vm6, %v14517_v55 }
 0x9b0   :  { %11325 = vmatmul.mubr.msk.bf16.gmra.mrb[88].mxu0 %vm6227_vm6, %v14524_v21 }
 0x9b1   :  { %11328 = vmatprep.mubr.msk.bf16.mxu0 %vm6227_vm6, %v14529_v22 }
 0x9b8   :  { %11329 = vmatmul.mubr.msk.bf16.gmra.mrb[92].mxu0 %vm6227_vm6, %v14607_v7 }
 0x9b9   :  { %11336 = vmatprep.mubr.msk.bf16.mxu0 %vm6227_vm6, %v14441_v9  ;;  %v14647_v9 = vld [vmem:[#allocation5 + $0x90] sm:$0xff] }
 0x9c0   :  { %11337 = vmatmul.mubr.msk.bf16.vlgmr.msra.gmra.mrb[64].mxu0 %vm6227_vm6, %v14447_v11 }
 0x9c1   :  { %11340 = vmatprep.mubr.msk.bf16.mxu0 %vm6227_vm6, %v14455_v41  ;;  %11369 = vmatpush3.bf16.msra.mxu0 %v12652_v17 }
 0x9c2   :  { %11370 = vmatprep.subr.bf16.mxu0 %v12653_v48 }
 0x9c5   :  { %11371 = vmatpush3.bf16.msra.mxu0 %v12653_v48 }
 0x9c6   :  { %11404 = vmatprep.subr.bf16.mxu0 %v12654_v61 }
 0x9c8   :  { %11341 = vmatmul.mubr.msk.bf16.gmra.mrb[68].mxu0 %vm6227_vm6, %v14461_v24 }
 0x9c9   :  { %11344 = vmatprep.mubr.msk.bf16.mxu0 %vm6227_vm6, %v14469_v56 }
 0x9d0   :  { %11345 = vmatmul.mubr.msk.bf16.gmra.mrb[72].mxu0 %vm6227_vm6, %v14475_v42 }
 0x9d1   :  { %11348 = vmatprep.mubr.msk.bf16.mxu0 %vm6227_vm6, %v14483_v52 }
 0x9d8   :  { %11349 = vmatmul.mubr.msk.bf16.gmra.mrb[76].mxu0 %vm6227_vm6, %v14489_v45 }
 0x9d9   :  { %11352 = vmatprep.mubr.msk.bf16.mxu0 %vm6227_vm6, %v14497_v3 }
 0x9e0   :  { %11353 = vmatmul.mubr.msk.bf16.gmra.mrb[80].mxu0 %vm6227_vm6, %v14503_v20 }
 0x9e1   :  { %11356 = vmatprep.mubr.msk.bf16.mxu0 %vm6227_vm6, %v14511_v31 }
 0x9e8   :  { %11357 = vmatmul.mubr.msk.bf16.gmra.mrb[84].mxu0 %vm6227_vm6, %v14517_v55 }
 0x9e9   :  { %11360 = vmatprep.mubr.msk.bf16.mxu0 %vm6227_vm6, %v14524_v21 }
 0x9f0   :  { %11361 = vmatmul.mubr.msk.bf16.gmra.mrb[88].mxu0 %vm6227_vm6, %v14529_v22 }
 0x9f1   :  { %11364 = vmatprep.mubr.msk.bf16.mxu0 %vm6227_vm6, %v14607_v7 }
 0x9f8   :  { %11365 = vmatmul.mubr.msk.bf16.gmra.mrb[92].mxu0 %vm6227_vm6, %v14647_v9 }
 0x9f9   :  { %11372 = vmatprep.mubr.msk.bf16.mxu0 %vm6227_vm6, %v14447_v11  ;;  %v6269_v11 = vld [vmem:[#allocation5 + $0x98] sm:$0xff] }
 0xa00   :  { %11373 = vmatmul.mubr.msk.bf16.vlgmr.msra.gmra.mrb[64].mxu0 %vm6227_vm6, %v14455_v41 }
 0xa01   :  { %11376 = vmatprep.mubr.msk.bf16.mxu0 %vm6227_vm6, %v14461_v24  ;;  %11405 = vmatpush3.bf16.msra.mxu0 %v12654_v61  ;;  %v12668_v61 = vld [vmem:[%s15188_s11 + $0x44] sm:$0xff]  }
 0xa02   :  { %11406 = vmatprep.subr.bf16.mxu0 %v12655_v62 }
 0xa05   :  { %11407 = vmatpush3.bf16.msra.mxu0 %v12655_v62 }
 0xa06   :  { %11440 = vmatprep.subr.bf16.mxu0 %v12656_v63 }
 0xa08   :  { %11377 = vmatmul.mubr.msk.bf16.gmra.mrb[68].mxu0 %vm6227_vm6, %v14469_v56 }
 0xa09   :  { %11380 = vmatprep.mubr.msk.bf16.mxu0 %vm6227_vm6, %v14475_v42 }
 0xa10   :  { %11381 = vmatmul.mubr.msk.bf16.gmra.mrb[72].mxu0 %vm6227_vm6, %v14483_v52 }
 0xa11   :  { %11384 = vmatprep.mubr.msk.bf16.mxu0 %vm6227_vm6, %v14489_v45 }
 0xa18   :  { %11385 = vmatmul.mubr.msk.bf16.gmra.mrb[76].mxu0 %vm6227_vm6, %v14497_v3 }
 0xa19   :  { %11388 = vmatprep.mubr.msk.bf16.mxu0 %vm6227_vm6, %v14503_v20 }
 0xa20   :  { %11389 = vmatmul.mubr.msk.bf16.gmra.mrb[80].mxu0 %vm6227_vm6, %v14511_v31 }
 0xa21   :  { %11392 = vmatprep.mubr.msk.bf16.mxu0 %vm6227_vm6, %v14517_v55 }
 0xa28   :  { %11393 = vmatmul.mubr.msk.bf16.gmra.mrb[84].mxu0 %vm6227_vm6, %v14524_v21 }
 0xa29   :  { %11396 = vmatprep.mubr.msk.bf16.mxu0 %vm6227_vm6, %v14529_v22 }
 0xa30   :  { %11397 = vmatmul.mubr.msk.bf16.gmra.mrb[88].mxu0 %vm6227_vm6, %v14607_v7 }
 0xa31   :  { %11400 = vmatprep.mubr.msk.bf16.mxu0 %vm6227_vm6, %v14647_v9 }
 0xa38   :  { %11401 = vmatmul.mubr.msk.bf16.gmra.mrb[92].mxu0 %vm6227_vm6, %v6269_v11 }
 0xa39   :  { %11408 = vmatprep.mubr.msk.bf16.mxu0 %vm6227_vm6, %v14455_v41  ;;  %v7892_v41 = vsel %vm1682_vm2, %v12660_v1, 0 }
 0xa3a   :  { %11481 = vmatpush3.bf16.msra.mxu1 %v7892_v41 }
 0xa3b   :  { %11486 = vmatprep.subr.bf16.mxu1 %v12731_v2 }
 0xa40   :  { %11409 = vmatmul.mubr.msk.bf16.vlgmr.msra.gmra.mrb[64].mxu0 %vm6227_vm6, %v14461_v24 }
 0xa41   :  { %11412 = vmatprep.mubr.msk.bf16.mxu0 %vm6227_vm6, %v14469_v56  ;;  %11441 = vmatpush3.bf16.msra.mxu0 %v12656_v63  ;;  %v12669_v63 = vld [vmem:[%s15188_s11 + $0x4c] ss:$0 sps:$4 sm:$0xff]  }
 0xa42   :  { %11442 = vmatprep.subr.bf16.mxu0 %v12657_v23 }
 0xa45   :  { %11443 = vmatpush3.bf16.msra.mxu0 %v12657_v23 }
 0xa48   :  { %11413 = vmatmul.mubr.msk.bf16.gmra.mrb[68].mxu0 %vm6227_vm6, %v14475_v42 }
 0xa49   :  { %11416 = vmatprep.mubr.msk.bf16.mxu0 %vm6227_vm6, %v14483_v52 }
 0xa50   :  { %11417 = vmatmul.mubr.msk.bf16.gmra.mrb[72].mxu0 %vm6227_vm6, %v14489_v45 }
 0xa51   :  { %11420 = vmatprep.mubr.msk.bf16.mxu0 %vm6227_vm6, %v14497_v3 }
 0xa58   :  { %11421 = vmatmul.mubr.msk.bf16.gmra.mrb[76].mxu0 %vm6227_vm6, %v14503_v20 }
 0xa59   :  { %11424 = vmatprep.mubr.msk.bf16.mxu0 %vm6227_vm6, %v14511_v31 }
 0xa60   :  { %11425 = vmatmul.mubr.msk.bf16.gmra.mrb[80].mxu0 %vm6227_vm6, %v14517_v55 }
 0xa61   :  { %11428 = vmatprep.mubr.msk.bf16.mxu0 %vm6227_vm6, %v14524_v21 }
 0xa68   :  { %11429 = vmatmul.mubr.msk.bf16.gmra.mrb[84].mxu0 %vm6227_vm6, %v14529_v22 }
 0xa69   :  { %11432 = vmatprep.mubr.msk.bf16.mxu0 %vm6227_vm6, %v14607_v7 }
 0xa70   :  { %11433 = vmatmul.mubr.msk.bf16.gmra.mrb[88].mxu0 %vm6227_vm6, %v14647_v9 }
 0xa71   :  { %11436 = vmatprep.mubr.msk.bf16.mxu0 %vm6227_vm6, %v6269_v11 }
 0xa78   :  { %11437 = vmatmul.mubr.msk.bf16.gmra.mrb[92].mxu0 %vm6227_vm6, %v6270_v4 }
 0xa79   :  { %11444 = vmatprep.mubr.msk.bf16.mxu0 %vm6227_vm6, %v14461_v24  ;;  %v6271_v24 = vld [vmem:[#allocation5 + $0xa8] sm:$0xff] }
 0xa80   :  { %11445 = vmatmul.mubr.msk.bf16.vlgmr.msra.gmra.mrb[64].mxu0 %vm6227_vm6, %v14469_v56 }
 0xa81   :  { %11448 = vmatprep.mubr.msk.bf16.mxu0 %vm6227_vm6, %v14475_v42  ;;  %v14769_v42 = vld [vmem:[%s15187_s10] ss:$0 sm:$0xff] }
 0xa88   :  { %11449 = vmatmul.mubr.msk.bf16.gmra.mrb[68].mxu0 %vm6227_vm6, %v14483_v52 }
 0xa89   :  { %11452 = vmatprep.mubr.msk.bf16.mxu0 %vm6227_vm6, %v14489_v45 }
 0xa90   :  { %11453 = vmatmul.mubr.msk.bf16.gmra.mrb[72].mxu0 %vm6227_vm6, %v14497_v3  ;;  %v12662_v3 = vld [vmem:[%s15188_s11 + $0x8] sm:$0xff]  }
 0xa91   :  { %11456 = vmatprep.mubr.msk.bf16.mxu0 %vm6227_vm6, %v14503_v20 }
 0xa98   :  { %11457 = vmatmul.mubr.msk.bf16.gmra.mrb[76].mxu0 %vm6227_vm6, %v14511_v31 }
 0xa99   :  { %11460 = vmatprep.mubr.msk.bf16.mxu0 %vm6227_vm6, %v14517_v55 }
 0xaa0   :  { %11461 = vmatmul.mubr.msk.bf16.gmra.mrb[80].mxu0 %vm6227_vm6, %v14524_v21 }
 0xaa1   :  { %11464 = vmatprep.mubr.msk.bf16.mxu0 %vm6227_vm6, %v14529_v22 }
 0xaa8   :  { %11465 = vmatmul.mubr.msk.bf16.gmra.mrb[84].mxu0 %vm6227_vm6, %v14607_v7 }
 0xaa9   :  { %11468 = vmatprep.mubr.msk.bf16.mxu0 %vm6227_vm6, %v14647_v9 }
 0xab0   :  { %11469 = vmatmul.mubr.msk.bf16.gmra.mrb[88].mxu0 %vm6227_vm6, %v6269_v11 }
 0xab1   :  { %11472 = vmatprep.mubr.msk.bf16.mxu0 %vm6227_vm6, %v6270_v4  ;;  %v8080_v4 = vsel %vm1682_vm2, %v12669_v63, 0 }
 0xab8   :  { %11473 = vmatmul.mubr.msk.bf16.gmra.mrb[92].mxu0 %vm6227_vm6, %v6271_v24 }
 0xb53   :  { %v11446_v56 = vpop.f32.mrb[64].mxu0 }
 0xb54   :  { %v7578_v52 = vpop.f32.mrb[65].mxu0  ;;  %v7746_v27 = vadd.f32 %v11446_v56, %v14769_v42 }
 0xb55   :  { %v11447_v45 = vpop.f32.mrb[66].mxu0  ;;  %v7744_v46 = vadd.f32 %v14769_v42, %v7578_v52  ;;  %v12670_v52 = vld [vmem:[%s15188_s11 + $0x50] sm:$0xff]  }
 0xb56   :  { %v7747_v5 = vadd.f32 %v11447_v45, %v14769_v42  ;;  %v7581_v37 = vpop.f32.mrb[67].mxu0 }
 0xb57   :  { %v7745_v49 = vadd.f32 %v14769_v42, %v7581_v37 }
 0xb58   :  { %v7857_v28 = vpack.c.bf16 %v7747_v5, %v7746_v27 }
 0xb59   :  { %v7856_v12 = vpack.c.bf16 %v7745_v49, %v7744_v46 }
 0xb5a   :  { %11483 = vmatmul.mubr.msk.bf16.vlgmr.msra.gmra.mrb[96].mxu1 %vm7887_vm8, %v7857_v28  ;;  %v12671_v28 = vld [vmem:[%s15188_s11 + $0x58] sm:$0xff]  }
 0xb5b   :  { %11487 = vmatpush3.bf16.msra.mxu1 %v12661_v10  ;;  %v11450_v50 = vpop.f32.mrb[68].mxu0  ;;  %11492 = vmatprep.mubr.msk.bf16.mxu1 %vm12732_vm7, %v12731_v2 }
 0xb5c   :  { %v7594_v14 = vpop.f32.mrb[69].mxu0  ;;  %11488 = vmatprep.subr.bf16.mxu1 %v12731_v2  ;;  %v14789_v36 = vadd.f32 %v11450_v50, %v14769_v42  ;;  %v12672_v50 = vld [vmem:[%s15188_s11 + $0x60] ss:$0 sps:$4 sm:$0xff]  }
 0xb5d   :  { %v11451_v20 = vpop.f32.mrb[70].mxu0  ;;  %v7748_v15 = vadd.f32 %v14769_v42, %v7594_v14 }
 0xb5e   :  { %v14792_v57 = vadd.f32 %v11451_v20, %v14769_v42  ;;  %v7597_v33 = vpop.f32.mrb[71].mxu0 }
 0xb5f   :  { %v7749_v51 = vadd.f32 %v14769_v42, %v7597_v33  ;;  %11489 = vmatpush3.bf16.msra.mxu1 %v12662_v3 }
 0xb60   :  { %v7859_v40 = vpack.c.bf16 %v14792_v57, %v14789_v36  ;;  %11490 = vmatprep.subr.bf16.mxu1 %v12731_v2  ;;  %v8144_v36 = vsel %vm1682_vm2, %v12672_v50, 0  ;;  %v12703_v50 = vld [vmem:[%s15188_s11 + $0x12c] sm:$0xff]  }
 0xb61   :  { %v7858_v25 = vpack.c.bf16 %v7749_v51, %v7748_v15 }
 0xb63   :  { %11491 = vmatpush3.bf16.msra.mxu1 %v7954_v16  ;;  %v11454_v53 = vpop.f32.mrb[72].mxu0  ;;  %v12673_v16 = vld [vmem:[%s15188_s11 + $0x64] sm:$0xff]  }
 0xb64   :  { %v7610_v26 = vpop.f32.mrb[73].mxu0  ;;  %11496 = vmatprep.subr.bf16.mxu1 %v12731_v2  ;;  %v14805_v31 = vadd.f32 %v11454_v53, %v14769_v42 }
 0xb65   :  { %v11455_v18 = vpop.f32.mrb[74].mxu0  ;;  %v14812_v55 = vadd.f32 %v14769_v42, %v7610_v26  ;;  %v12674_v26 = vld [vmem:[%s15188_s11 + $0x6c] sm:$0xff]  }
 0xb66   :  { %v14808_v39 = vadd.f32 %v11455_v18, %v14769_v42  ;;  %11493 = vmatmul.mubr.msk.bf16.vlgmr.msra.gmra.mrb[100].mxu1 %vm7887_vm8, %v7856_v12  ;;  %v7613_v8 = vpop.f32.mrb[75].mxu0 }
 0xb67   :  { %v14815_v47 = vadd.f32 %v14769_v42, %v7613_v8  ;;  %11497 = vmatpush3.bf16.msra.mxu1 %v12664_v30  ;;  %11502 = vmatprep.mubr.msk.bf16.mxu1 %vm12732_vm7, %v12731_v2 }
 0xb68   :  { %v7861_v29 = vpack.c.bf16 %v14808_v39, %v14805_v31  ;;  %11498 = vmatprep.subr.bf16.mxu1 %v12731_v2  ;;  %v12679_v39 = vld [vmem:[%s15188_s11 + $0x8c] sm:$0xff]  }
 0xb69   :  { %v7860_v58 = vpack.c.bf16 %v14815_v47, %v14812_v55  ;;  %v12675_v55 = vld [vmem:[%s15188_s11 + $0x74] ss:$0 sps:$4 sm:$0xff]  }
 0xb6b   :  { %11499 = vmatpush3.bf16.msra.mxu1 %v12665_v19  ;;  %v11458_v59 = vpop.f32.mrb[76].mxu0 }
 0xb6c   :  { %v14831_v43 = vadd.f32 %v11458_v59, %v14769_v42  ;;  %v7626_v60 = vpop.f32.mrb[77].mxu0  ;;  %11500 = vmatprep.subr.bf16.mxu1 %v12731_v2 }
 0xb6d   :  { %v14836_v21 = vadd.f32 %v14769_v42, %v7626_v60  ;;  %v11459_v32 = vpop.f32.mrb[78].mxu0 }
 0xb6e   :  { %v14839_v22 = vadd.f32 %v11459_v32, %v14769_v42  ;;  %v7629_v13 = vpop.f32.mrb[79].mxu0 }
 0xb6f   :  { %v14842_v35 = vadd.f32 %v14769_v42, %v7629_v13  ;;  %11501 = vmatpush3.bf16.msra.mxu1 %v8016_v44  ;;  %v8208_v44 = vsel %vm1682_vm2, %v12675_v55, 0  ;;  %v12676_v13 = vld [vmem:[%s15188_s11 + $0x78] sm:$0xff]  }
 0xb70   :  { %v7863_v17 = vpack.c.bf16 %v14839_v22, %v14831_v43  ;;  %11506 = vmatprep.subr.bf16.mxu1 %v12731_v2  ;;  %v12685_v22 = vld [vmem:[%s15188_s11 + $0xb4] sm:$0xff]  }
 0xb71   :  { %v7862_v7 = vpack.c.bf16 %v14842_v35, %v14836_v21  ;;  %v12682_v35 = vld [vmem:[%s15188_s11 + $0xa0] sm:$0xff]  }
 0xb72   :  { %11503 = vmatmul.mubr.msk.bf16.vlgmr.msra.gmra.mrb[104].mxu1 %vm7887_vm8, %v7858_v25 }
 0xb73   :  { %11507 = vmatpush3.bf16.msra.mxu1 %v12667_v6  ;;  %v11462_v48 = vpop.f32.mrb[80].mxu0  ;;  %11512 = vmatprep.mubr.msk.bf16.mxu1 %vm12732_vm7, %v12731_v2  ;;  %v12678_v6 = vld [vmem:[%s15188_s11 + $0x88] ss:$0 sps:$4 sm:$0xff]  }
 0xb74   :  { %v14859_v9 = vadd.f32 %v11462_v48, %v14769_v42  ;;  %v7642_v62 = vpop.f32.mrb[81].mxu0  ;;  %11508 = vmatprep.subr.bf16.mxu1 %v12731_v2  ;;  %v8272_v31 = vsel %vm1682_vm2, %v12678_v6, 0  ;;  %v12681_v48 = vld [vmem:[%s15188_s11 + $0x9c] ss:$0 sps:$4 sm:$0xff]  }
 0xb75   :  { %v14866_v11 = vadd.f32 %v14769_v42, %v7642_v62  ;;  %v11463_v0 = vpop.f32.mrb[82].mxu0  ;;  %v8336_v21 = vsel %vm1682_vm2, %v12681_v48, 0  ;;  %v12687_v62 = vld [vmem:[%s15188_s11 + $0xc4] ss:$0 sps:$4 sm:$0xff]  }
 0xb76   :  { %v14869_v34 = vadd.f32 %v11463_v0, %v14769_v42  ;;  %v7645_v1 = vpop.f32.mrb[83].mxu0  ;;  %v8464_v63 = vsel %vm1682_vm2, %v12687_v62, 0  ;;  %v12689_v0 = vld [vmem:[%s15188_s11 + $0xd0] sm:$0xff]  }
 0xb77   :  { %v14872_v23 = vadd.f32 %v14769_v42, %v7645_v1  ;;  %11509 = vmatpush3.bf16.msra.mxu1 %v12668_v61  ;;  %v12684_v61 = vld [vmem:[%s15188_s11 + $0xb0] ss:$0 sps:$4 sm:$0xff]   ;;  %v12690_v1 = vld [vmem:[%s15188_s11 + $0xd8] ss:$0 sps:$4 sm:$0xff]  }
 0xb78   :  { %v7865_v41 = vpack.c.bf16 %v14869_v34, %v14859_v9  ;;  %11510 = vmatprep.subr.bf16.mxu1 %v12731_v2  ;;  %v8400_v43 = vsel %vm1682_vm2, %v12684_v61, 0  ;;  %v8528_v9 = vsel %vm1682_vm2, %v12690_v1, 0  ;;  %v12691_v34 = vld [vmem:[%s15188_s11 + $0xdc] sm:$0xff]  }
 0xb79   :  { %v7864_v24 = vpack.c.bf16 %v14872_v23, %v14866_v11  ;;  %v12688_v11 = vld [vmem:[%s15188_s11 + $0xc8] sm:$0xff]  }
 0xb7a   :  { %v12692_v23 = vld [vmem:[%s15188_s11 + $0xe4] sm:$0xff]  }
 0xb7b   :  { %11511 = vmatpush3.bf16.msra.mxu1 %v8080_v4  ;;  %v11466_v56 = vpop.f32.mrb[84].mxu0 }
 0xb7c   :  { %v14884_v45 = vadd.f32 %v11466_v56, %v14769_v42  ;;  %v7658_v27 = vpop.f32.mrb[85].mxu0  ;;  %11516 = vmatprep.subr.bf16.mxu1 %v12731_v2  ;;  %v12695_v56 = vld [vmem:[%s15188_s11 + $0xf8] sm:$0xff]  }
 0xb7d   :  { %v14888_v5 = vadd.f32 %v14769_v42, %v7658_v27  ;;  %v11467_v37 = vpop.f32.mrb[86].mxu0  ;;  %v12697_v27 = vld [vmem:[%s15188_s11 + $0x104] sm:$0xff]  }
 0xb7e   :  { %v14891_v46 = vadd.f32 %v11467_v37, %v14769_v42  ;;  %11513 = vmatmul.mubr.msk.bf16.vlgmr.msra.gmra.mrb[108].mxu1 %vm7887_vm8, %v7859_v40  ;;  %v7661_v49 = vpop.f32.mrb[87].mxu0  ;;  %v12699_v37 = vld [vmem:[%s15188_s11 + $0x114] ss:$0 sps:$4 sm:$0xff]  }
 0xb7f   :  { %v14898_v10 = vadd.f32 %v14769_v42, %v7661_v49  ;;  %11517 = vmatpush3.bf16.msra.mxu1 %v12670_v52  ;;  %11522 = vmatprep.mubr.msk.bf16.mxu1 %vm12732_vm7, %v12731_v2  ;;  %v12696_v52 = vld [vmem:[%s15188_s11 + $0x100] ss:$0 sps:$4 sm:$0xff]   ;;  %v12700_v49 = vld [vmem:[%s15188_s11 + $0x118] sm:$0xff]  }
 0xb80   :  { %v7867_v12 = vpack.c.bf16 %v14891_v46, %v14884_v45  ;;  %11518 = vmatprep.subr.bf16.mxu1 %v12731_v2  ;;  %v8656_v45 = vsel %vm1682_vm2, %v12696_v52, 0  ;;  %v8720_v46 = vsel %vm1682_vm2, %v12699_v37, 0 }
 0xb81   :  { %v7866_v3 = vpack.c.bf16 %v14898_v10, %v14888_v5  ;;  %v12698_v5 = vld [vmem:[%s15188_s11 + $0x10c] sm:$0xff]   ;;  %v12701_v10 = vld [vmem:[%s15188_s11 + $0x120] sm:$0xff]  }
 0xb83   :  { %11519 = vmatpush3.bf16.msra.mxu1 %v12671_v28  ;;  %v11470_v14 = vpop.f32.mrb[88].mxu0  ;;  %v12702_v28 = vld [vmem:[%s15188_s11 + $0x128] ss:$0 sps:$4 sm:$0xff]  }
 0xb84   :  { %v14914_v38 = vadd.f32 %v11470_v14, %v14769_v42  ;;  %v7674_v20 = vpop.f32.mrb[89].mxu0  ;;  %11520 = vmatprep.subr.bf16.mxu1 %v12731_v2  ;;  %v12705_v14 = vld [vmem:[%s15188_s11 + $0x13c] ss:$0 sps:$4 sm:$0xff]  }
 0xb85   :  { %v14919_v57 = vadd.f32 %v14769_v42, %v7674_v20  ;;  %v11471_v33 = vpop.f32.mrb[90].mxu0 }
 0xb86   :  { %v14922_v15 = vadd.f32 %v11471_v33, %v14769_v42  ;;  %v7677_v51 = vpop.f32.mrb[91].mxu0 }
 0xb87   :  { %v14925_v40 = vadd.f32 %v14769_v42, %v7677_v51  ;;  %11521 = vmatpush3.bf16.msra.mxu1 %v8144_v36 }
 0xb88   :  { %v7869_v25 = vpack.c.bf16 %v14922_v15, %v14914_v38  ;;  %11526 = vmatprep.subr.bf16.mxu1 %v12731_v2  ;;  %v8848_v38 = vsel %vm1682_vm2, %v12705_v14, 0 }
 0xb89   :  { %v7868_v53 = vpack.c.bf16 %v14925_v40, %v14919_v57 }
 0xb8a   :  { %11523 = vmatmul.mubr.msk.bf16.vlgmr.msra.gmra.mrb[112].mxu1 %vm7887_vm8, %v7860_v58 }
 0xb8b   :  { %11527 = vmatpush3.bf16.msra.mxu1 %v12673_v16  ;;  %v11474_v30 = vpop.f32.mrb[92].mxu0  ;;  %11532 = vmatprep.mubr.msk.bf16.mxu1 %vm12732_vm7, %v12731_v2 }
 0xb8c   :  { %v14945_v18 = vadd.f32 %v11474_v30, %v14769_v42  ;;  %v7690_v8 = vpop.f32.mrb[93].mxu0  ;;  %11528 = vmatprep.subr.bf16.mxu1 %v12731_v2 }
 0xb8d   :  { %v14952_v47 = vadd.f32 %v14769_v42, %v7690_v8  ;;  %v11475_v19 = vpop.f32.mrb[94].mxu0 }
 0xb8e   :  { %v14955_v54 = vadd.f32 %v11475_v19, %v14769_v42  ;;  %v7693_v58 = vpop.f32.mrb[95].mxu0 }
 0xb8f   :  { %v14958_v59 = vadd.f32 %v14769_v42, %v7693_v58  ;;  %11529 = vmatpush3.bf16.msra.mxu1 %v12674_v26  ;;  %v12677_v42 = vld [vmem:[%s15188_s11 + $0x80] sm:$0xff]  }
 0xb90   :  { %v7871_v60 = vpack.c.bf16 %v14955_v54, %v14945_v18  ;;  %11530 = vmatprep.subr.bf16.mxu1 %v12731_v2 }
 0xb91   :  { %v7870_v32 = vpack.c.bf16 %v14958_v59, %v14952_v47 }
 0xb93   :  { %11531 = vmatpush3.bf16.msra.mxu1 %v8208_v44 }
 0xb94   :  { %11536 = vmatprep.subr.bf16.mxu1 %v12731_v2 }
 0xb96   :  { %11533 = vmatmul.mubr.msk.bf16.vlgmr.msra.gmra.mrb[116].mxu1 %vm7887_vm8, %v7861_v29  ;;  %v12680_v29 = vld [vmem:[%s15188_s11 + $0x94] sm:$0xff]  }
 0xb97   :  { %11537 = vmatpush3.bf16.msra.mxu1 %v12676_v13  ;;  %11542 = vmatprep.mubr.msk.bf16.mxu1 %vm12732_vm7, %v12731_v2 }
 0xb98   :  { %11538 = vmatprep.subr.bf16.mxu1 %v12731_v2 }
 0xb9b   :  { %11539 = vmatpush3.bf16.msra.mxu1 %v12677_v42 }
 0xb9c   :  { %11540 = vmatprep.subr.bf16.mxu1 %v12731_v2 }
 0xb9f   :  { %11541 = vmatpush3.bf16.msra.mxu1 %v8272_v31 }
 0xba0   :  { %11546 = vmatprep.subr.bf16.mxu1 %v12731_v2 }
 0xba2   :  { %11543 = vmatmul.mubr.msk.bf16.vlgmr.msra.gmra.mrb[120].mxu1 %vm7887_vm8, %v7862_v7  ;;  %v12683_v7 = vld [vmem:[%s15188_s11 + $0xa8] sm:$0xff]  }
 0xba3   :  { %11547 = vmatpush3.bf16.msra.mxu1 %v12679_v39  ;;  %11552 = vmatprep.mubr.msk.bf16.mxu1 %vm12732_vm7, %v12731_v2 }
 0xba4   :  { %11548 = vmatprep.subr.bf16.mxu1 %v12731_v2 }
 0xba7   :  { %11549 = vmatpush3.bf16.msra.mxu1 %v12680_v29 }
 0xba8   :  { %11550 = vmatprep.subr.bf16.mxu1 %v12731_v2 }
 0xbab   :  { %11551 = vmatpush3.bf16.msra.mxu1 %v8336_v21 }
 0xbac   :  { %11556 = vmatprep.subr.bf16.mxu1 %v12731_v2 }
 0xbae   :  { %11553 = vmatmul.mubr.msk.bf16.vlgmr.msra.gmra.mrb[124].mxu1 %vm7887_vm8, %v7863_v17  ;;  %v12686_v17 = vld [vmem:[%s15188_s11 + $0xbc] sm:$0xff]  }
 0xbaf   :  { %11557 = vmatpush3.bf16.msra.mxu1 %v12682_v35  ;;  %11562 = vmatprep.mubr.msk.bf16.mxu1 %vm12732_vm7, %v12731_v2 }
 0xbb0   :  { %11558 = vmatprep.subr.bf16.mxu1 %v12731_v2 }
 0xbb3   :  { %11559 = vmatpush3.bf16.msra.mxu1 %v12683_v7 }
 0xbb4   :  { %11560 = vmatprep.subr.bf16.mxu1 %v12731_v2 }
 0xbb7   :  { %11561 = vmatpush3.bf16.msra.mxu1 %v8400_v43 }
 0xbb8   :  { %11566 = vmatprep.subr.bf16.mxu1 %v12731_v2 }
 0xbba   :  { %11563 = vmatmul.mubr.msk.bf16.vlgmr.msra.gmra.mrb[128].mxu1 %vm7887_vm8, %v7864_v24  ;;  %v12694_v24 = vld [vmem:[%s15188_s11 + $0xf0] sm:$0xff]  }
 0xbbb   :  { %11567 = vmatpush3.bf16.msra.mxu1 %v12685_v22  ;;  %11572 = vmatprep.mubr.msk.bf16.mxu1 %vm12732_vm7, %v12731_v2 }
 0xbbc   :  { %11568 = vmatprep.subr.bf16.mxu1 %v12731_v2 }
 0xbbf   :  { %11569 = vmatpush3.bf16.msra.mxu1 %v12686_v17 }
 0xbc0   :  { %11570 = vmatprep.subr.bf16.mxu1 %v12731_v2 }
 0xbc3   :  { %11571 = vmatpush3.bf16.msra.mxu1 %v8464_v63 }
 0xbc4   :  { %11576 = vmatprep.subr.bf16.mxu1 %v12731_v2 }
 0xbc6   :  { %11573 = vmatmul.mubr.msk.bf16.vlgmr.msra.gmra.mrb[132].mxu1 %vm7887_vm8, %v7865_v41  ;;  %v12693_v41 = vld [vmem:[%s15188_s11 + $0xec] ss:$0 sps:$4 sm:$0xff]  }
 0xbc7   :  { %11577 = vmatpush3.bf16.msra.mxu1 %v12688_v11  ;;  %11582 = vmatprep.mubr.msk.bf16.mxu1 %vm12732_vm7, %v12731_v2  ;;  %v8592_v4 = vsel %vm1682_vm2, %v12693_v41, 0 }
 0xbc8   :  { %11578 = vmatprep.subr.bf16.mxu1 %v12731_v2 }
 0xbcb   :  { %11579 = vmatpush3.bf16.msra.mxu1 %v12689_v0 }
 0xbcc   :  { %11580 = vmatprep.subr.bf16.mxu1 %v12731_v2 }
 0xbcf   :  { %11581 = vmatpush3.bf16.msra.mxu1 %v8528_v9 }
 0xbd0   :  { %11586 = vmatprep.subr.bf16.mxu1 %v12731_v2 }
 0xbd2   :  { %11583 = vmatmul.mubr.msk.bf16.vlgmr.msra.gmra.mrb[136].mxu1 %vm7887_vm8, %v7866_v3  ;;  %v12704_v3 = vld [vmem:[%s15188_s11 + $0x134] sm:$0xff]  }
 0xbd3   :  { %11587 = vmatpush3.bf16.msra.mxu1 %v12691_v34  ;;  %11592 = vmatprep.mubr.msk.bf16.mxu1 %vm12732_vm7, %v12731_v2 }
 0xbd4   :  { %11588 = vmatprep.subr.bf16.mxu1 %v12731_v2 }
 0xbd7   :  { %11589 = vmatpush3.bf16.msra.mxu1 %v12692_v23 }
 0xbd8   :  { %11590 = vmatprep.subr.bf16.mxu1 %v12731_v2 }
 0xbdb   :  { %11591 = vmatpush3.bf16.msra.mxu1 %v8592_v4 }
 0xbdc   :  { %11596 = vmatprep.subr.bf16.mxu1 %v12731_v2 }
 0xbde   :  { %11593 = vmatmul.mubr.msk.bf16.vlgmr.msra.gmra.mrb[140].mxu1 %vm7887_vm8, %v7867_v12  ;;  %v8784_v12 = vsel %vm1682_vm2, %v12702_v28, 0 }
 0xbdf   :  { %11597 = vmatpush3.bf16.msra.mxu1 %v12694_v24  ;;  %11602 = vmatprep.mubr.msk.bf16.mxu1 %vm12732_vm7, %v12731_v2 }
 0xbe0   :  { %11598 = vmatprep.subr.bf16.mxu1 %v12731_v2 }
 0xbe3   :  { %11599 = vmatpush3.bf16.msra.mxu1 %v12695_v56 }
 0xbe4   :  { %11600 = vmatprep.subr.bf16.mxu1 %v12731_v2 }
 0xbe7   :  { %11601 = vmatpush3.bf16.msra.mxu1 %v8656_v45 }
 0xbe8   :  { %11606 = vmatprep.subr.bf16.mxu1 %v12731_v2 }
 0xbea   :  { %11603 = vmatmul.mubr.msk.bf16.vlgmr.msra.gmra.mrb[144].mxu1 %vm7887_vm8, %v7868_v53 }
 0xbeb   :  { %11607 = vmatpush3.bf16.msra.mxu1 %v12697_v27  ;;  %11612 = vmatprep.mubr.msk.bf16.mxu1 %vm12732_vm7, %v12731_v2 }
 0xbec   :  { %11608 = vmatprep.subr.bf16.mxu1 %v12731_v2 }
 0xbef   :  { %11609 = vmatpush3.bf16.msra.mxu1 %v12698_v5 }
 0xbf0   :  { %11610 = vmatprep.subr.bf16.mxu1 %v12731_v2 }
 0xbf3   :  { %11611 = vmatpush3.bf16.msra.mxu1 %v8720_v46 }
 0xbf4   :  { %11616 = vmatprep.subr.bf16.mxu1 %v12731_v2 }
 0xbf6   :  { %11613 = vmatmul.mubr.msk.bf16.vlgmr.msra.gmra.mrb[148].mxu1 %vm7887_vm8, %v7869_v25 }
 0xbf7   :  { %11617 = vmatpush3.bf16.msra.mxu1 %v12700_v49  ;;  %11622 = vmatprep.mubr.msk.bf16.mxu1 %vm12732_vm7, %v12731_v2 }
 0xbf8   :  { %11618 = vmatprep.subr.bf16.mxu1 %v12731_v2 }
 0xbfb   :  { %11619 = vmatpush3.bf16.msra.mxu1 %v12701_v10 }
 0xbfc   :  { %11620 = vmatprep.subr.bf16.mxu1 %v12731_v2 }
 0xbff   :  { %11621 = vmatpush3.bf16.msra.mxu1 %v8784_v12 }
 0xc00   :  { %11626 = vmatprep.subr.bf16.mxu1 %v12731_v2 }
 0xc02   :  { %11623 = vmatmul.mubr.msk.bf16.vlgmr.msra.gmra.mrb[152].mxu1 %vm7887_vm8, %v7870_v32 }
 0xc03   :  { %11627 = vmatpush3.bf16.msra.mxu1 %v12703_v50  ;;  %11632 = vmatprep.mubr.msk.bf16.mxu1 %vm12732_vm7, %v12731_v2 }
 0xc04   :  { %11628 = vmatprep.subr.bf16.mxu1 %v12731_v2 }
 0xc07   :  { %11629 = vmatpush3.bf16.msra.mxu1 %v12704_v3 }
 0xc08   :  { %11630 = vmatprep.subr.bf16.mxu1 %v12731_v2 }
 0xc0b   :  { %11631 = vmatpush3.bf16.msra.mxu1 %v8848_v38 }
 0xc0e   :  { %11633 = vmatmul.mubr.msk.bf16.vlgmr.msra.gmra.mrb[156].mxu1 %vm7887_vm8, %v7871_v60 }
 0xc2d   :  { %v7928_v20 = vpop.f32.mrb[96].mxu1 }
 0xc2e   :  { %v11484_v36 = vpop.f32.mrb[97].mxu1 }
 0xc2f   :  { %v7931_v57 = vpop.f32.mrb[98].mxu1 }
 0xc30   :  { %v11485_v33 = vpop.f32.mrb[99].mxu1 }
 0xc39   :  { %v7990_v15 = vpop.f32.mrb[100].mxu1 }
 0xc3a   :  { %v7991_v51 = vadd.f32 %v7990_v15, %v7928_v20  ;;  %v11494_v40 = vpop.f32.mrb[101].mxu1 }
 0xc3b   :  { %v7993_v16 = vpop.f32.mrb[102].mxu1 }
 0xc3c   :  { %v7994_v25 = vadd.f32 %v7993_v16, %v7931_v57  ;;  %v11495_v53 = vpop.f32.mrb[103].mxu1 }
 0xc45   :  { %v8052_v30 = vpop.f32.mrb[104].mxu1 }
 0xc46   :  { %v8059_v2 = vadd.f32 %v8052_v30, %v7991_v51  ;;  %v11504_v26 = vpop.f32.mrb[105].mxu1 }
 0xc47   :  { %v8055_v8 = vpop.f32.mrb[106].mxu1 }
 0xc48   :  { %v8060_v55 = vadd.f32 %v8055_v8, %v7994_v25  ;;  %v11505_v47 = vpop.f32.mrb[107].mxu1 }
 0xc51   :  { %v8116_v19 = vpop.f32.mrb[108].mxu1 }
 0xc52   :  { %v8123_v18 = vadd.f32 %v8116_v19, %v8059_v2  ;;  %v11514_v54 = vpop.f32.mrb[109].mxu1 }
 0xc53   :  { %v8119_v58 = vpop.f32.mrb[110].mxu1 }
 0xc54   :  { %v8124_v59 = vadd.f32 %v8119_v58, %v8060_v55  ;;  %v11515_v60 = vpop.f32.mrb[111].mxu1 }
 0xc5d   :  { %v8180_v44 = vpop.f32.mrb[112].mxu1 }
 0xc5e   :  { %v8187_v32 = vadd.f32 %v8180_v44, %v8123_v18  ;;  %v11524_v13 = vpop.f32.mrb[113].mxu1 }
 0xc5f   :  { %v8183_v42 = vpop.f32.mrb[114].mxu1 }
 0xc60   :  { %v8188_v6 = vadd.f32 %v8183_v42, %v8124_v59  ;;  %v11525_v31 = vpop.f32.mrb[115].mxu1  ;;  %v9584_v42 = vld [vmem:[%s15189_s12] ss:$0 sm:$0xff] }
 0xc69   :  { %v8244_v39 = vpop.f32.mrb[116].mxu1 }
 0xc6a   :  { %v8251_v29 = vadd.f32 %v8244_v39, %v8187_v32  ;;  %v11534_v48 = vpop.f32.mrb[117].mxu1 }
 0xc6b   :  { %v8247_v21 = vpop.f32.mrb[118].mxu1 }
 0xc6c   :  { %v8252_v35 = vadd.f32 %v8247_v21, %v8188_v6  ;;  %v11535_v7 = vpop.f32.mrb[119].mxu1 }
 0xc75   :  { %v8308_v61 = vpop.f32.mrb[120].mxu1 }
 0xc76   :  { %v8315_v43 = vadd.f32 %v8308_v61, %v8251_v29  ;;  %v11544_v22 = vpop.f32.mrb[121].mxu1 }
 0xc77   :  { %v8311_v17 = vpop.f32.mrb[122].mxu1 }
 0xc78   :  { %v8316_v62 = vadd.f32 %v8311_v17, %v8252_v35  ;;  %v11545_v63 = vpop.f32.mrb[123].mxu1 }
 0xc81   :  { %v8372_v11 = vpop.f32.mrb[124].mxu1 }
 0xc82   :  { %v8379_v0 = vadd.f32 %v8372_v11, %v8315_v43  ;;  %v11554_v1 = vpop.f32.mrb[125].mxu1 }
 0xc83   :  { %v8375_v9 = vpop.f32.mrb[126].mxu1 }
 0xc84   :  { %v8380_v34 = vadd.f32 %v8375_v9, %v8316_v62  ;;  %v11555_v23 = vpop.f32.mrb[127].mxu1 }
 0xc8d   :  { %v8436_v41 = vpop.f32.mrb[128].mxu1 }
 0xc8e   :  { %v8443_v4 = vadd.f32 %v8436_v41, %v8379_v0  ;;  %v11564_v24 = vpop.f32.mrb[129].mxu1 }
 0xc8f   :  { %v8439_v56 = vpop.f32.mrb[130].mxu1 }
 0xc90   :  { %v8444_v52 = vadd.f32 %v8439_v56, %v8380_v34  ;;  %v11565_v45 = vpop.f32.mrb[131].mxu1 }
 0xc99   :  { %v8500_v27 = vpop.f32.mrb[132].mxu1 }
 0xc9a   :  { %v8507_v5 = vadd.f32 %v8500_v27, %v8443_v4  ;;  %v11574_v37 = vpop.f32.mrb[133].mxu1 }
 0xc9b   :  { %v8503_v46 = vpop.f32.mrb[134].mxu1 }
 0xc9c   :  { %v8508_v49 = vadd.f32 %v8503_v46, %v8444_v52  ;;  %v11575_v10 = vpop.f32.mrb[135].mxu1 }
 0xca5   :  { %v8564_v28 = vpop.f32.mrb[136].mxu1 }
 0xca6   :  { %v8571_v12 = vadd.f32 %v8564_v28, %v8507_v5  ;;  %v11584_v50 = vpop.f32.mrb[137].mxu1 }
 0xca7   :  { %v8567_v3 = vpop.f32.mrb[138].mxu1 }
 0xca8   :  { %v8572_v14 = vadd.f32 %v8567_v3, %v8508_v49  ;;  %v11585_v38 = vpop.f32.mrb[139].mxu1 }
 0xcb1   :  { %v8628_v20 = vpop.f32.mrb[140].mxu1 }
 0xcb2   :  { %v8635_v36 = vadd.f32 %v8628_v20, %v8571_v12  ;;  %v11594_v57 = vpop.f32.mrb[141].mxu1 }
 0xcb3   :  { %v8631_v33 = vpop.f32.mrb[142].mxu1 }
 0xcb4   :  { %v8636_v15 = vadd.f32 %v8631_v33, %v8572_v14  ;;  %v11595_v51 = vpop.f32.mrb[143].mxu1 }
 0xcbd   :  { %v8692_v40 = vpop.f32.mrb[144].mxu1 }
 0xcbe   :  { %v8699_v16 = vadd.f32 %v8692_v40, %v8635_v36  ;;  %v11604_v25 = vpop.f32.mrb[145].mxu1 }
 0xcbf   :  { %v8695_v53 = vpop.f32.mrb[146].mxu1 }
 0xcc0   :  { %v8700_v30 = vadd.f32 %v8695_v53, %v8636_v15  ;;  %v11605_v2 = vpop.f32.mrb[147].mxu1 }
 0xcc9   :  { %v8756_v26 = vpop.f32.mrb[148].mxu1 }
 0xcca   :  { %v8763_v8 = vadd.f32 %v8756_v26, %v8699_v16  ;;  %v11614_v55 = vpop.f32.mrb[149].mxu1 }
 0xccb   :  { %v8759_v47 = vpop.f32.mrb[150].mxu1 }
 0xccc   :  { %v8764_v19 = vadd.f32 %v8759_v47, %v8700_v30  ;;  %v11615_v18 = vpop.f32.mrb[151].mxu1 }
 0xcd5   :  { %v8820_v54 = vpop.f32.mrb[152].mxu1 }
 0xcd6   :  { %v8827_v58 = vadd.f32 %v8820_v54, %v8763_v8  ;;  %v11624_v59 = vpop.f32.mrb[153].mxu1 }
 0xcd7   :  { %v8823_v60 = vpop.f32.mrb[154].mxu1 }
 0xcd8   :  { %v8828_v44 = vadd.f32 %v8823_v60, %v8764_v19  ;;  %v11625_v32 = vpop.f32.mrb[155].mxu1 }
 0xce1   :  { %v8884_v13 = vpop.f32.mrb[156].mxu1 }
 0xce2   :  { %v8891_v6 = vadd.f32 %v8884_v13, %v8827_v58  ;;  %v11634_v31 = vpop.f32.mrb[157].mxu1 }
 0xce3   :  { %v8887_v39 = vpop.f32.mrb[158].mxu1 }
 0xce4   :  { %v8900_v29 = vadd.f32 %v9584_v42, %v8891_v6  ;;  %v8892_v48 = vadd.f32 %v8887_v39, %v8828_v44  ;;  %v11635_v21 = vpop.f32.mrb[159].mxu1 }
 0xce6   :  { %8902 = vst.msk [vmem:[#allocation6] sm:$0xff] %vm3096_vm4, %v8900_v29  ;;  %v8901_v35 = vadd.f32 %v9584_v42, %v8892_v48 }
 0xce8   :  { %8903 = vst.msk [vmem:[#allocation6 + $0x8] sm:$0xff] %vm3096_vm4, %v8901_v35 }
 0xce9   :  { %12717 = shalt.err (!%p12714_p4)
}
 0xcea   :  { %s12718_s14 = scalar_lea.hbm %s15190_s13, 256 }
 0xceb   :  { %p12719_p5 = scmp.ne.s32.totalorder %s15190_s13, %s12718_s14  ;;  %p12722_p6 = scmp.lt.u32.totalorder %s12718_s14, %s15190_s13 }
 0xced   :  { %p12724_p7 = pnand %p12722_p6, %p12719_p5 }
 0xcef   :  { %12727 = shalt.err (!%p12724_p7)
}
 0xcf0   :  { %s12734_s19 = smov 128   ;;  %s12735_s3 = smov 8  }
 0xcf1   :  { %8915 = dma.vmem_to_hbm [thread:$0]  %s8910_s2, 256, %s15190_s13, [#allocation7], %s12734_s19, %s12734_s19, %s12735_s3  }
 0xcf2   :  { %12728 = dma.done.wait [#allocation7], 256  }
 0xcf3   :  { %12729 = vsyncadd [#allocation7], 4294967040 }
 0xcf4   :  { %8919 = vsyncpa [#allocation7], 1 }

</bundles_post_ra>
